<compile_context>
chip_gen: v7x
topology: tpu7x:2x2x1
jax: 0.10.0
libtpu: 0.0.40
codegen_flags: <defaults>
</compile_context>

<pallas_src>
import jax
import jax.numpy as jnp
from jax.experimental import pallas as pl
from jax.experimental.pallas import tpu as pltpu

# Logical sizes (PyTorch module) and lane-padded sizes.
D, H, Z = 784, 400, 40
D_PAD, H_PAD, Z_PAD = 896, 512, 128      # 7*128, 4*128, 1*128


def _round_up(n, m):
    return (n + m - 1) // m * m


# -----------------------------------------------------------------------------
# Kernel: one batch tile (TB rows) of the full forward pass.
# -----------------------------------------------------------------------------
def _vae_kernel(
    x_ref,                 # (TB, 896) bf16  flattened, zero-padded input
    eps_ref,               # (TB, 128) f32   reparameterization noise (padded)
    w1_ref, b1_ref,        # (896, 512) bf16, (1, 512) f32
    wm_ref, bm_ref,        # (512, 256) bf16, (1, 256) f32  fused fc21|fc22
    w3_ref, b3_ref,        # (128, 512) bf16, (1, 512) f32
    w4_ref, b4_ref,        # (512, 896) bf16, (1, 896) f32
    recon_ref,             # out: (TB, 896) f32
    mu_ref,                # out: (TB, 128) f32
    logvar_ref,            # out: (TB, 128) f32
):
    x = x_ref[...]                                                 # bf16

    # ---- encode: fc1 + relu (bf16 MXU, f32 accumulation) ----
    h1 = jnp.dot(x, w1_ref[...], preferred_element_type=jnp.float32) + b1_ref[...]
    h1 = jnp.maximum(h1, 0.0)                                      # (TB, 512) f32

    # ---- fused fc21|fc22 head: single (512, 256) matmul ----
    mulv = (jnp.dot(h1.astype(jnp.bfloat16), wm_ref[...],
                    preferred_element_type=jnp.float32) + bm_ref[...])
    mu = mulv[:, :Z_PAD]                                           # (TB, 128)
    logvar = mulv[:, Z_PAD:]                                       # (TB, 128)

    # ---- reparameterize (f32 elementwise; padded lanes: logvar=0 -> std=1,
    #      eps=0 -> z=mu=0, so padding stays exactly zero / finite) ----
    z = mu + eps_ref[...] * jnp.exp(0.5 * logvar)                  # (TB, 128)

    # ---- decode: fc3 + relu ----
    h3 = (jnp.dot(z.astype(jnp.bfloat16), w3_ref[...],
                  preferred_element_type=jnp.float32) + b3_ref[...])
    h3 = jnp.maximum(h3, 0.0)                                      # (TB, 512)

    # ---- fc4 + sigmoid (tanh form -> EUP, no VALU divide) ----
    logits = (jnp.dot(h3.astype(jnp.bfloat16), w4_ref[...],
                      preferred_element_type=jnp.float32) + b4_ref[...])
    recon_ref[...] = 0.5 * jnp.tanh(0.5 * logits) + 0.5
    mu_ref[...] = mu
    logvar_ref[...] = logvar


# -----------------------------------------------------------------------------
# Wrapper
# -----------------------------------------------------------------------------
@jax.jit
def vae_forward(x_nchw, eps, pp):
    """VAE forward.

    Args:
      x_nchw: (B, 1, 28, 28) f32 images (NCHW, like PyTorch).
      eps:    (B, 40) f32 standard-normal noise.
      pp:     lane-padded bf16/f32 params from `pad_params`.
    Returns:
      (recon (B, 784), mu (B, 40), logvar (B, 40)), all f32.
    """
    B = x_nchw.shape[0]
    TB = 128 if B >= 128 else _round_up(B, 8)        # f32 sublane multiple
    B_pad = _round_up(B, TB)

    # glue: x.view(-1, 784), lane/batch zero-padding, bf16 cast (halves x DMA)
    x = x_nchw.reshape(B, D).astype(jnp.bfloat16)
    x = jnp.pad(x, ((0, B_pad - B), (0, D_PAD - D)))
    eps_p = jnp.pad(eps.astype(jnp.float32), ((0, B_pad - B), (0, Z_PAD - Z)))

    def row_spec(width):
        return pl.BlockSpec((TB, width), lambda i: (i, 0))

    def const_spec(arr):
        return pl.BlockSpec(arr.shape, lambda i: (0, 0))   # resident weight

    in_specs = [
        row_spec(D_PAD),                      # x
        row_spec(Z_PAD),                      # eps
        const_spec(pp["w1"]), const_spec(pp["b1"]),
        const_spec(pp["wm"]), const_spec(pp["bm"]),
        const_spec(pp["w3"]), const_spec(pp["b3"]),
        const_spec(pp["w4"]), const_spec(pp["b4"]),
    ]
    out_specs = (row_spec(D_PAD), row_spec(Z_PAD), row_spec(Z_PAD))
    out_shape = (
        jax.ShapeDtypeStruct((B_pad, D_PAD), jnp.float32),   # recon (padded)
        jax.ShapeDtypeStruct((B_pad, Z_PAD), jnp.float32),   # mu (padded)
        jax.ShapeDtypeStruct((B_pad, Z_PAD), jnp.float32),   # logvar (padded)
    )

    # Advisory cost estimate for XLA scheduling around the custom call.
    flops = 2 * B_pad * (D_PAD * H_PAD + H_PAD * 2 * Z_PAD
                         + Z_PAD * H_PAD + H_PAD * D_PAD)
    transcendentals = B_pad * (Z_PAD + D_PAD)                # exp + tanh
    param_bytes = sum(int(v.size) * v.dtype.itemsize for v in pp.values())
    bytes_accessed = (param_bytes
                      + B_pad * D_PAD * 2                    # x (bf16)
                      + B_pad * Z_PAD * 4                    # eps
                      + B_pad * (D_PAD + 2 * Z_PAD) * 4)     # outputs

    recon_p, mu_p, logvar_p = pl.pallas_call(
        _vae_kernel,
        out_shape=out_shape,
        grid=(B_pad // TB,),
        in_specs=in_specs,
        out_specs=out_specs,
        compiler_params=pltpu.CompilerParams(
            dimension_semantics=("parallel",)),
        cost_estimate=pl.CostEstimate(
            flops=flops,
            transcendentals=transcendentals,
            bytes_accessed=bytes_accessed),
    )(x, eps_p,
      pp["w1"], pp["b1"], pp["wm"], pp["bm"],
      pp["w3"], pp["b3"], pp["w4"], pp["b4"])

    # Slice back to logical sizes.
    return recon_p[:B, :D], mu_p[:B, :Z], logvar_p[:B, :Z]


# -----------------------------------------------------------------------------
# Parameter init (PyTorch nn.Linear-style uniform, f32, (in, out) layout)
# and one-time lane padding / bf16 cast.
# -----------------------------------------------------------------------------
def init_params(key):
    def linear(key, fan_in, fan_out):
        kw, kb = jax.random.split(key)
        bound = 1.0 / jnp.sqrt(fan_in)
        w = jax.random.uniform(kw, (fan_in, fan_out), jnp.float32, -bound, bound)
        b = jax.random.uniform(kb, (1, fan_out), jnp.float32, -bound, bound)
        return w, b

    k1, k21, k22, k3, k4 = jax.random.split(key, 5)
    w1, b1 = linear(k1, D, H)
    w21, b21 = linear(k21, H, Z)
    w22, b22 = linear(k22, H, Z)
    w3, b3 = linear(k3, Z, H)
    w4, b4 = linear(k4, H, D)
    return dict(w1=w1, b1=b1, w21=w21, b21=b21, w22=w22, b22=b22,
                w3=w3, b3=b3, w4=w4, b4=b4)


def pad_params(p):
    """Zero-pad to lane multiples, fuse fc21/fc22, cast weights to bf16."""
    def pad_w(w, rin, cout):
        return jnp.pad(w, ((0, rin - w.shape[0]),
                           (0, cout - w.shape[1]))).astype(jnp.bfloat16)

    def pad_b(b, cout):
        return jnp.pad(b, ((0, 0), (0, cout - b.shape[1]))).astype(jnp.float32)

    wm = jnp.zeros((H_PAD, 2 * Z_PAD), jnp.float32)
    wm = wm.at[:H, :Z].set(p["w21"]).at[:H, Z_PAD:Z_PAD + Z].set(p["w22"])
    bm = jnp.zeros((1, 2 * Z_PAD), jnp.float32)
    bm = bm.at[:, :Z].set(p["b21"]).at[:, Z_PAD:Z_PAD + Z].set(p["b22"])

    return dict(
        w1=pad_w(p["w1"], D_PAD, H_PAD), b1=pad_b(p["b1"], H_PAD),
        wm=wm.astype(jnp.bfloat16),      bm=bm,
        w3=pad_w(p["w3"], Z_PAD, H_PAD), b3=pad_b(p["b3"], H_PAD),
        w4=pad_w(p["w4"], H_PAD, D_PAD), b4=pad_b(p["b4"], D_PAD),
    )


# -----------------------------------------------------------------------------
# References
# -----------------------------------------------------------------------------
def vae_forward_matched_ref(x_nchw, eps, pp):
    """Pure-JAX reference using the SAME padded bf16 params / bf16 matmul inputs."""
    B = x_nchw.shape[0]
    x = jnp.pad(x_nchw.reshape(B, D).astype(jnp.bfloat16), ((0, 0), (0, D_PAD - D)))
    eps_p = jnp.pad(eps, ((0, 0), (0, Z_PAD - Z)))
    h1 = jax.nn.relu(jnp.dot(x, pp["w1"], preferred_element_type=jnp.float32) + pp["b1"])
    mulv = jnp.dot(h1.astype(jnp.bfloat16), pp["wm"],
                   preferred_element_type=jnp.float32) + pp["bm"]
    mu, logvar = mulv[:, :Z_PAD], mulv[:, Z_PAD:]
    z = mu + eps_p * jnp.exp(0.5 * logvar)
    h3 = jax.nn.relu(jnp.dot(z.astype(jnp.bfloat16), pp["w3"],
                             preferred_element_type=jnp.float32) + pp["b3"])
    logits = jnp.dot(h3.astype(jnp.bfloat16), pp["w4"],
                     preferred_element_type=jnp.float32) + pp["b4"]
    recon = jax.nn.sigmoid(logits)
    return recon[:, :D], mu[:, :Z], logvar[:, :Z]


def vae_forward_ref(x_nchw, eps, p):
    """Full-precision f32 semantic reference (original module math)."""
    x = x_nchw.reshape(x_nchw.shape[0], D).astype(jnp.float32)
    h1 = jax.nn.relu(x @ p["w1"] + p["b1"])
    mu = h1 @ p["w21"] + p["b21"]
    logvar = h1 @ p["w22"] + p["b22"]
    z = mu + eps * jnp.exp(0.5 * logvar)
    h3 = jax.nn.relu(z @ p["w3"] + p["b3"])
    recon = jax.nn.sigmoid(h3 @ p["w4"] + p["b4"])
    return recon, mu, logvar


if __name__ == "__main__":
    key = jax.random.PRNGKey(0)
    kx, keps, kp = jax.random.split(key, 3)

    B = 256                                     # 2 batch tiles of TB=128
    x = jax.random.uniform(kx, (B, 1, 28, 28), jnp.float32)   # NCHW MNIST-like
    eps = jax.random.normal(keps, (B, Z), jnp.float32)        # torch.randn_like(std)
    params = init_params(kp)
    pparams = pad_params(params)                # one-time pad / bf16 cast

    recon, mu, logvar = vae_forward(x, eps, pparams)
    jax.block_until_ready((recon, mu, logvar))

    # Exactness check vs a pure-JAX reference doing identical bf16 math.
    r_m, mu_m, lv_m = vae_forward_matched_ref(x, eps, pparams)
    assert jnp.allclose(recon, r_m, atol=2e-3, rtol=2e-3), "recon mismatch (matched)"
    assert jnp.allclose(mu, mu_m, atol=2e-3, rtol=2e-3), "mu mismatch (matched)"
    assert jnp.allclose(logvar, lv_m, atol=2e-3, rtol=2e-3), "logvar mismatch (matched)"

    # Semantic check vs the full-f32 original module math (bf16 weight tolerance).
    r_f, mu_f, lv_f = vae_forward_ref(x, eps, params)
    assert jnp.allclose(recon, r_f, atol=1e-1, rtol=1e-1), "recon mismatch (f32 ref)"
    assert jnp.allclose(mu, mu_f, atol=1e-1, rtol=1e-1), "mu mismatch (f32 ref)"
    assert jnp.allclose(logvar, lv_f, atol=1e-1, rtol=1e-1), "logvar mismatch (f32 ref)"

    print("KERNEL_OK")
</pallas_src>

<mosaic_0001>
module attributes {stable_mosaic.version = 11 : i64} {
  func.func @_vae_kernel(%arg0: i32, %arg1: memref<128x896xbf16, #tpu.memory_space<vmem>>, %arg2: memref<128x128xf32, #tpu.memory_space<vmem>>, %arg3: memref<896x512xbf16, #tpu.memory_space<vmem>>, %arg4: memref<1x512xf32, #tpu.memory_space<vmem>>, %arg5: memref<512x256xbf16, #tpu.memory_space<vmem>>, %arg6: memref<1x256xf32, #tpu.memory_space<vmem>>, %arg7: memref<128x512xbf16, #tpu.memory_space<vmem>>, %arg8: memref<1x512xf32, #tpu.memory_space<vmem>>, %arg9: memref<512x896xbf16, #tpu.memory_space<vmem>>, %arg10: memref<1x896xf32, #tpu.memory_space<vmem>>, %arg11: memref<128x896xf32, #tpu.memory_space<vmem>>, %arg12: memref<128x128xf32, #tpu.memory_space<vmem>>, %arg13: memref<128x128xf32, #tpu.memory_space<vmem>>) attributes {dimension_semantics = [#tpu.dimension_semantics<parallel>], iteration_bounds = array<i64: 2>, scalar_prefetch = 0 : i64, scratch_operands = 0 : i64, tpu.core_type = #tpu.core_type<tc>, window_params = [{transform_indices = @transform_0, window_bounds = array<i64: 128, 896>}, {transform_indices = @transform_1, window_bounds = array<i64: 128, 128>}, {pipeline_mode = #tpu.pipeline_mode<synchronous>, transform_indices = @transform_2, window_bounds = array<i64: 896, 512>}, {pipeline_mode = #tpu.pipeline_mode<synchronous>, transform_indices = @transform_3, window_bounds = array<i64: 1, 512>}, {pipeline_mode = #tpu.pipeline_mode<synchronous>, transform_indices = @transform_4, window_bounds = array<i64: 512, 256>}, {pipeline_mode = #tpu.pipeline_mode<synchronous>, transform_indices = @transform_5, window_bounds = array<i64: 1, 256>}, {pipeline_mode = #tpu.pipeline_mode<synchronous>, transform_indices = @transform_6, window_bounds = array<i64: 128, 512>}, {pipeline_mode = #tpu.pipeline_mode<synchronous>, transform_indices = @transform_7, window_bounds = array<i64: 1, 512>}, {pipeline_mode = #tpu.pipeline_mode<synchronous>, transform_indices = @transform_8, window_bounds = array<i64: 512, 896>}, {pipeline_mode = #tpu.pipeline_mode<synchronous>, transform_indices = @transform_9, window_bounds = array<i64: 1, 896>}, {transform_indices = @transform_10, window_bounds = array<i64: 128, 896>}, {transform_indices = @transform_11, window_bounds = array<i64: 128, 128>}, {transform_indices = @transform_12, window_bounds = array<i64: 128, 128>}]} {
    %c0 = arith.constant 0 : index
    %c0_0 = arith.constant 0 : index
    %0 = vector.load %arg1[%c0, %c0_0] : memref<128x896xbf16, #tpu.memory_space<vmem>>, vector<128x896xbf16>
    %c0_1 = arith.constant 0 : index
    %c0_2 = arith.constant 0 : index
    %1 = vector.load %arg3[%c0_1, %c0_2] : memref<896x512xbf16, #tpu.memory_space<vmem>>, vector<896x512xbf16>
    %cst = arith.constant dense<0.000000e+00> : vector<128x512xf32>
    %2 = tpu.matmul %0, %1, %cst {dimension_numbers = #tpu.dot_dimension_numbers<[1], [0], [0], [1], [0, 0, 1, 1], [], []>} : vector<128x896xbf16>, vector<896x512xbf16>, vector<128x512xf32> -> vector<128x512xf32>
    %c0_3 = arith.constant 0 : index
    %c0_4 = arith.constant 0 : index
    %3 = vector.load %arg4[%c0_3, %c0_4] : memref<1x512xf32, #tpu.memory_space<vmem>>, vector<1x512xf32>
    %4 = vector.broadcast %3 : vector<1x512xf32> to vector<128x512xf32>
    %5 = arith.addf %2, %4 : vector<128x512xf32>
    %cst_5 = arith.constant 0.000000e+00 : f32
    %6 = vector.broadcast %cst_5 : f32 to vector<128x512xf32>
    %7 = arith.maximumf %5, %6 : vector<128x512xf32>
    %8 = arith.truncf %7 : vector<128x512xf32> to vector<128x512xbf16>
    %c0_6 = arith.constant 0 : index
    %c0_7 = arith.constant 0 : index
    %9 = vector.load %arg5[%c0_6, %c0_7] : memref<512x256xbf16, #tpu.memory_space<vmem>>, vector<512x256xbf16>
    %cst_8 = arith.constant dense<0.000000e+00> : vector<128x256xf32>
    %10 = tpu.matmul %8, %9, %cst_8 {dimension_numbers = #tpu.dot_dimension_numbers<[1], [0], [0], [1], [0, 0, 1, 1], [], []>} : vector<128x512xbf16>, vector<512x256xbf16>, vector<128x256xf32> -> vector<128x256xf32>
    %c0_9 = arith.constant 0 : index
    %c0_10 = arith.constant 0 : index
    %11 = vector.load %arg6[%c0_9, %c0_10] : memref<1x256xf32, #tpu.memory_space<vmem>>, vector<1x256xf32>
    %12 = vector.broadcast %11 : vector<1x256xf32> to vector<128x256xf32>
    %13 = arith.addf %10, %12 : vector<128x256xf32>
    %14 = vector.extract_strided_slice %13 {offsets = [0, 0], sizes = [128, 128], strides = [1, 1]} : vector<128x256xf32> to vector<128x128xf32>
    %15 = vector.extract_strided_slice %13 {offsets = [0, 128], sizes = [128, 128], strides = [1, 1]} : vector<128x256xf32> to vector<128x128xf32>
    %c0_11 = arith.constant 0 : index
    %c0_12 = arith.constant 0 : index
    %16 = vector.load %arg2[%c0_11, %c0_12] : memref<128x128xf32, #tpu.memory_space<vmem>>, vector<128x128xf32>
    %cst_13 = arith.constant 5.000000e-01 : f32
    %17 = vector.broadcast %cst_13 : f32 to vector<128x128xf32>
    %18 = arith.mulf %17, %15 : vector<128x128xf32>
    %19 = math.exp %18 : vector<128x128xf32>
    %20 = arith.mulf %16, %19 : vector<128x128xf32>
    %21 = arith.addf %14, %20 : vector<128x128xf32>
    %22 = arith.truncf %21 : vector<128x128xf32> to vector<128x128xbf16>
    %c0_14 = arith.constant 0 : index
    %c0_15 = arith.constant 0 : index
    %23 = vector.load %arg7[%c0_14, %c0_15] : memref<128x512xbf16, #tpu.memory_space<vmem>>, vector<128x512xbf16>
    %cst_16 = arith.constant dense<0.000000e+00> : vector<128x512xf32>
    %24 = tpu.matmul %22, %23, %cst_16 {dimension_numbers = #tpu.dot_dimension_numbers<[1], [0], [0], [1], [0, 0, 1, 1], [], []>} : vector<128x128xbf16>, vector<128x512xbf16>, vector<128x512xf32> -> vector<128x512xf32>
    %c0_17 = arith.constant 0 : index
    %c0_18 = arith.constant 0 : index
    %25 = vector.load %arg8[%c0_17, %c0_18] : memref<1x512xf32, #tpu.memory_space<vmem>>, vector<1x512xf32>
    %26 = vector.broadcast %25 : vector<1x512xf32> to vector<128x512xf32>
    %27 = arith.addf %24, %26 : vector<128x512xf32>
    %cst_19 = arith.constant 0.000000e+00 : f32
    %28 = vector.broadcast %cst_19 : f32 to vector<128x512xf32>
    %29 = arith.maximumf %27, %28 : vector<128x512xf32>
    %30 = arith.truncf %29 : vector<128x512xf32> to vector<128x512xbf16>
    %c0_20 = arith.constant 0 : index
    %c0_21 = arith.constant 0 : index
    %31 = vector.load %arg9[%c0_20, %c0_21] : memref<512x896xbf16, #tpu.memory_space<vmem>>, vector<512x896xbf16>
    %cst_22 = arith.constant dense<0.000000e+00> : vector<128x896xf32>
    %32 = tpu.matmul %30, %31, %cst_22 {dimension_numbers = #tpu.dot_dimension_numbers<[1], [0], [0], [1], [0, 0, 1, 1], [], []>} : vector<128x512xbf16>, vector<512x896xbf16>, vector<128x896xf32> -> vector<128x896xf32>
    %c0_23 = arith.constant 0 : index
    %c0_24 = arith.constant 0 : index
    %33 = vector.load %arg10[%c0_23, %c0_24] : memref<1x896xf32, #tpu.memory_space<vmem>>, vector<1x896xf32>
    %34 = vector.broadcast %33 : vector<1x896xf32> to vector<128x896xf32>
    %35 = arith.addf %32, %34 : vector<128x896xf32>
    %cst_25 = arith.constant 5.000000e-01 : f32
    %36 = vector.broadcast %cst_25 : f32 to vector<128x896xf32>
    %37 = arith.mulf %36, %35 : vector<128x896xf32>
    %38 = math.tanh %37 : vector<128x896xf32>
    %cst_26 = arith.constant 5.000000e-01 : f32
    %39 = vector.broadcast %cst_26 : f32 to vector<128x896xf32>
    %40 = arith.mulf %39, %38 : vector<128x896xf32>
    %cst_27 = arith.constant 5.000000e-01 : f32
    %41 = vector.broadcast %cst_27 : f32 to vector<128x896xf32>
    %42 = arith.addf %40, %41 : vector<128x896xf32>
    %c0_28 = arith.constant 0 : index
    %c0_29 = arith.constant 0 : index
    %43 = vector.load %arg11[%c0_28, %c0_29] : memref<128x896xf32, #tpu.memory_space<vmem>>, vector<128x896xf32>
    tpu.vector_store %arg11[%c0_28, %c0_29], %42 {strides = array<i32>} : memref<128x896xf32, #tpu.memory_space<vmem>>, vector<128x896xf32>,
    %c0_30 = arith.constant 0 : index
    %c0_31 = arith.constant 0 : index
    %44 = vector.load %arg12[%c0_30, %c0_31] : memref<128x128xf32, #tpu.memory_space<vmem>>, vector<128x128xf32>
    tpu.vector_store %arg12[%c0_30, %c0_31], %14 {strides = array<i32>} : memref<128x128xf32, #tpu.memory_space<vmem>>, vector<128x128xf32>,
    %c0_32 = arith.constant 0 : index
    %c0_33 = arith.constant 0 : index
    %45 = vector.load %arg13[%c0_32, %c0_33] : memref<128x128xf32, #tpu.memory_space<vmem>>, vector<128x128xf32>
    tpu.vector_store %arg13[%c0_32, %c0_33], %15 {strides = array<i32>} : memref<128x128xf32, #tpu.memory_space<vmem>>, vector<128x128xf32>,
    return
  }
  func.func @transform_0(%arg0: i32) -> (i32, i32) {
    %c0_i32 = arith.constant 0 : i32
    %c0_i32_0 = arith.constant 0 : i32
    return %arg0, %c0_i32 : i32, i32
  }
  func.func @transform_1(%arg0: i32) -> (i32, i32) {
    %c0_i32 = arith.constant 0 : i32
    %c0_i32_0 = arith.constant 0 : i32
    return %arg0, %c0_i32 : i32, i32
  }
  func.func @transform_2(%arg0: i32) -> (i32, i32) {
    %c0_i32 = arith.constant 0 : i32
    %c0_i32_0 = arith.constant 0 : i32
    %c0_i32_1 = arith.constant 0 : i32
    return %c0_i32, %c0_i32_0 : i32, i32
  }
  func.func @transform_3(%arg0: i32) -> (i32, i32) {
    %c0_i32 = arith.constant 0 : i32
    %c0_i32_0 = arith.constant 0 : i32
    %c0_i32_1 = arith.constant 0 : i32
    return %c0_i32, %c0_i32_0 : i32, i32
  }
  func.func @transform_4(%arg0: i32) -> (i32, i32) {
    %c0_i32 = arith.constant 0 : i32
    %c0_i32_0 = arith.constant 0 : i32
    %c0_i32_1 = arith.constant 0 : i32
    return %c0_i32, %c0_i32_0 : i32, i32
  }
  func.func @transform_5(%arg0: i32) -> (i32, i32) {
    %c0_i32 = arith.constant 0 : i32
    %c0_i32_0 = arith.constant 0 : i32
    %c0_i32_1 = arith.constant 0 : i32
    return %c0_i32, %c0_i32_0 : i32, i32
  }
  func.func @transform_6(%arg0: i32) -> (i32, i32) {
    %c0_i32 = arith.constant 0 : i32
    %c0_i32_0 = arith.constant 0 : i32
    %c0_i32_1 = arith.constant 0 : i32
    return %c0_i32, %c0_i32_0 : i32, i32
  }
  func.func @transform_7(%arg0: i32) -> (i32, i32) {
    %c0_i32 = arith.constant 0 : i32
    %c0_i32_0 = arith.constant 0 : i32
    %c0_i32_1 = arith.constant 0 : i32
    return %c0_i32, %c0_i32_0 : i32, i32
  }
  func.func @transform_8(%arg0: i32) -> (i32, i32) {
    %c0_i32 = arith.constant 0 : i32
    %c0_i32_0 = arith.constant 0 : i32
    %c0_i32_1 = arith.constant 0 : i32
    return %c0_i32, %c0_i32_0 : i32, i32
  }
  func.func @transform_9(%arg0: i32) -> (i32, i32) {
    %c0_i32 = arith.constant 0 : i32
    %c0_i32_0 = arith.constant 0 : i32
    %c0_i32_1 = arith.constant 0 : i32
    return %c0_i32, %c0_i32_0 : i32, i32
  }
  func.func @transform_10(%arg0: i32) -> (i32, i32) {
    %c0_i32 = arith.constant 0 : i32
    %c0_i32_0 = arith.constant 0 : i32
    return %arg0, %c0_i32 : i32, i32
  }
  func.func @transform_11(%arg0: i32) -> (i32, i32) {
    %c0_i32 = arith.constant 0 : i32
    %c0_i32_0 = arith.constant 0 : i32
    return %arg0, %c0_i32 : i32, i32
  }
  func.func @transform_12(%arg0: i32) -> (i32, i32) {
    %c0_i32 = arith.constant 0 : i32
    %c0_i32_0 = arith.constant 0 : i32
    return %arg0, %c0_i32 : i32, i32
  }
}

</mosaic_0001>

<bundles_post_ra>
// kernel: vae_forward.1
= control target key start
LH: loop header
LB: loop body
LE: loop exit
PB: predicated region body
PF: predicated region fallthrough
CT: control target
= control target key end

     0   :  { %s9978_s21 = smov 0   ;;  %s12738_s0 = inlined_call_operand.vmem [shape: bf16[256,896], index: 0, kind: input, shape index: {}]   ;;  %s12739_s1 = inlined_call_operand.vmem [shape: f32[256,128], index: 1, kind: input, shape index: {}]   ;;  %s12740_s2 = inlined_call_operand.vmem [shape: bf16[896,512], index: 2, kind: input, shape index: {}]   ;;  %s12741_s3 = inlined_call_operand.vmem [shape: f32[1,512], index: 3, kind: input, shape index: {}]   ;;  %s12742_s4 = inlined_call_operand.vmem [shape: bf16[512,256], index: 4, kind: input, shape index: {}]   ;;  %s12743_s5 = inlined_call_operand.vmem [shape: f32[1,256], index: 5, kind: input, shape index: {}]   ;;  %s12744_s6 = inlined_call_operand.vmem [shape: bf16[128,512], index: 6, kind: input, shape index: {}]   ;;  %s12745_s7 = inlined_call_operand.vmem [shape: f32[1,512], index: 7, kind: input, shape index: {}]   ;;  %s12746_s8 = inlined_call_operand.vmem [shape: bf16[512,896], index: 8, kind: input, shape index: {}]   ;;  %s12747_s9 = inlined_call_operand.vmem [shape: f32[1,896], index: 9, kind: input, shape index: {}]   ;;  %s12748_s10 = inlined_call_operand.vmem [shape: f32[256,896], index: 10, kind: output, shape index: {0}]   ;;  %s12749_s11 = inlined_call_operand.vmem [shape: f32[256,128], index: 11, kind: output, shape index: {1}]   ;;  %s12750_s12 = inlined_call_operand.vmem [shape: f32[256,128], index: 12, kind: output, shape index: {2}]  }
   0x1 LB: > { %s7499_s22 = sadd.s32 4294967295, %s9910_s21   ;;  %p7503_p0 = scmp.ge.s32.totalorder %s9910_s21, 1  ;;  %s9910_s21 = sphi %s9978_s21, %s23_s21  }
   0x2   : > { %p380_p1 = scmp.lt.s32.totalorder %s9910_s21, 3 }
   0x4   : > { %p381_p2 = pnand %p7503_p0, %p380_p1 }
   0x5   : > { %v8767_v0 = vld [vmem:[%s12740_s2 + $0x4] ss:$16 sps:$4 sm:$0xff] (!%p381_p2)   ;;  %v8769_v1 = vld [vmem:[%s12740_s2 + $0xc] ss:$16 sps:$4 sm:$0xff] (!%p381_p2)   ;;  %v8771_v2 = vld [vmem:[%s12740_s2] ss:$16 sps:$4 sm:$0xff] (!%p381_p2)  }
   0x6   : > { %384 = sbr.rel (%p381_p2) target bundleno = 1496 (0x5d8), region = 60  ;;  %2190 = vmatprep.subr.bf16.mxu0 (!%p381_p2), %v8767_v0  ;;  %v8772_v3 = vld [vmem:[%s12740_s2 + $0x8] ss:$16 sps:$4 sm:$0xff] (!%p381_p2)   ;;  %2642 = vmatprep.subr.bf16.mxu1 (!%p381_p2), %v8769_v1  ;;  %v8773_v4 = vld [vmem:[%s12740_s2 + $0x24] ss:$16 sps:$4 sm:$0xff] (!%p381_p2)   ;;  %s7504_s17 = sshll.u32 (!%p381_p2), %s7499_s22, 4 }
   0x7   : > { %2191 = vmatpush1.bf16.msra.mxu0 (!%p381_p2), %v8771_v2  ;;  %2643 = vmatpush1.bf16.msra.mxu1 (!%p381_p2), %v8772_v3  ;;  %v8775_v5 = vld [vmem:[%s12740_s2 + $0x2c] ss:$16 sps:$4 sm:$0xff] (!%p381_p2)   ;;  %v8777_v6 = vld [vmem:[%s12740_s2 + $0x20] ss:$16 sps:$4 sm:$0xff] (!%p381_p2)   ;;  %v8778_v7 = vld [vmem:[%s12740_s2 + $0x28] ss:$16 sps:$4 sm:$0xff] (!%p381_p2)  }
   0x8   : > { %2192 = vmatprep.subr.bf16.mxu0 (!%p381_p2), %v8773_v4  ;;  %2644 = vmatprep.subr.bf16.mxu1 (!%p381_p2), %v8775_v5  ;;  %v8779_v8 = vld [vmem:[%s12740_s2 + $0x44] ss:$16 sps:$4 sm:$0xff] (!%p381_p2)   ;;  %v8781_v9 = vld [vmem:[%s12740_s2 + $0x4c] ss:$16 sps:$4 sm:$0xff] (!%p381_p2)   ;;  %v8783_v10 = vld [vmem:[%s12740_s2 + $0x40] ss:$16 sps:$4 sm:$0xff] (!%p381_p2)  }
   0x9   : > { %v8784_v11 = vld [vmem:[%s12740_s2 + $0x48] ss:$16 sps:$4 sm:$0xff] (!%p381_p2)   ;;  %v8785_v12 = vld [vmem:[%s12740_s2 + $0x64] ss:$16 sps:$4 sm:$0xff] (!%p381_p2)   ;;  %v8787_v13 = vld [vmem:[%s12740_s2 + $0x6c] ss:$16 sps:$4 sm:$0xff] (!%p381_p2)  }
   0xa   : > { %v8789_v14 = vld [vmem:[%s12740_s2 + $0x60] ss:$16 sps:$4 sm:$0xff] (!%p381_p2)   ;;  %v8790_v15 = vld [vmem:[%s12740_s2 + $0x68] ss:$16 sps:$4 sm:$0xff] (!%p381_p2)   ;;  %v8791_v16 = vld [vmem:[%s12740_s2 + $0x84] ss:$16 sps:$4 sm:$0xff] (!%p381_p2)  }
   0xb   : > { %2193 = vmatpush1.bf16.msra.mxu0 (!%p381_p2), %v8777_v6  ;;  %2645 = vmatpush1.bf16.msra.mxu1 (!%p381_p2), %v8778_v7  ;;  %v8793_v17 = vld [vmem:[%s12740_s2 + $0x8c] ss:$16 sps:$4 sm:$0xff] (!%p381_p2)   ;;  %v8795_v18 = vld [vmem:[%s12740_s2 + $0x80] ss:$16 sps:$4 sm:$0xff] (!%p381_p2)   ;;  %v8796_v19 = vld [vmem:[%s12740_s2 + $0x88] ss:$16 sps:$4 sm:$0xff] (!%p381_p2)  }
   0xc   : > { %2194 = vmatprep.subr.bf16.mxu0 (!%p381_p2), %v8779_v8  ;;  %2646 = vmatprep.subr.bf16.mxu1 (!%p381_p2), %v8781_v9  ;;  %v8797_v20 = vld [vmem:[%s12740_s2 + $0xa4] ss:$16 sps:$4 sm:$0xff] (!%p381_p2)   ;;  %v8799_v21 = vld [vmem:[%s12740_s2 + $0xac] ss:$16 sps:$4 sm:$0xff] (!%p381_p2)   ;;  %v8801_v22 = vld [vmem:[%s12740_s2 + $0xa0] ss:$16 sps:$4 sm:$0xff] (!%p381_p2)  }
   0xd   : > { %v8802_v23 = vld [vmem:[%s12740_s2 + $0xa8] ss:$16 sps:$4 sm:$0xff]   ;;  %v8803_v24 = vld [vmem:[%s12740_s2 + $0xc4] ss:$16 sps:$4 sm:$0xff]   ;;  %v8805_v25 = vld [vmem:[%s12740_s2 + $0xcc] ss:$16 sps:$4 sm:$0xff]  }
   0xe   : > { %v8807_v26 = vld [vmem:[%s12740_s2 + $0xc0] ss:$16 sps:$4 sm:$0xff]   ;;  %v8808_v27 = vld [vmem:[%s12740_s2 + $0xc8] ss:$16 sps:$4 sm:$0xff]   ;;  %v8809_v28 = vld [vmem:[%s12740_s2 + $0xe4] ss:$16 sps:$4 sm:$0xff]  }
   0xf   : > { %2195 = vmatpush1.bf16.msra.mxu0 %v8783_v10  ;;  %2647 = vmatpush1.bf16.msra.mxu1 %v8784_v11  ;;  %v8811_v29 = vld [vmem:[%s12740_s2 + $0xec] ss:$16 sps:$4 sm:$0xff]   ;;  %v8813_v30 = vld [vmem:[%s12740_s2 + $0xe0] ss:$16 sps:$4 sm:$0xff]   ;;  %v8814_v31 = vld [vmem:[%s12740_s2 + $0xe8] ss:$16 sps:$4 sm:$0xff]  }
  0x10   : > { %2196 = vmatprep.subr.bf16.mxu0 %v8785_v12  ;;  %2648 = vmatprep.subr.bf16.mxu1 %v8787_v13  ;;  %v8815_v32 = vld [vmem:[%s12740_s2 + $0x104] ss:$16 sps:$4 sm:$0xff]   ;;  %p440_p3 = scmp.lt.s32.totalorder %s7504_s17, 31  ;;  %v8817_v33 = vld [vmem:[%s12740_s2 + $0x10c] ss:$16 sps:$4 sm:$0xff]  }
  0x11   : > { %v8819_v34 = vld [vmem:[%s12740_s2 + $0x100] ss:$16 sps:$4 sm:$0xff]   ;;  %v8820_v35 = vld [vmem:[%s12740_s2 + $0x108] ss:$16 sps:$4 sm:$0xff]   ;;  %v8821_v36 = vld [vmem:[%s12740_s2 + $0x124] ss:$16 sps:$4 sm:$0xff]  }
  0x12   : > { %s12752_s17 = smov (!%p440_p3, %s7504_s17), 31  ;;  %v8823_v37 = vld [vmem:[%s12740_s2 + $0x12c] ss:$16 sps:$4 sm:$0xff]   ;;  %v8825_v38 = vld [vmem:[%s12740_s2 + $0x120] ss:$16 sps:$4 sm:$0xff]  }
  0x13   : > { %2197 = vmatpush1.bf16.msra.mxu0 %v8789_v14  ;;  %2649 = vmatpush1.bf16.msra.mxu1 %v8790_v15  ;;  %v8826_v39 = vld [vmem:[%s12740_s2 + $0x128] ss:$16 sps:$4 sm:$0xff]   ;;  %v8827_v40 = vld [vmem:[%s12740_s2 + $0x144] ss:$16 sps:$4 sm:$0xff]   ;;  %s8756_s26 = smul.u32 28, %s12752_s17  ;;  %s11120_s28 = sshll.u32 %s12752_s17, 3 }
  0x14   : > { %2198 = vmatprep.subr.bf16.mxu0 %v8791_v16  ;;  %2650 = vmatprep.subr.bf16.mxu1 %v8793_v17  ;;  %v8829_v41 = vld [vmem:[%s12740_s2 + $0x14c] ss:$16 sps:$4 sm:$0xff]   ;;  %v8831_v42 = vld [vmem:[%s12740_s2 + $0x140] ss:$16 sps:$4 sm:$0xff]   ;;  %v8832_v43 = vld [vmem:[%s12740_s2 + $0x148] ss:$16 sps:$4 sm:$0xff]   ;;  %s11132_s13 = scalar_lea.vmem %s12749_s11, %s11120_s28  ;;  %s11139_s16 = scalar_lea.vmem %s12750_s12, %s11120_s28 }
  0x15   : > { %v8833_v44 = vld [vmem:[%s12740_s2 + $0x164] ss:$16 sps:$4 sm:$0xff]   ;;  %s10129_s19 = scalar_lea.vmem %s12738_s0, %s8756_s26  ;;  %v8835_v45 = vld [vmem:[%s12740_s2 + $0x16c] ss:$16 sps:$4 sm:$0xff]   ;;  %v8837_v46 = vld [vmem:[%s12740_s2 + $0x160] ss:$16 sps:$4 sm:$0xff]   ;;  %s11163_s20 = scalar_lea.vmem %s12739_s1, %s11120_s28 }
  0x16   : > { %v8838_v47 = vld [vmem:[%s12740_s2 + $0x168] ss:$16 sps:$4 sm:$0xff]   ;;  %v8865_v48 = vld [vmem:[%s10129_s19 + $0x4] ss:$28 sps:$4 sm:$0xff]   ;;  %v8841_v50 = vld [vmem:[%s12740_s2 + $0x18c] ss:$16 sps:$4 sm:$0xff]  }
  0x17   : > { %2199 = vmatpush1.bf16.msra.mxu0 %v8795_v18  ;;  %2651 = vmatpush1.bf16.msra.mxu1 %v8796_v19  ;;  %v8839_v49 = vld [vmem:[%s12740_s2 + $0x184] ss:$16 sps:$4 sm:$0xff]   ;;  %v8843_v51 = vld [vmem:[%s12740_s2 + $0x180] ss:$16 sps:$4 sm:$0xff]   ;;  %v8844_v52 = vld [vmem:[%s12740_s2 + $0x188] ss:$16 sps:$4 sm:$0xff]  }
  0x18   : > { %2200 = vmatprep.subr.bf16.mxu0 %v8797_v20  ;;  %2652 = vmatprep.subr.bf16.mxu1 %v8799_v21  ;;  %v8845_v53 = vld [vmem:[%s12740_s2 + $0x1a4] ss:$16 sps:$4 sm:$0xff]   ;;  %v8847_v54 = vld [vmem:[%s12740_s2 + $0x1ac] ss:$16 sps:$4 sm:$0xff]   ;;  %v8849_v55 = vld [vmem:[%s12740_s2 + $0x1a0] ss:$16 sps:$4 sm:$0xff]  }
  0x19   : > { %2222 = vmatprep.mubr.bf16.mxu0 %v8865_v48  ;;  %2674 = vmatprep.mubr.bf16.mxu1 %v8865_v48  ;;  %v8850_v56 = vld [vmem:[%s12740_s2 + $0x1a8] ss:$16 sps:$4 sm:$0xff]   ;;  %v8851_v57 = vld [vmem:[%s12740_s2 + $0x1c4] ss:$16 sps:$4 sm:$0xff]   ;;  %v8853_v58 = vld [vmem:[%s12740_s2 + $0x1cc] ss:$16 sps:$4 sm:$0xff]  }
  0x1a   : > { %v8855_v59 = vld [vmem:[%s12740_s2 + $0x1c0] ss:$16 sps:$4 sm:$0xff]   ;;  %v8856_v60 = vld [vmem:[%s12740_s2 + $0x1c8] ss:$16 sps:$4 sm:$0xff]   ;;  %v8857_v61 = vld [vmem:[%s12740_s2 + $0x1e4] ss:$16 sps:$4 sm:$0xff]  }
  0x1b   : > { %2201 = vmatpush1.bf16.msra.mxu0 %v8801_v22  ;;  %2653 = vmatpush1.bf16.msra.mxu1 %v8802_v23  ;;  %v8859_v62 = vld [vmem:[%s12740_s2 + $0x1ec] ss:$16 sps:$4 sm:$0xff]   ;;  %v8861_v63 = vld [vmem:[%s12740_s2 + $0x1e0] ss:$16 sps:$4 sm:$0xff]   ;;  %v8862_v0 = vld [vmem:[%s12740_s2 + $0x1e8] ss:$16 sps:$4 sm:$0xff]  }
  0x1c   : > { %2202 = vmatprep.subr.bf16.mxu0 %v8803_v24  ;;  %2654 = vmatprep.subr.bf16.mxu1 %v8805_v25  ;;  %v8868_v1 = vld [vmem:[%s12740_s2 + $0x204] ss:$16 sps:$4 sm:$0xff]   ;;  %v8871_v2 = vld [vmem:[%s12740_s2 + $0x20c] ss:$16 sps:$4 sm:$0xff]   ;;  %v8866_v4 = vld [vmem:[%s12740_s2 + $0x200] ss:$16 sps:$4 sm:$0xff]  }
  0x1d   : > { %v8863_v3 = vld [vmem:[%s10129_s19] ss:$28 sps:$4 sm:$0xff]   ;;  %v8869_v5 = vld [vmem:[%s12740_s2 + $0x208] ss:$16 sps:$4 sm:$0xff]   ;;  %v8874_v6 = vld [vmem:[%s12740_s2 + $0x224] ss:$16 sps:$4 sm:$0xff]  }
  0x1e   : > { %v8877_v7 = vld [vmem:[%s12740_s2 + $0x22c] ss:$16 sps:$4 sm:$0xff]   ;;  %v8872_v9 = vld [vmem:[%s12740_s2 + $0x220] ss:$16 sps:$4 sm:$0xff]   ;;  %v8875_v10 = vld [vmem:[%s12740_s2 + $0x228] ss:$16 sps:$4 sm:$0xff]  }
  0x1f   : > { %2203 = vmatpush1.bf16.msra.mxu0 %v8807_v26  ;;  %2655 = vmatpush1.bf16.msra.mxu1 %v8808_v27  ;;  %v8878_v8 = vld [vmem:[%s10129_s19 + $0x3c] ss:$28 sps:$4 sm:$0xff]   ;;  %v8883_v11 = vld [vmem:[%s12740_s2 + $0x244] ss:$16 sps:$4 sm:$0xff]   ;;  %v8881_v14 = vld [vmem:[%s12740_s2 + $0x240] ss:$16 sps:$4 sm:$0xff]  }
  0x20   : > { %2204 = vmatprep.subr.bf16.mxu0 %v8809_v28  ;;  %2656 = vmatprep.subr.bf16.mxu1 %v8811_v29  ;;  %v8886_v12 = vld [vmem:[%s12740_s2 + $0x24c] ss:$16 sps:$4 sm:$0xff]   ;;  %v8880_v13 = vld [vmem:[%s10129_s19 + $0x38] ss:$28 sps:$4 sm:$0xff]   ;;  %v8887_v19 = vld [vmem:[%s12740_s2 + $0x260] ss:$16 sps:$4 sm:$0xff]  }
  0x21   : > { %v8884_v15 = vld [vmem:[%s12740_s2 + $0x248] ss:$16 sps:$4 sm:$0xff]   ;;  %v8889_v16 = vld [vmem:[%s12740_s2 + $0x264] ss:$16 sps:$4 sm:$0xff]   ;;  %v8892_v17 = vld [vmem:[%s12740_s2 + $0x26c] ss:$16 sps:$4 sm:$0xff]  }
  0x22   : > { %v8893_v18 = vld [vmem:[%s10129_s19 + $0x74] ss:$28 sps:$4 sm:$0xff]   ;;  %v8890_v20 = vld [vmem:[%s12740_s2 + $0x268] ss:$16 sps:$4 sm:$0xff]   ;;  %v8901_v22 = vld [vmem:[%s12740_s2 + $0x28c] ss:$16 sps:$4 sm:$0xff]  }
  0x23   : > { %2205 = vmatpush1.bf16.msra.mxu0 %v8813_v30  ;;  %2657 = vmatpush1.bf16.msra.mxu1 %v8814_v31  ;;  %v8898_v21 = vld [vmem:[%s12740_s2 + $0x284] ss:$16 sps:$4 sm:$0xff]   ;;  %v8895_v23 = vld [vmem:[%s10129_s19 + $0x70] ss:$28 sps:$4 sm:$0xff]   ;;  %v8899_v25 = vld [vmem:[%s12740_s2 + $0x288] ss:$16 sps:$4 sm:$0xff]  }
  0x24   : > { %2206 = vmatprep.subr.bf16.mxu0 %v8815_v32  ;;  %2658 = vmatprep.subr.bf16.mxu1 %v8817_v33  ;;  %v8896_v24 = vld [vmem:[%s12740_s2 + $0x280] ss:$16 sps:$4 sm:$0xff]   ;;  %v8904_v26 = vld [vmem:[%s12740_s2 + $0x2a4] ss:$16 sps:$4 sm:$0xff]   ;;  %v8907_v27 = vld [vmem:[%s12740_s2 + $0x2ac] ss:$16 sps:$4 sm:$0xff]  }
  0x25   : > { %v8908_v28 = vld [vmem:[%s10129_s19 + $0xac] ss:$28 sps:$4 sm:$0xff]   ;;  %v8902_v29 = vld [vmem:[%s12740_s2 + $0x2a0] ss:$16 sps:$4 sm:$0xff]   ;;  %v8913_v31 = vld [vmem:[%s12740_s2 + $0x2c4] ss:$16 sps:$4 sm:$0xff]  }
  0x26   : > { %v8905_v30 = vld [vmem:[%s12740_s2 + $0x2a8] ss:$16 sps:$4 sm:$0xff]   ;;  %v8916_v32 = vld [vmem:[%s12740_s2 + $0x2cc] ss:$16 sps:$4 sm:$0xff]  }
  0x27   : > { %2207 = vmatpush1.bf16.msra.mxu0 %v8819_v34  ;;  %2659 = vmatpush1.bf16.msra.mxu1 %v8820_v35  ;;  %v8910_v33 = vld [vmem:[%s10129_s19 + $0xa8] ss:$28 sps:$4 sm:$0xff]   ;;  %v8911_v34 = vld [vmem:[%s12740_s2 + $0x2c0] ss:$16 sps:$4 sm:$0xff]   ;;  %v8938_v48 = vld [vmem:[%s10129_s19 + $0x11c] ss:$28 sps:$4 sm:$0xff]  }
  0x28   : > { %2208 = vmatprep.subr.bf16.mxu0 %v8821_v36  ;;  %2660 = vmatprep.subr.bf16.mxu1 %v8823_v37  ;;  %v8914_v35 = vld [vmem:[%s12740_s2 + $0x2c8] ss:$16 sps:$4 sm:$0xff]   ;;  %v8919_v36 = vld [vmem:[%s12740_s2 + $0x2e4] ss:$16 sps:$4 sm:$0xff]   ;;  %v8922_v37 = vld [vmem:[%s12740_s2 + $0x2ec] ss:$16 sps:$4 sm:$0xff]  }
  0x2b   : > { %2209 = vmatpush1.bf16.msra.mxu0 %v8825_v38  ;;  %2661 = vmatpush1.bf16.msra.mxu1 %v8826_v39  ;;  %v8923_v38 = vld [vmem:[%s10129_s19 + $0xe4] ss:$28 sps:$4 sm:$0xff]  }
  0x2c   : > { %2210 = vmatprep.subr.bf16.mxu0 %v8827_v40  ;;  %2662 = vmatprep.subr.bf16.mxu1 %v8829_v41  ;;  %v8917_v39 = vld [vmem:[%s12740_s2 + $0x2e0] ss:$16 sps:$4 sm:$0xff]   ;;  %v8920_v40 = vld [vmem:[%s12740_s2 + $0x2e8] ss:$16 sps:$4 sm:$0xff]   ;;  %v8928_v41 = vld [vmem:[%s12740_s2 + $0x304] ss:$16 sps:$4 sm:$0xff]  }
  0x2f   : > { %2211 = vmatpush1.bf16.msra.mxu0 %v8831_v42  ;;  %2663 = vmatpush1.bf16.msra.mxu1 %v8832_v43  ;;  %v8931_v42 = vld [vmem:[%s12740_s2 + $0x30c] ss:$16 sps:$4 sm:$0xff]  }
  0x30   : > { %2212 = vmatprep.subr.bf16.mxu0 %v8833_v44  ;;  %2664 = vmatprep.subr.bf16.mxu1 %v8835_v45  ;;  %v8925_v43 = vld [vmem:[%s10129_s19 + $0xe0] ss:$28 sps:$4 sm:$0xff]   ;;  %v8929_v45 = vld [vmem:[%s12740_s2 + $0x308] ss:$16 sps:$4 sm:$0xff]  }
  0x31   : > { %v8926_v44 = vld [vmem:[%s12740_s2 + $0x300] ss:$16 sps:$4 sm:$0xff]  }
  0x33   : > { %2213 = vmatpush1.bf16.msra.mxu0 %v8837_v46  ;;  %2665 = vmatpush1.bf16.msra.mxu1 %v8838_v47  ;;  %v8934_v46 = vld [vmem:[%s12740_s2 + $0x324] ss:$16 sps:$4 sm:$0xff]   ;;  %v8937_v47 = vld [vmem:[%s12740_s2 + $0x32c] ss:$16 sps:$4 sm:$0xff]  }
  0x34   : > { %2214 = vmatprep.subr.bf16.mxu0 %v8839_v49  ;;  %2666 = vmatprep.subr.bf16.mxu1 %v8841_v50  ;;  %v8932_v49 = vld [vmem:[%s12740_s2 + $0x320] ss:$16 sps:$4 sm:$0xff]   ;;  %v8935_v50 = vld [vmem:[%s12740_s2 + $0x328] ss:$16 sps:$4 sm:$0xff]  }
  0x37   : > { %2215 = vmatpush1.bf16.msra.mxu0 %v8843_v51  ;;  %2667 = vmatpush1.bf16.msra.mxu1 %v8844_v52  ;;  %v8943_v51 = vld [vmem:[%s12740_s2 + $0x344] ss:$16 sps:$4 sm:$0xff]   ;;  %v8946_v52 = vld [vmem:[%s12740_s2 + $0x34c] ss:$16 sps:$4 sm:$0xff]  }
  0x38   : > { %2216 = vmatprep.subr.bf16.mxu0 %v8845_v53  ;;  %2668 = vmatprep.subr.bf16.mxu1 %v8847_v54  ;;  %v8940_v53 = vld [vmem:[%s10129_s19 + $0x118] ss:$28 sps:$4 sm:$0xff]   ;;  %v8941_v54 = vld [vmem:[%s12740_s2 + $0x340] ss:$16 sps:$4 sm:$0xff]  }
  0x3b   : > { %2217 = vmatpush1.bf16.msra.mxu0 %v8849_v55  ;;  %2669 = vmatpush1.bf16.msra.mxu1 %v8850_v56  ;;  %v8944_v55 = vld [vmem:[%s12740_s2 + $0x348] ss:$16 sps:$4 sm:$0xff]   ;;  %v8949_v56 = vld [vmem:[%s12740_s2 + $0x364] ss:$16 sps:$4 sm:$0xff]  }
  0x3c   : > { %2218 = vmatprep.subr.bf16.mxu0 %v8851_v57  ;;  %2670 = vmatprep.subr.bf16.mxu1 %v8853_v58  ;;  %v8952_v57 = vld [vmem:[%s12740_s2 + $0x36c] ss:$16 sps:$4 sm:$0xff]   ;;  %v8953_v58 = vld [vmem:[%s10129_s19 + $0x154] ss:$28 sps:$4 sm:$0xff]  }
  0x3f   : > { %2219 = vmatpush1.bf16.msra.mxu0 %v8855_v59  ;;  %2671 = vmatpush1.bf16.msra.mxu1 %v8856_v60  ;;  %v8947_v59 = vld [vmem:[%s12740_s2 + $0x360] ss:$16 sps:$4 sm:$0xff]   ;;  %v8950_v60 = vld [vmem:[%s12740_s2 + $0x368] ss:$16 sps:$4 sm:$0xff]  }
  0x40   : > { %2220 = vmatprep.subr.bf16.mxu0 %v8857_v61  ;;  %2672 = vmatprep.subr.bf16.mxu1 %v8859_v62  ;;  %v8958_v61 = vld [vmem:[%s12740_s2 + $0x384] ss:$16 sps:$4 sm:$0xff]   ;;  %v8961_v62 = vld [vmem:[%s12740_s2 + $0x38c] ss:$16 sps:$4 sm:$0xff]  }
  0x43   : > { %2221 = vmatpush1.bf16.msra.mxu0 %v8861_v63  ;;  %2673 = vmatpush1.bf16.msra.mxu1 %v8862_v0  ;;  %v8955_v63 = vld [vmem:[%s10129_s19 + $0x150] ss:$28 sps:$4 sm:$0xff]  }
  0x44   : > { %2303 = vmatprep.subr.bf16.mxu0 %v8868_v1  ;;  %2755 = vmatprep.subr.bf16.mxu1 %v8871_v2  ;;  %v8956_v0 = vld [vmem:[%s12740_s2 + $0x380] ss:$16 sps:$4 sm:$0xff]   ;;  %v8959_v1 = vld [vmem:[%s12740_s2 + $0x388] ss:$16 sps:$4 sm:$0xff]   ;;  %v8964_v2 = vld [vmem:[%s12740_s2 + $0x3a4] ss:$16 sps:$4 sm:$0xff]  }
  0x46   : > { %2223 = vmatmul.mubr.bf16.vlgmr.msra.gmra.mrb[0].mxu0 %v8863_v3  ;;  %2675 = vmatmul.mubr.bf16.vlgmr.msra.gmra.mrb[0].mxu1 %v8863_v3  ;;  %v8967_v3 = vld [vmem:[%s12740_s2 + $0x3ac] ss:$16 sps:$4 sm:$0xff]  }
  0x47   : > { %2304 = vmatpush1.bf16.msra.mxu0 %v8866_v4  ;;  %2756 = vmatpush1.bf16.msra.mxu1 %v8869_v5  ;;  %v8968_v4 = vld [vmem:[%s10129_s19 + $0x18c] ss:$28 sps:$4 sm:$0xff]   ;;  %v8962_v5 = vld [vmem:[%s12740_s2 + $0x3a0] ss:$16 sps:$4 sm:$0xff]  }
  0x48   : > { %2305 = vmatprep.subr.bf16.mxu0 %v8874_v6  ;;  %2757 = vmatprep.subr.bf16.mxu1 %v8877_v7  ;;  %v8965_v6 = vld [vmem:[%s12740_s2 + $0x3a8] ss:$16 sps:$4 sm:$0xff]   ;;  %v8973_v7 = vld [vmem:[%s12740_s2 + $0x3c4] ss:$16 sps:$4 sm:$0xff]  }
  0x49   : > { %2232 = vmatprep.mubr.bf16.mxu0 %v8878_v8  ;;  %2684 = vmatprep.mubr.bf16.mxu1 %v8878_v8  ;;  %v8976_v8 = vld [vmem:[%s12740_s2 + $0x3cc] ss:$16 sps:$4 sm:$0xff]  }
  0x4b   : > { %2306 = vmatpush1.bf16.msra.mxu0 %v8872_v9  ;;  %2758 = vmatpush1.bf16.msra.mxu1 %v8875_v10  ;;  %v8970_v9 = vld [vmem:[%s10129_s19 + $0x188] ss:$28 sps:$4 sm:$0xff]   ;;  %v8971_v10 = vld [vmem:[%s12740_s2 + $0x3c0] ss:$16 sps:$4 sm:$0xff]  }
  0x4c   : > { %2307 = vmatprep.subr.bf16.mxu0 %v8883_v11  ;;  %2759 = vmatprep.subr.bf16.mxu1 %v8886_v12  ;;  %v8974_v11 = vld [vmem:[%s12740_s2 + $0x3c8] ss:$16 sps:$4 sm:$0xff]   ;;  %v8979_v12 = vld [vmem:[%s12740_s2 + $0x3e4] ss:$16 sps:$4 sm:$0xff]  }
  0x4e   : > { %2233 = vmatmul.mubr.bf16.gmra.mrb[4].mxu0 %v8880_v13  ;;  %2685 = vmatmul.mubr.bf16.gmra.mrb[4].mxu1 %v8880_v13  ;;  %v8982_v13 = vld [vmem:[%s12740_s2 + $0x3ec] ss:$16 sps:$4 sm:$0xff]  }
  0x4f   : > { %2308 = vmatpush1.bf16.msra.mxu0 %v8881_v14  ;;  %2760 = vmatpush1.bf16.msra.mxu1 %v8884_v15  ;;  %v8985_v14 = vld [vmem:[%s10129_s19 + $0xc] ss:$28 sps:$4 sm:$0xff]   ;;  %v8977_v15 = vld [vmem:[%s12740_s2 + $0x3e0] ss:$16 sps:$4 sm:$0xff]  }
  0x50   : > { %2309 = vmatprep.subr.bf16.mxu0 %v8889_v16  ;;  %2761 = vmatprep.subr.bf16.mxu1 %v8892_v17  ;;  %v8980_v16 = vld [vmem:[%s12740_s2 + $0x3e8] ss:$16 sps:$4 sm:$0xff]   ;;  %v8988_v17 = vld [vmem:[%s12740_s2 + $0x404] ss:$16 sps:$4 sm:$0xff]  }
  0x51   : > { %2242 = vmatprep.mubr.bf16.mxu0 %v8893_v18  ;;  %2694 = vmatprep.mubr.bf16.mxu1 %v8893_v18  ;;  %v8991_v18 = vld [vmem:[%s12740_s2 + $0x40c] ss:$16 sps:$4 sm:$0xff]  }
  0x53   : > { %2310 = vmatpush1.bf16.msra.mxu0 %v8887_v19  ;;  %2762 = vmatpush1.bf16.msra.mxu1 %v8890_v20  ;;  %v8983_v19 = vld [vmem:[%s10129_s19 + $0x8] ss:$28 sps:$4 sm:$0xff]   ;;  %v8986_v20 = vld [vmem:[%s12740_s2 + $0x400] ss:$16 sps:$4 sm:$0xff]  }
  0x54   : > { %2311 = vmatprep.subr.bf16.mxu0 %v8898_v21  ;;  %2763 = vmatprep.subr.bf16.mxu1 %v8901_v22  ;;  %v8989_v21 = vld [vmem:[%s12740_s2 + $0x408] ss:$16 sps:$4 sm:$0xff]   ;;  %v8994_v22 = vld [vmem:[%s12740_s2 + $0x424] ss:$16 sps:$4 sm:$0xff]  }
  0x56   : > { %2243 = vmatmul.mubr.bf16.gmra.mrb[8].mxu0 %v8895_v23  ;;  %2695 = vmatmul.mubr.bf16.gmra.mrb[8].mxu1 %v8895_v23  ;;  %v8997_v23 = vld [vmem:[%s12740_s2 + $0x42c] ss:$16 sps:$4 sm:$0xff]  }
  0x57   : > { %2312 = vmatpush1.bf16.msra.mxu0 %v8896_v24  ;;  %2764 = vmatpush1.bf16.msra.mxu1 %v8899_v25  ;;  %v8998_v24 = vld [vmem:[%s10129_s19 + $0x44] ss:$28 sps:$4 sm:$0xff]  }
  0x58   : > { %2313 = vmatprep.subr.bf16.mxu0 %v8904_v26  ;;  %2765 = vmatprep.subr.bf16.mxu1 %v8907_v27  ;;  %v8992_v25 = vld [vmem:[%s12740_s2 + $0x420] ss:$16 sps:$4 sm:$0xff]   ;;  %v8995_v26 = vld [vmem:[%s12740_s2 + $0x428] ss:$16 sps:$4 sm:$0xff]   ;;  %v9003_v27 = vld [vmem:[%s12740_s2 + $0x444] ss:$16 sps:$4 sm:$0xff]  }
  0x59   : > { %2252 = vmatprep.mubr.bf16.mxu0 %v8908_v28  ;;  %2704 = vmatprep.mubr.bf16.mxu1 %v8908_v28  ;;  %v9006_v28 = vld [vmem:[%s12740_s2 + $0x44c] ss:$16 sps:$4 sm:$0xff]  }
  0x5b   : > { %2314 = vmatpush1.bf16.msra.mxu0 %v8902_v29  ;;  %2766 = vmatpush1.bf16.msra.mxu1 %v8905_v30  ;;  %v9000_v29 = vld [vmem:[%s10129_s19 + $0x40] ss:$28 sps:$4 sm:$0xff]  }
  0x5c   : > { %2315 = vmatprep.subr.bf16.mxu0 %v8913_v31  ;;  %2767 = vmatprep.subr.bf16.mxu1 %v8916_v32  ;;  %v9001_v30 = vld [vmem:[%s12740_s2 + $0x440] ss:$16 sps:$4 sm:$0xff]   ;;  %v9004_v31 = vld [vmem:[%s12740_s2 + $0x448] ss:$16 sps:$4 sm:$0xff]   ;;  %v9009_v32 = vld [vmem:[%s12740_s2 + $0x464] ss:$16 sps:$4 sm:$0xff]  }
  0x5e   : > { %2253 = vmatmul.mubr.bf16.gmra.mrb[12].mxu0 %v8910_v33  ;;  %2705 = vmatmul.mubr.bf16.gmra.mrb[12].mxu1 %v8910_v33  ;;  %v9012_v33 = vld [vmem:[%s12740_s2 + $0x46c] ss:$16 sps:$4 sm:$0xff]  }
  0x5f   : > { %2316 = vmatpush1.bf16.msra.mxu0 %v8911_v34  ;;  %2768 = vmatpush1.bf16.msra.mxu1 %v8914_v35  ;;  %v9013_v34 = vld [vmem:[%s10129_s19 + $0x7c] ss:$28 sps:$4 sm:$0xff]   ;;  %v9007_v35 = vld [vmem:[%s12740_s2 + $0x460] ss:$16 sps:$4 sm:$0xff]  }
  0x60   : > { %2317 = vmatprep.subr.bf16.mxu0 %v8919_v36  ;;  %2769 = vmatprep.subr.bf16.mxu1 %v8922_v37  ;;  %v9010_v36 = vld [vmem:[%s12740_s2 + $0x468] ss:$16 sps:$4 sm:$0xff]   ;;  %v9018_v37 = vld [vmem:[%s12740_s2 + $0x484] ss:$16 sps:$4 sm:$0xff]  }
  0x61   : > { %2262 = vmatprep.mubr.bf16.mxu0 %v8923_v38  ;;  %2714 = vmatprep.mubr.bf16.mxu1 %v8923_v38  ;;  %v9021_v38 = vld [vmem:[%s12740_s2 + $0x48c] ss:$16 sps:$4 sm:$0xff]  }
  0x63   : > { %2318 = vmatpush1.bf16.msra.mxu0 %v8917_v39  ;;  %2770 = vmatpush1.bf16.msra.mxu1 %v8920_v40  ;;  %v9015_v39 = vld [vmem:[%s10129_s19 + $0x78] ss:$28 sps:$4 sm:$0xff]   ;;  %v9016_v40 = vld [vmem:[%s12740_s2 + $0x480] ss:$16 sps:$4 sm:$0xff]  }
  0x64   : > { %2319 = vmatprep.subr.bf16.mxu0 %v8928_v41  ;;  %2771 = vmatprep.subr.bf16.mxu1 %v8931_v42  ;;  %v9019_v41 = vld [vmem:[%s12740_s2 + $0x488] ss:$16 sps:$4 sm:$0xff]   ;;  %v9024_v42 = vld [vmem:[%s12740_s2 + $0x4a4] ss:$16 sps:$4 sm:$0xff]  }
  0x66   : > { %2263 = vmatmul.mubr.bf16.gmra.mrb[16].mxu0 %v8925_v43  ;;  %2715 = vmatmul.mubr.bf16.gmra.mrb[16].mxu1 %v8925_v43  ;;  %v9027_v43 = vld [vmem:[%s12740_s2 + $0x4ac] ss:$16 sps:$4 sm:$0xff]  }
  0x67   : > { %2320 = vmatpush1.bf16.msra.mxu0 %v8926_v44  ;;  %2772 = vmatpush1.bf16.msra.mxu1 %v8929_v45  ;;  %v9028_v44 = vld [vmem:[%s10129_s19 + $0xb4] ss:$28 sps:$4 sm:$0xff]  }
  0x68   : > { %2321 = vmatprep.subr.bf16.mxu0 %v8934_v46  ;;  %2773 = vmatprep.subr.bf16.mxu1 %v8937_v47  ;;  %v9022_v45 = vld [vmem:[%s12740_s2 + $0x4a0] ss:$16 sps:$4 sm:$0xff]   ;;  %v9025_v46 = vld [vmem:[%s12740_s2 + $0x4a8] ss:$16 sps:$4 sm:$0xff]   ;;  %v9033_v47 = vld [vmem:[%s12740_s2 + $0x4c4] ss:$16 sps:$4 sm:$0xff]  }
  0x69   : > { %2272 = vmatprep.mubr.bf16.mxu0 %v8938_v48  ;;  %2724 = vmatprep.mubr.bf16.mxu1 %v8938_v48  ;;  %v9036_v48 = vld [vmem:[%s12740_s2 + $0x4cc] ss:$16 sps:$4 sm:$0xff]  }
  0x6b   : > { %2322 = vmatpush1.bf16.msra.mxu0 %v8932_v49  ;;  %2774 = vmatpush1.bf16.msra.mxu1 %v8935_v50  ;;  %v9030_v49 = vld [vmem:[%s10129_s19 + $0xb0] ss:$28 sps:$4 sm:$0xff]  }
  0x6c   : > { %2323 = vmatprep.subr.bf16.mxu0 %v8943_v51  ;;  %2775 = vmatprep.subr.bf16.mxu1 %v8946_v52  ;;  %v9031_v50 = vld [vmem:[%s12740_s2 + $0x4c0] ss:$16 sps:$4 sm:$0xff]   ;;  %v9034_v51 = vld [vmem:[%s12740_s2 + $0x4c8] ss:$16 sps:$4 sm:$0xff]   ;;  %v9039_v52 = vld [vmem:[%s12740_s2 + $0x4e4] ss:$16 sps:$4 sm:$0xff]  }
  0x6e   : > { %2273 = vmatmul.mubr.bf16.gmra.mrb[20].mxu0 %v8940_v53  ;;  %2725 = vmatmul.mubr.bf16.gmra.mrb[20].mxu1 %v8940_v53  ;;  %v9042_v53 = vld [vmem:[%s12740_s2 + $0x4ec] ss:$16 sps:$4 sm:$0xff]  }
  0x6f   : > { %2324 = vmatpush1.bf16.msra.mxu0 %v8941_v54  ;;  %2776 = vmatpush1.bf16.msra.mxu1 %v8944_v55  ;;  %v9043_v54 = vld [vmem:[%s10129_s19 + $0xec] ss:$28 sps:$4 sm:$0xff]   ;;  %v9037_v55 = vld [vmem:[%s12740_s2 + $0x4e0] ss:$16 sps:$4 sm:$0xff]  }
  0x70   : > { %2325 = vmatprep.subr.bf16.mxu0 %v8949_v56  ;;  %2777 = vmatprep.subr.bf16.mxu1 %v8952_v57  ;;  %v9040_v56 = vld [vmem:[%s12740_s2 + $0x4e8] ss:$16 sps:$4 sm:$0xff]   ;;  %v9048_v57 = vld [vmem:[%s12740_s2 + $0x504] ss:$16 sps:$4 sm:$0xff]  }
  0x71   : > { %2282 = vmatprep.mubr.bf16.mxu0 %v8953_v58  ;;  %2734 = vmatprep.mubr.bf16.mxu1 %v8953_v58  ;;  %v9051_v58 = vld [vmem:[%s12740_s2 + $0x50c] ss:$16 sps:$4 sm:$0xff]  }
  0x73   : > { %2326 = vmatpush1.bf16.msra.mxu0 %v8947_v59  ;;  %2778 = vmatpush1.bf16.msra.mxu1 %v8950_v60  ;;  %v9045_v59 = vld [vmem:[%s10129_s19 + $0xe8] ss:$28 sps:$4 sm:$0xff]   ;;  %v9046_v60 = vld [vmem:[%s12740_s2 + $0x500] ss:$16 sps:$4 sm:$0xff]  }
  0x74   : > { %2327 = vmatprep.subr.bf16.mxu0 %v8958_v61  ;;  %2779 = vmatprep.subr.bf16.mxu1 %v8961_v62  ;;  %v9049_v61 = vld [vmem:[%s12740_s2 + $0x508] ss:$16 sps:$4 sm:$0xff]   ;;  %v9054_v62 = vld [vmem:[%s12740_s2 + $0x524] ss:$16 sps:$4 sm:$0xff]  }
  0x76   : > { %2283 = vmatmul.mubr.bf16.gmra.mrb[24].mxu0 %v8955_v63  ;;  %2735 = vmatmul.mubr.bf16.gmra.mrb[24].mxu1 %v8955_v63  ;;  %v9057_v63 = vld [vmem:[%s12740_s2 + $0x52c] ss:$16 sps:$4 sm:$0xff]  }
  0x77   : > { %2328 = vmatpush1.bf16.msra.mxu0 %v8956_v0  ;;  %2780 = vmatpush1.bf16.msra.mxu1 %v8959_v1  ;;  %v9058_v0 = vld [vmem:[%s10129_s19 + $0x124] ss:$28 sps:$4 sm:$0xff]  }
  0x78   : > { %2329 = vmatprep.subr.bf16.mxu0 %v8964_v2  ;;  %2781 = vmatprep.subr.bf16.mxu1 %v8967_v3  ;;  %v9052_v1 = vld [vmem:[%s12740_s2 + $0x520] ss:$16 sps:$4 sm:$0xff]   ;;  %v9055_v2 = vld [vmem:[%s12740_s2 + $0x528] ss:$16 sps:$4 sm:$0xff]   ;;  %v9063_v3 = vld [vmem:[%s12740_s2 + $0x544] ss:$16 sps:$4 sm:$0xff]  }
  0x79   : > { %2292 = vmatprep.mubr.bf16.mxu0 %v8968_v4  ;;  %2744 = vmatprep.mubr.bf16.mxu1 %v8968_v4  ;;  %v9066_v4 = vld [vmem:[%s12740_s2 + $0x54c] ss:$16 sps:$4 sm:$0xff]  }
  0x7b   : > { %2330 = vmatpush1.bf16.msra.mxu0 %v8962_v5  ;;  %2782 = vmatpush1.bf16.msra.mxu1 %v8965_v6  ;;  %v9060_v5 = vld [vmem:[%s10129_s19 + $0x120] ss:$28 sps:$4 sm:$0xff]  }
  0x7c   : > { %2331 = vmatprep.subr.bf16.mxu0 %v8973_v7  ;;  %2783 = vmatprep.subr.bf16.mxu1 %v8976_v8  ;;  %v9061_v6 = vld [vmem:[%s12740_s2 + $0x540] ss:$16 sps:$4 sm:$0xff]   ;;  %v9064_v7 = vld [vmem:[%s12740_s2 + $0x548] ss:$16 sps:$4 sm:$0xff]   ;;  %v9069_v8 = vld [vmem:[%s12740_s2 + $0x564] ss:$16 sps:$4 sm:$0xff]  }
  0x7e   : > { %2293 = vmatmul.mubr.bf16.gmra.mrb[28].mxu0 %v8970_v9  ;;  %2745 = vmatmul.mubr.bf16.gmra.mrb[28].mxu1 %v8970_v9  ;;  %v9072_v9 = vld [vmem:[%s12740_s2 + $0x56c] ss:$16 sps:$4 sm:$0xff]  }
  0x7f   : > { %2332 = vmatpush1.bf16.msra.mxu0 %v8971_v10  ;;  %2784 = vmatpush1.bf16.msra.mxu1 %v8974_v11  ;;  %v9073_v10 = vld [vmem:[%s10129_s19 + $0x15c] ss:$28 sps:$4 sm:$0xff]   ;;  %v9067_v11 = vld [vmem:[%s12740_s2 + $0x560] ss:$16 sps:$4 sm:$0xff]  }
  0x80   : > { %2333 = vmatprep.subr.bf16.mxu0 %v8979_v12  ;;  %2785 = vmatprep.subr.bf16.mxu1 %v8982_v13  ;;  %v9070_v12 = vld [vmem:[%s12740_s2 + $0x568] ss:$16 sps:$4 sm:$0xff]   ;;  %v9078_v13 = vld [vmem:[%s12740_s2 + $0x584] ss:$16 sps:$4 sm:$0xff]  }
  0x81   : > { %2335 = vmatprep.mubr.bf16.mxu0 %v8985_v14  ;;  %2787 = vmatprep.mubr.bf16.mxu1 %v8985_v14  ;;  %v9081_v14 = vld [vmem:[%s12740_s2 + $0x58c] ss:$16 sps:$4 sm:$0xff]  }
  0x83   : > { %2334 = vmatpush1.bf16.msra.mxu0 %v8977_v15  ;;  %2786 = vmatpush1.bf16.msra.mxu1 %v8980_v16  ;;  %v9075_v15 = vld [vmem:[%s10129_s19 + $0x158] ss:$28 sps:$4 sm:$0xff]   ;;  %v9076_v16 = vld [vmem:[%s12740_s2 + $0x580] ss:$16 sps:$4 sm:$0xff]  }
  0x84   : > { %2416 = vmatprep.subr.bf16.mxu0 %v8988_v17  ;;  %2868 = vmatprep.subr.bf16.mxu1 %v8991_v18  ;;  %v9079_v17 = vld [vmem:[%s12740_s2 + $0x588] ss:$16 sps:$4 sm:$0xff]   ;;  %v9084_v18 = vld [vmem:[%s12740_s2 + $0x5a4] ss:$16 sps:$4 sm:$0xff]  }
  0x86   : > { %2336 = vmatmul.mubr.bf16.vlgmr.msra.gmra.mrb[0].mxu0 %v8983_v19  ;;  %2788 = vmatmul.mubr.bf16.vlgmr.msra.gmra.mrb[0].mxu1 %v8983_v19  ;;  %v9087_v19 = vld [vmem:[%s12740_s2 + $0x5ac] ss:$16 sps:$4 sm:$0xff]  }
  0x87   : > { %2417 = vmatpush1.bf16.msra.mxu0 %v8986_v20  ;;  %2869 = vmatpush1.bf16.msra.mxu1 %v8989_v21  ;;  %v9088_v20 = vld [vmem:[%s10129_s19 + $0x194] ss:$28 sps:$4 sm:$0xff]  }
  0x88   : > { %2418 = vmatprep.subr.bf16.mxu0 %v8994_v22  ;;  %2870 = vmatprep.subr.bf16.mxu1 %v8997_v23  ;;  %v9082_v21 = vld [vmem:[%s12740_s2 + $0x5a0] ss:$16 sps:$4 sm:$0xff]   ;;  %v9085_v22 = vld [vmem:[%s12740_s2 + $0x5a8] ss:$16 sps:$4 sm:$0xff]   ;;  %v9093_v23 = vld [vmem:[%s12740_s2 + $0x5c4] ss:$16 sps:$4 sm:$0xff]  }
  0x89   : > { %2345 = vmatprep.mubr.bf16.mxu0 %v8998_v24  ;;  %2797 = vmatprep.mubr.bf16.mxu1 %v8998_v24  ;;  %v9090_v24 = vld [vmem:[%s10129_s19 + $0x190] ss:$28 sps:$4 sm:$0xff]  }
  0x8b   : > { %2419 = vmatpush1.bf16.msra.mxu0 %v8992_v25  ;;  %2871 = vmatpush1.bf16.msra.mxu1 %v8995_v26  ;;  %v9096_v25 = vld [vmem:[%s12740_s2 + $0x5cc] ss:$16 sps:$4 sm:$0xff]   ;;  %v9091_v26 = vld [vmem:[%s12740_s2 + $0x5c0] ss:$16 sps:$4 sm:$0xff]  }
  0x8c   : > { %2420 = vmatprep.subr.bf16.mxu0 %v9003_v27  ;;  %2872 = vmatprep.subr.bf16.mxu1 %v9006_v28  ;;  %v9094_v27 = vld [vmem:[%s12740_s2 + $0x5c8] ss:$16 sps:$4 sm:$0xff]   ;;  %v9099_v28 = vld [vmem:[%s12740_s2 + $0x5e4] ss:$16 sps:$4 sm:$0xff]  }
  0x8e   : > { %2346 = vmatmul.mubr.bf16.gmra.mrb[4].mxu0 %v9000_v29  ;;  %2798 = vmatmul.mubr.bf16.gmra.mrb[4].mxu1 %v9000_v29  ;;  %v9102_v29 = vld [vmem:[%s12740_s2 + $0x5ec] ss:$16 sps:$4 sm:$0xff]  }
  0x8f   : > { %2421 = vmatpush1.bf16.msra.mxu0 %v9001_v30  ;;  %2873 = vmatpush1.bf16.msra.mxu1 %v9004_v31  ;;  %v9097_v30 = vld [vmem:[%s12740_s2 + $0x5e0] ss:$16 sps:$4 sm:$0xff]  }
  0x90   : > { %2422 = vmatprep.subr.bf16.mxu0 %v9009_v32  ;;  %2874 = vmatprep.subr.bf16.mxu1 %v9012_v33  ;;  %v9105_v31 = vld [vmem:[%s10129_s19 + $0x14] ss:$28 sps:$4 sm:$0xff]   ;;  %v9100_v32 = vld [vmem:[%s12740_s2 + $0x5e8] ss:$16 sps:$4 sm:$0xff]  }
  0x91   : > { %2355 = vmatprep.mubr.bf16.mxu0 %v9013_v34  ;;  %2807 = vmatprep.mubr.bf16.mxu1 %v9013_v34  ;;  %v9108_v33 = vld [vmem:[%s12740_s2 + $0x604] ss:$16 sps:$4 sm:$0xff]   ;;  %v9135_v34 = vld [vmem:[%s12740_s2 + $0x60c] ss:$16 sps:$4 sm:$0xff]  }
  0x93   : > { %2423 = vmatpush1.bf16.msra.mxu0 %v9007_v35  ;;  %2875 = vmatpush1.bf16.msra.mxu1 %v9010_v36  ;;  %v9103_v35 = vld [vmem:[%s10129_s19 + $0x10] ss:$28 sps:$4 sm:$0xff]  }
  0x94   : > { %2424 = vmatprep.subr.bf16.mxu0 %v9018_v37  ;;  %2876 = vmatprep.subr.bf16.mxu1 %v9021_v38  ;;  %v9106_v36 = vld [vmem:[%s12740_s2 + $0x600] ss:$16 sps:$4 sm:$0xff]   ;;  %v9109_v37 = vld [vmem:[%s10129_s19 + $0x4c] ss:$28 sps:$4 sm:$0xff]   ;;  %v9114_v38 = vld [vmem:[%s12740_s2 + $0x624] ss:$16 sps:$4 sm:$0xff]  }
  0x96   : > { %2356 = vmatmul.mubr.bf16.gmra.mrb[8].mxu0 %v9015_v39  ;;  %2808 = vmatmul.mubr.bf16.gmra.mrb[8].mxu1 %v9015_v39  ;;  %v9133_v39 = vld [vmem:[%s12740_s2 + $0x608] ss:$16 sps:$4 sm:$0xff]  }
  0x97   : > { %2425 = vmatpush1.bf16.msra.mxu0 %v9016_v40  ;;  %2877 = vmatpush1.bf16.msra.mxu1 %v9019_v41  ;;  %v9138_v40 = vld [vmem:[%s12740_s2 + $0x62c] ss:$16 sps:$4 sm:$0xff]   ;;  %v9112_v41 = vld [vmem:[%s12740_s2 + $0x620] ss:$16 sps:$4 sm:$0xff]  }
  0x98   : > { %2426 = vmatprep.subr.bf16.mxu0 %v9024_v42  ;;  %2878 = vmatprep.subr.bf16.mxu1 %v9027_v43  ;;  %v9120_v42 = vld [vmem:[%s12740_s2 + $0x644] ss:$16 sps:$4 sm:$0xff]   ;;  %v9136_v43 = vld [vmem:[%s12740_s2 + $0x628] ss:$16 sps:$4 sm:$0xff]  }
  0x99   : > { %2365 = vmatprep.mubr.bf16.mxu0 %v9028_v44  ;;  %2817 = vmatprep.mubr.bf16.mxu1 %v9028_v44  ;;  %v9111_v44 = vld [vmem:[%s10129_s19 + $0x48] ss:$28 sps:$4 sm:$0xff]  }
  0x9b   : > { %2427 = vmatpush1.bf16.msra.mxu0 %v9022_v45  ;;  %2879 = vmatpush1.bf16.msra.mxu1 %v9025_v46  ;;  %v9115_v45 = vld [vmem:[%s10129_s19 + $0x84] ss:$28 sps:$4 sm:$0xff]  }
  0x9c   : > { %2428 = vmatprep.subr.bf16.mxu0 %v9033_v47  ;;  %2880 = vmatprep.subr.bf16.mxu1 %v9036_v48  ;;  %v9118_v46 = vld [vmem:[%s12740_s2 + $0x640] ss:$16 sps:$4 sm:$0xff]   ;;  %v9147_v47 = vld [vmem:[%s12740_s2 + $0x64c] ss:$16 sps:$4 sm:$0xff]   ;;  %v9126_v48 = vld [vmem:[%s12740_s2 + $0x664] ss:$16 sps:$4 sm:$0xff]  }
  0x9e   : > { %2366 = vmatmul.mubr.bf16.gmra.mrb[12].mxu0 %v9030_v49  ;;  %2818 = vmatmul.mubr.bf16.gmra.mrb[12].mxu1 %v9030_v49  ;;  %v9145_v49 = vld [vmem:[%s12740_s2 + $0x648] ss:$16 sps:$4 sm:$0xff]  }
  0x9f   : > { %2429 = vmatpush1.bf16.msra.mxu0 %v9031_v50  ;;  %2881 = vmatpush1.bf16.msra.mxu1 %v9034_v51  ;;  %v9150_v50 = vld [vmem:[%s12740_s2 + $0x66c] ss:$16 sps:$4 sm:$0xff]  }
  0xa0   : > { %2430 = vmatprep.subr.bf16.mxu0 %v9039_v52  ;;  %2882 = vmatprep.subr.bf16.mxu1 %v9042_v53  ;;  %v9117_v51 = vld [vmem:[%s10129_s19 + $0x80] ss:$28 sps:$4 sm:$0xff]   ;;  %v9132_v53 = vld [vmem:[%s12740_s2 + $0x684] ss:$16 sps:$4 sm:$0xff]  }
  0xa1   : > { %2375 = vmatprep.mubr.bf16.mxu0 %v9043_v54  ;;  %2827 = vmatprep.mubr.bf16.mxu1 %v9043_v54  ;;  %v9124_v52 = vld [vmem:[%s12740_s2 + $0x660] ss:$16 sps:$4 sm:$0xff]   ;;  %v9148_v54 = vld [vmem:[%s12740_s2 + $0x668] ss:$16 sps:$4 sm:$0xff]  }
  0xa3   : > { %2431 = vmatpush1.bf16.msra.mxu0 %v9037_v55  ;;  %2883 = vmatpush1.bf16.msra.mxu1 %v9040_v56  ;;  %v9121_v55 = vld [vmem:[%s10129_s19 + $0xbc] ss:$28 sps:$4 sm:$0xff]   ;;  %v9130_v56 = vld [vmem:[%s12740_s2 + $0x680] ss:$16 sps:$4 sm:$0xff]  }
  0xa4   : > { %2432 = vmatprep.subr.bf16.mxu0 %v9048_v57  ;;  %2884 = vmatprep.subr.bf16.mxu1 %v9051_v58  ;;  %v9144_v57 = vld [vmem:[%s12740_s2 + $0x6a4] ss:$16 sps:$4 sm:$0xff]   ;;  %v9157_v58 = vld [vmem:[%s12740_s2 + $0x688] ss:$16 sps:$4 sm:$0xff]  }
  0xa6   : > { %2376 = vmatmul.mubr.bf16.gmra.mrb[16].mxu0 %v9045_v59  ;;  %2828 = vmatmul.mubr.bf16.gmra.mrb[16].mxu1 %v9045_v59  ;;  %v9159_v59 = vld [vmem:[%s12740_s2 + $0x68c] ss:$16 sps:$4 sm:$0xff]  }
  0xa7   : > { %2433 = vmatpush1.bf16.msra.mxu0 %v9046_v60  ;;  %2885 = vmatpush1.bf16.msra.mxu1 %v9049_v61  ;;  %v9162_v60 = vld [vmem:[%s12740_s2 + $0x6ac] ss:$16 sps:$4 sm:$0xff]   ;;  %v9142_v61 = vld [vmem:[%s12740_s2 + $0x6a0] ss:$16 sps:$4 sm:$0xff]  }
  0xa8   : > { %2434 = vmatprep.subr.bf16.mxu0 %v9054_v62  ;;  %2886 = vmatprep.subr.bf16.mxu1 %v9057_v63  ;;  %v9156_v62 = vld [vmem:[%s12740_s2 + $0x6c4] ss:$16 sps:$4 sm:$0xff]   ;;  %v9160_v63 = vld [vmem:[%s12740_s2 + $0x6a8] ss:$16 sps:$4 sm:$0xff]  }
  0xa9   : > { %2385 = vmatprep.mubr.bf16.mxu0 %v9058_v0  ;;  %2837 = vmatprep.mubr.bf16.mxu1 %v9058_v0  ;;  %v9123_v0 = vld [vmem:[%s10129_s19 + $0xb8] ss:$28 sps:$4 sm:$0xff]  }
  0xab   : > { %2435 = vmatpush1.bf16.msra.mxu0 %v9052_v1  ;;  %2887 = vmatpush1.bf16.msra.mxu1 %v9055_v2  ;;  %v9127_v1 = vld [vmem:[%s10129_s19 + $0xf4] ss:$28 sps:$4 sm:$0xff]  }
  0xac   : > { %2436 = vmatprep.subr.bf16.mxu0 %v9063_v3  ;;  %2888 = vmatprep.subr.bf16.mxu1 %v9066_v4  ;;  %v9154_v2 = vld [vmem:[%s12740_s2 + $0x6c0] ss:$16 sps:$4 sm:$0xff]   ;;  %v9171_v3 = vld [vmem:[%s12740_s2 + $0x6cc] ss:$16 sps:$4 sm:$0xff]   ;;  %v9168_v4 = vld [vmem:[%s12740_s2 + $0x6e4] ss:$16 sps:$4 sm:$0xff]  }
  0xae   : > { %2386 = vmatmul.mubr.bf16.gmra.mrb[20].mxu0 %v9060_v5  ;;  %2838 = vmatmul.mubr.bf16.gmra.mrb[20].mxu1 %v9060_v5  ;;  %v9169_v5 = vld [vmem:[%s12740_s2 + $0x6c8] ss:$16 sps:$4 sm:$0xff]  }
  0xaf   : > { %2437 = vmatpush1.bf16.msra.mxu0 %v9061_v6  ;;  %2889 = vmatpush1.bf16.msra.mxu1 %v9064_v7  ;;  %v9174_v6 = vld [vmem:[%s12740_s2 + $0x6ec] ss:$16 sps:$4 sm:$0xff]   ;;  %v9166_v7 = vld [vmem:[%s12740_s2 + $0x6e0] ss:$16 sps:$4 sm:$0xff]  }
  0xb0   : > { %2438 = vmatprep.subr.bf16.mxu0 %v9069_v8  ;;  %2890 = vmatprep.subr.bf16.mxu1 %v9072_v9  ;;  %v9172_v8 = vld [vmem:[%s12740_s2 + $0x6e8] ss:$16 sps:$4 sm:$0xff]   ;;  %v9185_v9 = vld [vmem:[%s12742_s4 + $0x4] ss:$8 sps:$4 sm:$0xff]  }
  0xb1   : > { %2395 = vmatprep.mubr.bf16.mxu0 %v9073_v10  ;;  %2847 = vmatprep.mubr.bf16.mxu1 %v9073_v10  ;;  %v9129_v10 = vld [vmem:[%s10129_s19 + $0xf0] ss:$28 sps:$4 sm:$0xff]  }
  0xb3   : > { %2439 = vmatpush1.bf16.msra.mxu0 %v9067_v11  ;;  %2891 = vmatpush1.bf16.msra.mxu1 %v9070_v12  ;;  %v9139_v11 = vld [vmem:[%s10129_s19 + $0x12c] ss:$28 sps:$4 sm:$0xff]  }
  0xb4   : > { %2440 = vmatprep.subr.bf16.mxu0 %v9078_v13  ;;  %2892 = vmatprep.subr.bf16.mxu1 %v9081_v14  ;;  %v9141_v12 = vld [vmem:[%s10129_s19 + $0x128] ss:$28 sps:$4 sm:$0xff]   ;;  %v9153_v14 = vld [vmem:[%s10129_s19 + $0x160] ss:$28 sps:$4 sm:$0xff]  }
  0xb5   : > { %v9151_v13 = vld [vmem:[%s10129_s19 + $0x164] ss:$28 sps:$4 sm:$0xff]  }
  0xb6   : > { %2396 = vmatmul.mubr.bf16.gmra.mrb[24].mxu0 %v9075_v15  ;;  %2848 = vmatmul.mubr.bf16.gmra.mrb[24].mxu1 %v9075_v15  ;;  %v9163_v15 = vld [vmem:[%s10129_s19 + $0x19c] ss:$28 sps:$4 sm:$0xff]  }
  0xb7   : > { %2441 = vmatpush1.bf16.msra.mxu0 %v9076_v16  ;;  %2893 = vmatpush1.bf16.msra.mxu1 %v9079_v17  ;;  %v9165_v16 = vld [vmem:[%s10129_s19 + $0x198] ss:$28 sps:$4 sm:$0xff]   ;;  %v9912_v17 = vmov 0  }
  0xb8   : > { %2442 = vmatprep.subr.bf16.mxu0 %v9084_v18  ;;  %2894 = vmatprep.subr.bf16.mxu1 %v9087_v19  ;;  %v9175_v18 = vld [vmem:[%s10129_s19 + $0x18] ss:$28 sps:$4 sm:$0xff]   ;;  %v9183_v19 = vld [vmem:[%s12742_s4] ss:$8 sps:$4 sm:$0xff]  }
  0xb9   : > { %2405 = vmatprep.mubr.bf16.mxu0 %v9088_v20  ;;  %2857 = vmatprep.mubr.bf16.mxu1 %v9088_v20  ;;  %v9188_v20 = vld [vmem:[%s12742_s4 + $0x14] ss:$8 sps:$4 sm:$0xff]  }
  0xbb   : > { %2443 = vmatpush1.bf16.msra.mxu0 %v9082_v21  ;;  %2895 = vmatpush1.bf16.msra.mxu1 %v9085_v22  ;;  %v9186_v21 = vld [vmem:[%s12742_s4 + $0x10] ss:$8 sps:$4 sm:$0xff]   ;;  %v9191_v22 = vld [vmem:[%s12742_s4 + $0x24] ss:$8 sps:$4 sm:$0xff]  }
  0xbc   : > { %2444 = vmatprep.subr.bf16.mxu0 %v9093_v23  ;;  %2896 = vmatprep.subr.bf16.mxu1 %v9096_v25  ;;  %v9176_v23 = vld [vmem:[%s10129_s19 + $0x50] ss:$28 sps:$4 sm:$0xff]   ;;  %v9194_v25 = vld [vmem:[%s12742_s4 + $0x34] ss:$8 sps:$4 sm:$0xff]  }
  0xbe   : > { %2406 = vmatmul.mubr.bf16.gmra.mrb[28].mxu0 %v9090_v24  ;;  %2858 = vmatmul.mubr.bf16.gmra.mrb[28].mxu1 %v9090_v24  ;;  %v9189_v24 = vld [vmem:[%s12742_s4 + $0x20] ss:$8 sps:$4 sm:$0xff]  }
  0xbf   : > { %2445 = vmatpush1.bf16.msra.mxu0 %v9091_v26  ;;  %2897 = vmatpush1.bf16.msra.mxu1 %v9094_v27  ;;  %v9192_v26 = vld [vmem:[%s12742_s4 + $0x30] ss:$8 sps:$4 sm:$0xff]   ;;  %v9197_v27 = vld [vmem:[%s12742_s4 + $0x44] ss:$8 sps:$4 sm:$0xff]  }
  0xc0   : > { %2446 = vmatprep.subr.bf16.mxu0 %v9099_v28  ;;  %2898 = vmatprep.subr.bf16.mxu1 %v9102_v29  ;;  %v9177_v28 = vld [vmem:[%s10129_s19 + $0x88] ss:$28 sps:$4 sm:$0xff]  }
  0xc1   : > { %2448 = vmatprep.mubr.bf16.mxu0 %v9105_v31  ;;  %2900 = vmatprep.mubr.bf16.mxu1 %v9105_v31  ;;  %v9195_v29 = vld [vmem:[%s12742_s4 + $0x40] ss:$8 sps:$4 sm:$0xff]   ;;  %v9198_v31 = vld [vmem:[%s12742_s4 + $0x50] ss:$8 sps:$4 sm:$0xff]  }
  0xc3   : > { %2447 = vmatpush1.bf16.msra.mxu0 %v9097_v30  ;;  %2899 = vmatpush1.bf16.msra.mxu1 %v9100_v32  ;;  %v9200_v30 = vld [vmem:[%s12742_s4 + $0x54] ss:$8 sps:$4 sm:$0xff]   ;;  %v9203_v32 = vld [vmem:[%s12742_s4 + $0x64] ss:$8 sps:$4 sm:$0xff]  }
  0xc4   : > { %2529 = vmatprep.subr.bf16.mxu0 %v9108_v33  ;;  %2981 = vmatprep.subr.bf16.mxu1 %v9135_v34  ;;  %v9178_v33 = vld [vmem:[%s10129_s19 + $0xc0] ss:$28 sps:$4 sm:$0xff]  }
  0xc5   : > { %v9201_v34 = vld [vmem:[%s12742_s4 + $0x60] ss:$8 sps:$4 sm:$0xff]  }
  0xc6   : > { %2449 = vmatmul.mubr.bf16.vlgmr.msra.gmra.mrb[0].mxu0 %v9103_v35  ;;  %2901 = vmatmul.mubr.bf16.vlgmr.msra.gmra.mrb[0].mxu1 %v9103_v35  ;;  %v9206_v35 = vld [vmem:[%s12742_s4 + $0x74] ss:$8 sps:$4 sm:$0xff]  }
  0xc7   : > { %2530 = vmatpush1.bf16.msra.mxu0 %v9106_v36  ;;  %2458 = vmatprep.mubr.bf16.mxu0 %v9109_v37  ;;  %v9204_v36 = vld [vmem:[%s12742_s4 + $0x70] ss:$8 sps:$4 sm:$0xff]  }
  0xc8   : > { %2910 = vmatprep.mubr.bf16.mxu1 %v9109_v37  ;;  %2531 = vmatprep.subr.bf16.mxu0 %v9114_v38  ;;  %v9209_v37 = vld [vmem:[%s12742_s4 + $0x84] ss:$8 sps:$4 sm:$0xff]   ;;  %v9179_v38 = vld [vmem:[%s10129_s19 + $0xf8] ss:$28 sps:$4 sm:$0xff]  }
  0xc9   : > { %2982 = vmatpush1.bf16.msra.mxu1 %v9133_v39  ;;  %v9207_v39 = vld [vmem:[%s12742_s4 + $0x80] ss:$8 sps:$4 sm:$0xff]  }
  0xca   : > { %2983 = vmatprep.subr.bf16.mxu1 %v9138_v40  ;;  %v9212_v40 = vld [vmem:[%s12742_s4 + $0x94] ss:$8 sps:$4 sm:$0xff]  }
  0xcb   : > { %2532 = vmatpush1.bf16.msra.mxu0 %v9112_v41  ;;  %v9210_v41 = vld [vmem:[%s12742_s4 + $0x90] ss:$8 sps:$4 sm:$0xff]  }
  0xcc   : > { %2533 = vmatprep.subr.bf16.mxu0 %v9120_v42  ;;  %v9215_v42 = vld [vmem:[%s12742_s4 + $0xa4] ss:$8 sps:$4 sm:$0xff]  }
  0xcd   : > { %2984 = vmatpush1.bf16.msra.mxu1 %v9136_v43  ;;  %v9180_v43 = vld [vmem:[%s10129_s19 + $0x130] ss:$28 sps:$4 sm:$0xff]  }
  0xce   : > { %2459 = vmatmul.mubr.bf16.gmra.mrb[4].mxu0 %v9111_v44  ;;  %2911 = vmatmul.mubr.bf16.gmra.mrb[4].mxu1 %v9111_v44  ;;  %v9213_v44 = vld [vmem:[%s12742_s4 + $0xa0] ss:$8 sps:$4 sm:$0xff]  }
  0xcf   : > { %2468 = vmatprep.mubr.bf16.mxu0 %v9115_v45  ;;  %2920 = vmatprep.mubr.bf16.mxu1 %v9115_v45  ;;  %v9218_v45 = vld [vmem:[%s12742_s4 + $0xb4] ss:$8 sps:$4 sm:$0xff]  }
  0xd0   : > { %2534 = vmatpush1.bf16.msra.mxu0 %v9118_v46  ;;  %2985 = vmatprep.subr.bf16.mxu1 %v9147_v47  ;;  %v9216_v46 = vld [vmem:[%s12742_s4 + $0xb0] ss:$8 sps:$4 sm:$0xff]   ;;  %v9221_v47 = vld [vmem:[%s12742_s4 + $0xc4] ss:$8 sps:$4 sm:$0xff]  }
  0xd1   : > { %2535 = vmatprep.subr.bf16.mxu0 %v9126_v48  ;;  %2986 = vmatpush1.bf16.msra.mxu1 %v9145_v49  ;;  %v9181_v48 = vld [vmem:[%s10129_s19 + $0x168] ss:$28 sps:$4 sm:$0xff]  }
  0xd2   : > { %2987 = vmatprep.subr.bf16.mxu1 %v9150_v50  ;;  %v9219_v49 = vld [vmem:[%s12742_s4 + $0xc0] ss:$8 sps:$4 sm:$0xff]   ;;  %v9224_v50 = vld [vmem:[%s12742_s4 + $0xd4] ss:$8 sps:$4 sm:$0xff]  }
  0xd4   : > { %2536 = vmatpush1.bf16.msra.mxu0 %v9124_v52  ;;  %v9182_v52 = vld [vmem:[%s10129_s19 + $0x1a0] ss:$28 sps:$4 sm:$0xff]  }
  0xd5   : > { %2537 = vmatprep.subr.bf16.mxu0 %v9132_v53  ;;  %2988 = vmatpush1.bf16.msra.mxu1 %v9148_v54  ;;  %v9227_v53 = vld [vmem:[%s12742_s4 + $0xe4] ss:$8 sps:$4 sm:$0xff]   ;;  %v9225_v54 = vld [vmem:[%s12742_s4 + $0xe0] ss:$8 sps:$4 sm:$0xff]  }
  0xd6   : > { %2469 = vmatmul.mubr.bf16.gmra.mrb[8].mxu0 %v9117_v51  ;;  %2921 = vmatmul.mubr.bf16.gmra.mrb[8].mxu1 %v9117_v51  ;;  %v9222_v51 = vld [vmem:[%s12742_s4 + $0xd0] ss:$8 sps:$4 sm:$0xff]  }
  0xd7   : > { %2478 = vmatprep.mubr.bf16.mxu0 %v9121_v55  ;;  %2930 = vmatprep.mubr.bf16.mxu1 %v9121_v55  ;;  %v9230_v55 = vld [vmem:[%s12742_s4 + $0xf4] ss:$8 sps:$4 sm:$0xff]  }
  0xd8   : > { %2538 = vmatpush1.bf16.msra.mxu0 %v9130_v56  ;;  %2989 = vmatprep.subr.bf16.mxu1 %v9159_v59  ;;  %v9228_v56 = vld [vmem:[%s12742_s4 + $0xf0] ss:$8 sps:$4 sm:$0xff]  }
  0xd9   : > { %2539 = vmatprep.subr.bf16.mxu0 %v9144_v57  ;;  %2990 = vmatpush1.bf16.msra.mxu1 %v9157_v58  ;;  %v9233_v57 = vld [vmem:[%s12742_s4 + $0x104] ss:$8 sps:$4 sm:$0xff]   ;;  %v762_v58 = vlaneseq }
  0xda   : > { %2991 = vmatprep.subr.bf16.mxu1 %v9162_v60 }
  0xdb   : > { %v10840_v59 = vshrl.u32 %v762_v58, 7  ;;  %v9234_v58 = vld [vmem:[%s12742_s4 + $0x110] ss:$8 sps:$4 sm:$0xff]  }
  0xdc   : > { %2540 = vmatpush1.bf16.msra.mxu0 %v9142_v61 }
  0xdd   : > { %2541 = vmatprep.subr.bf16.mxu0 %v9156_v62  ;;  %2992 = vmatpush1.bf16.msra.mxu1 %v9160_v63  ;;  %v10843_v60 = vsub.s32 0, %v10840_v59  ;;  %v10846_v61 = vsub.s32 2, %v10840_v59  ;;  %v760_v62 = vld [vmem:[%s12741_s3] sm:$0xf]  ;;  %v10852_v63 = vsub.s32 1, %v10840_v59 }
  0xde   : > { %2479 = vmatmul.mubr.bf16.gmra.mrb[12].mxu0 %v9123_v0  ;;  %2931 = vmatmul.mubr.bf16.gmra.mrb[12].mxu1 %v9123_v0  ;;  %v10855_v0 = vsub.s32 3, %v10840_v59 }
  0xdf   : > { %2488 = vmatprep.mubr.bf16.mxu0 %v9127_v1  ;;  %2940 = vmatprep.mubr.bf16.mxu1 %v9127_v1  ;;  %v10858_v1 = vrot.slane %v760_v62, %v10843_v60 }
  0xe0   : > { %2542 = vmatpush1.bf16.msra.mxu0 %v9154_v2  ;;  %2993 = vmatprep.subr.bf16.mxu1 %v9171_v3  ;;  %v10861_v2 = vrot.slane %v760_v62, %v10846_v61  ;;  %v10864_v3 = vrot.slane %v760_v62, %v10852_v63 }
  0xe1   : > { %2543 = vmatprep.subr.bf16.mxu0 %v9168_v4  ;;  %2994 = vmatpush1.bf16.msra.mxu1 %v9169_v5  ;;  %v10867_v4 = vrot.slane %v760_v62, %v10855_v0  ;;  %v9290_v62 = vld [vmem:[%s12744_s6 + $0x64] ss:$16 sps:$4 sm:$0xff]  }
  0xe2   : > { %2995 = vmatprep.subr.bf16.mxu1 %v9174_v6 }
  0xe4   : > { %2544 = vmatpush1.bf16.msra.mxu0 %v9166_v7 }
  0xe5   : > { %2996 = vmatpush1.bf16.msra.mxu1 %v9172_v8  ;;  %3586 = vmatprep.subr.bf16.mxu0 %v9185_v9 }
  0xe6   : > { %2489 = vmatmul.mubr.bf16.gmra.mrb[16].mxu0 %v9129_v10  ;;  %2941 = vmatmul.mubr.bf16.gmra.mrb[16].mxu1 %v9129_v10 }
  0xe7   : > { %2498 = vmatprep.mubr.bf16.mxu0 %v9139_v11  ;;  %2950 = vmatprep.mubr.bf16.mxu1 %v9139_v11 }
  0xee   : > { %2499 = vmatmul.mubr.bf16.gmra.mrb[20].mxu0 %v9141_v12  ;;  %2951 = vmatmul.mubr.bf16.gmra.mrb[20].mxu1 %v9141_v12 }
  0xef   : > { %2508 = vmatprep.mubr.bf16.mxu0 %v9151_v13  ;;  %2960 = vmatprep.mubr.bf16.mxu1 %v9151_v13 }
  0xf6   : > { %2509 = vmatmul.mubr.bf16.gmra.mrb[24].mxu0 %v9153_v14  ;;  %2961 = vmatmul.mubr.bf16.gmra.mrb[24].mxu1 %v9153_v14 }
  0xf7   : > { %2518 = vmatprep.mubr.bf16.mxu0 %v9163_v15  ;;  %2970 = vmatprep.mubr.bf16.mxu1 %v9163_v15 }
  0xfe   : > { %2519 = vmatmul.mubr.bf16.gmra.mrb[28].mxu0 %v9165_v16  ;;  %2971 = vmatmul.mubr.bf16.gmra.mrb[28].mxu1 %v9165_v16 }
  0xff   : > { %2561 = vmatprep.mubr.bf16.mxu0 %v9912_v17  ;;  %3013 = vmatprep.mubr.bf16.mxu1 %v9912_v17 }
 0x106   : > { %2562 = vmatmul.mubr.bf16.vlgmr.msra.gmra.mrb[0].mxu0 %v9175_v18  ;;  %3014 = vmatmul.mubr.bf16.vlgmr.msra.gmra.mrb[0].mxu1 %v9175_v18 }
 0x107   : > { %2571 = vmatprep.mubr.bf16.mxu0 %v9912_v17  ;;  %3023 = vmatprep.mubr.bf16.mxu1 %v9912_v17 }
 0x108   : > { %3587 = vmatpush1.bf16.msra.mxu0 %v9183_v19 }
 0x109   : > { %3588 = vmatprep.subr.bf16.mxu0 %v9188_v20  ;;  %v9279_v20 = vld [vmem:[%s12744_s6] ss:$16 sps:$4 sm:$0xff]  }
 0x10c   : > { %3589 = vmatpush1.bf16.msra.mxu0 %v9186_v21 }
 0x10d   : > { %3590 = vmatprep.subr.bf16.mxu0 %v9191_v22 }
 0x10e   : > { %2572 = vmatmul.mubr.bf16.gmra.mrb[4].mxu0 %v9176_v23  ;;  %3024 = vmatmul.mubr.bf16.gmra.mrb[4].mxu1 %v9176_v23  ;;  %v9281_v23 = vld [vmem:[%s12744_s6 + $0x4] ss:$16 sps:$4 sm:$0xff]  }
 0x10f   : > { %2581 = vmatprep.mubr.bf16.mxu0 %v9912_v17  ;;  %3033 = vmatprep.mubr.bf16.mxu1 %v9912_v17 }
 0x110   : > { %3591 = vmatpush1.bf16.msra.mxu0 %v9189_v24  ;;  %4130 = vmatprep.subr.bf16.mxu1 %v9281_v23  ;;  %v9293_v23 = vld [vmem:[%s12744_s6 + $0x84] ss:$16 sps:$4 sm:$0xff]  }
 0x111   : > { %3592 = vmatprep.subr.bf16.mxu0 %v9194_v25  ;;  %4131 = vmatpush1.bf16.msra.mxu1 %v9279_v20 }
 0x114   : > { %3593 = vmatpush1.bf16.msra.mxu0 %v9192_v26 }
 0x115   : > { %3594 = vmatprep.subr.bf16.mxu0 %v9197_v27 }
 0x116   : > { %2582 = vmatmul.mubr.bf16.gmra.mrb[8].mxu0 %v9177_v28  ;;  %3034 = vmatmul.mubr.bf16.gmra.mrb[8].mxu1 %v9177_v28  ;;  %v9284_v28 = vld [vmem:[%s12744_s6 + $0x24] ss:$16 sps:$4 sm:$0xff]  }
 0x117   : > { %2591 = vmatprep.mubr.bf16.mxu0 %v9912_v17  ;;  %3043 = vmatprep.mubr.bf16.mxu1 %v9912_v17 }
 0x118   : > { %3595 = vmatpush1.bf16.msra.mxu0 %v9195_v29  ;;  %4132 = vmatprep.subr.bf16.mxu1 %v9284_v28  ;;  %v9242_v28 = vld [vmem:[%s12742_s4 + $0x134] ss:$8 sps:$4 sm:$0xff]  }
 0x119   : > { %3596 = vmatprep.subr.bf16.mxu0 %v9200_v30 }
 0x11c   : > { %3597 = vmatpush1.bf16.msra.mxu0 %v9198_v31 }
 0x11d   : > { %3598 = vmatprep.subr.bf16.mxu0 %v9203_v32 }
 0x11e   : > { %2592 = vmatmul.mubr.bf16.gmra.mrb[12].mxu0 %v9178_v33  ;;  %3044 = vmatmul.mubr.bf16.gmra.mrb[12].mxu1 %v9178_v33 }
 0x11f   : > { %2601 = vmatprep.mubr.bf16.mxu0 %v9912_v17  ;;  %3053 = vmatprep.mubr.bf16.mxu1 %v9912_v17 }
 0x120   : > { %3599 = vmatpush1.bf16.msra.mxu0 %v9201_v34 }
 0x121   : > { %3600 = vmatprep.subr.bf16.mxu0 %v9206_v35  ;;  %v9282_v35 = vld [vmem:[%s12744_s6 + $0x20] ss:$16 sps:$4 sm:$0xff]  }
 0x122   : > { %4133 = vmatpush1.bf16.msra.mxu1 %v9282_v35 }
 0x124   : > { %3601 = vmatpush1.bf16.msra.mxu0 %v9204_v36 }
 0x125   : > { %3602 = vmatprep.subr.bf16.mxu0 %v9209_v37 }
 0x126   : > { %2602 = vmatmul.mubr.bf16.gmra.mrb[16].mxu0 %v9179_v38  ;;  %3054 = vmatmul.mubr.bf16.gmra.mrb[16].mxu1 %v9179_v38 }
 0x127   : > { %2611 = vmatprep.mubr.bf16.mxu0 %v9912_v17  ;;  %3063 = vmatprep.mubr.bf16.mxu1 %v9912_v17 }
 0x128   : > { %3603 = vmatpush1.bf16.msra.mxu0 %v9207_v39 }
 0x129   : > { %3604 = vmatprep.subr.bf16.mxu0 %v9212_v40  ;;  %v9231_v40 = vld [vmem:[%s12742_s4 + $0x100] ss:$8 sps:$4 sm:$0xff]  }
 0x12c   : > { %3605 = vmatpush1.bf16.msra.mxu0 %v9210_v41  ;;  %v9287_v41 = vld [vmem:[%s12744_s6 + $0x44] ss:$16 sps:$4 sm:$0xff]  }
 0x12d   : > { %3606 = vmatprep.subr.bf16.mxu0 %v9215_v42  ;;  %4134 = vmatprep.subr.bf16.mxu1 %v9287_v41 }
 0x12e   : > { %2612 = vmatmul.mubr.bf16.gmra.mrb[20].mxu0 %v9180_v43  ;;  %3064 = vmatmul.mubr.bf16.gmra.mrb[20].mxu1 %v9180_v43 }
 0x12f   : > { %2621 = vmatprep.mubr.bf16.mxu0 %v9912_v17  ;;  %3073 = vmatprep.mubr.bf16.mxu1 %v9912_v17 }
 0x130   : > { %3607 = vmatpush1.bf16.msra.mxu0 %v9213_v44 }
 0x131   : > { %3608 = vmatprep.subr.bf16.mxu0 %v9218_v45 }
 0x134   : > { %3609 = vmatpush1.bf16.msra.mxu0 %v9216_v46  ;;  %v9236_v46 = vld [vmem:[%s12742_s4 + $0x114] ss:$8 sps:$4 sm:$0xff]  }
 0x135   : > { %3610 = vmatprep.subr.bf16.mxu0 %v9221_v47 }
 0x136   : > { %2622 = vmatmul.mubr.bf16.gmra.mrb[24].mxu0 %v9181_v48  ;;  %3074 = vmatmul.mubr.bf16.gmra.mrb[24].mxu1 %v9181_v48 }
 0x137   : > { %2631 = vmatprep.mubr.bf16.mxu0 %v9912_v17  ;;  %3083 = vmatprep.mubr.bf16.mxu1 %v9912_v17 }
 0x138   : > { %3611 = vmatpush1.bf16.msra.mxu0 %v9219_v49 }
 0x139   : > { %3612 = vmatprep.subr.bf16.mxu0 %v9224_v50 }
 0x13c   : > { %3613 = vmatpush1.bf16.msra.mxu0 %v9222_v51 }
 0x13d   : > { %3614 = vmatprep.subr.bf16.mxu0 %v9227_v53 }
 0x13e   : > { %2632 = vmatmul.mubr.bf16.gmra.mrb[28].mxu0 %v9182_v52  ;;  %3084 = vmatmul.mubr.bf16.gmra.mrb[28].mxu1 %v9182_v52 }
 0x13f   : > { %4162 = vmatprep.mubr.bf16.mxu1 %v9912_v17 }
 0x140   : > { %3615 = vmatpush1.bf16.msra.mxu0 %v9225_v54 }
 0x141   : > { %3616 = vmatprep.subr.bf16.mxu0 %v9230_v55  ;;  %v9285_v55 = vld [vmem:[%s12744_s6 + $0x40] ss:$16 sps:$4 sm:$0xff]  }
 0x142   : > { %4135 = vmatpush1.bf16.msra.mxu1 %v9285_v55 }
 0x143   : > { %4136 = vmatprep.subr.bf16.mxu1 %v9290_v62 }
 0x144   : > { %3617 = vmatpush1.bf16.msra.mxu0 %v9228_v56 }
 0x145   : > { %3699 = vmatprep.subr.bf16.mxu0 %v9233_v57 }
 0x1d9   : > { %v2563_v5 = vpop.f32.mrb[0].mxu0  ;;  %v3015_v6 = vpop.f32.mrb[0].mxu1 }
 0x1da   : > { %v8244_v7 = vadd.f32 %v2563_v5, %v10858_v1  ;;  %v8276_v8 = vadd.f32 %v3015_v6, %v10861_v2  ;;  %v2565_v9 = vpop.f32.mrb[1].mxu0  ;;  %v3017_v10 = vpop.f32.mrb[1].mxu1 }
 0x1db   : > { %v8245_v11 = vadd.f32 %v2565_v9, %v10864_v3  ;;  %v8277_v12 = vadd.f32 %v3017_v10, %v10867_v4  ;;  %v2567_v13 = vpop.f32.mrb[2].mxu0  ;;  %v3019_v14 = vpop.f32.mrb[2].mxu1  ;;  %v9239_v9 = vld [vmem:[%s12742_s4 + $0x124] ss:$8 sps:$4 sm:$0xff]  }
 0x1dc   : > { %v8246_v15 = vadd.f32 %v2567_v13, %v10858_v1  ;;  %v8278_v16 = vadd.f32 %v3019_v14, %v10861_v2  ;;  %v2569_v18 = vpop.f32.mrb[3].mxu0  ;;  %v3021_v19 = vpop.f32.mrb[3].mxu1  ;;  %v3094_v24 = vmax.f32 %v8244_v7, 0.0  ;;  %v3096_v25 = vmax.f32 %v8276_v8, 0.0 }
 0x1dd   : > { %v8247_v21 = vadd.f32 %v2569_v18, %v10864_v3  ;;  %v8279_v22 = vadd.f32 %v3021_v19, %v10867_v4  ;;  %v3095_v29 = vmax.f32 %v8245_v11, 0.0  ;;  %v3097_v30 = vmax.f32 %v8277_v12, 0.0 }
 0x1de   : > { %v3098_v26 = vmax.f32 %v8246_v15, 0.0  ;;  %v3100_v27 = vmax.f32 %v8278_v16, 0.0  ;;  %v9288_v16 = vld [vmem:[%s12744_s6 + $0x60] ss:$16 sps:$4 sm:$0xff]  }
 0x1df   : > { %v3099_v31 = vmax.f32 %v8247_v21, 0.0  ;;  %v3101_v32 = vmax.f32 %v8279_v22, 0.0  ;;  %v9237_v22 = vld [vmem:[%s12742_s4 + $0x120] ss:$8 sps:$4 sm:$0xff]   ;;  %4137 = vmatpush1.bf16.msra.mxu1 %v9288_v16 }
 0x1e0   : > { %v3158_v33 = vpack.c.bf16 %v3098_v26, %v3094_v24  ;;  %v10886_v34 = vpack.c.bf16 %v3100_v27, %v3096_v25  ;;  %4138 = vmatprep.subr.bf16.mxu1 %v9293_v23 }
 0x1e1   : > { %v3159_v36 = vpack.c.bf16 %v3099_v31, %v3095_v29  ;;  %v10891_v37 = vpack.c.bf16 %v3101_v32, %v3097_v30  ;;  %v2573_v38 = vpop.f32.mrb[4].mxu0  ;;  %v3025_v39 = vpop.f32.mrb[4].mxu1 }
 0x1e2   : > { %v8248_v42 = vadd.f32 %v2573_v38, %v10858_v1  ;;  %v8280_v43 = vadd.f32 %v3025_v39, %v10861_v2  ;;  %v2575_v44 = vpop.f32.mrb[5].mxu0  ;;  %v3027_v45 = vpop.f32.mrb[5].mxu1  ;;  %v9291_v39 = vld [vmem:[%s12744_s6 + $0x80] ss:$16 sps:$4 sm:$0xff]  }
 0x1e3   : > { %v8249_v47 = vadd.f32 %v2575_v44, %v10864_v3  ;;  %v8281_v48 = vadd.f32 %v3027_v45, %v10867_v4  ;;  %v2577_v49 = vpop.f32.mrb[6].mxu0  ;;  %v3029_v50 = vpop.f32.mrb[6].mxu1  ;;  %3618 = vmatprep.mubr.bf16.mxu0 %v3159_v36  ;;  %4139 = vmatpush1.bf16.msra.mxu1 %v9291_v39 }
 0x1e4   : > { %v8250_v51 = vadd.f32 %v2577_v49, %v10858_v1  ;;  %v8282_v52 = vadd.f32 %v3029_v50, %v10861_v2  ;;  %v2579_v53 = vpop.f32.mrb[7].mxu0  ;;  %v3031_v54 = vpop.f32.mrb[7].mxu1  ;;  %3619 = vmatmul.mubr.bf16.vlgmr.msra.gmra.mrb[32].mxu0 %v3158_v33  ;;  %v3102_v5 = vmax.f32 %v8248_v42, 0.0  ;;  %v3104_v6 = vmax.f32 %v8280_v43, 0.0  ;;  %v9240_v42 = vld [vmem:[%s12742_s4 + $0x130] ss:$8 sps:$4 sm:$0xff]  }
 0x1e5   : > { %v8251_v56 = vadd.f32 %v2579_v53, %v10864_v3  ;;  %v8283_v57 = vadd.f32 %v3031_v54, %v10867_v4  ;;  %3700 = vmatpush1.bf16.msra.mxu0 %v9231_v40  ;;  %v3103_v10 = vmax.f32 %v8249_v47, 0.0  ;;  %v3105_v11 = vmax.f32 %v8281_v48, 0.0  ;;  %v9245_v47 = vld [vmem:[%s12742_s4 + $0x144] ss:$8 sps:$4 sm:$0xff]  }
 0x1e6   : > { %v3106_v7 = vmax.f32 %v8250_v51, 0.0  ;;  %v3108_v8 = vmax.f32 %v8282_v52, 0.0  ;;  %3701 = vmatprep.subr.bf16.mxu0 %v9236_v46 }
 0x1e7   : > { %v3107_v12 = vmax.f32 %v8251_v56, 0.0  ;;  %v3109_v13 = vmax.f32 %v8283_v57, 0.0 }
 0x1e8   : > { %v3162_v14 = vpack.c.bf16 %v3106_v7, %v3102_v5  ;;  %v10922_v15 = vpack.c.bf16 %v3108_v8, %v3104_v6  ;;  %v9248_v8 = vld [vmem:[%s12742_s4 + $0x154] ss:$8 sps:$4 sm:$0xff]  }
 0x1e9   : > { %v3163_v18 = vpack.c.bf16 %v3107_v12, %v3103_v10  ;;  %v10927_v19 = vpack.c.bf16 %v3109_v13, %v3105_v11  ;;  %v2583_v20 = vpop.f32.mrb[8].mxu0  ;;  %v3035_v21 = vpop.f32.mrb[8].mxu1  ;;  %3702 = vmatpush1.bf16.msra.mxu0 %v9234_v58  ;;  %v9243_v58 = vld [vmem:[%s12742_s4 + $0x140] ss:$8 sps:$4 sm:$0xff]  }
 0x1ea   : > { %v8252_v24 = vadd.f32 %v2583_v20, %v10858_v1  ;;  %v8284_v25 = vadd.f32 %v3035_v21, %v10861_v2  ;;  %v2585_v26 = vpop.f32.mrb[9].mxu0  ;;  %v3037_v27 = vpop.f32.mrb[9].mxu1  ;;  %3703 = vmatprep.subr.bf16.mxu0 %v9239_v9 }
 0x1eb   : > { %v8253_v29 = vadd.f32 %v2585_v26, %v10864_v3  ;;  %v8285_v30 = vadd.f32 %v3037_v27, %v10867_v4  ;;  %v2587_v31 = vpop.f32.mrb[10].mxu0  ;;  %v3039_v32 = vpop.f32.mrb[10].mxu1  ;;  %3628 = vmatprep.mubr.bf16.mxu0 %v3163_v18  ;;  %v9251_v27 = vld [vmem:[%s12742_s4 + $0x164] ss:$8 sps:$4 sm:$0xff]  }
 0x1ec   : > { %v8254_v33 = vadd.f32 %v2587_v31, %v10858_v1  ;;  %v8286_v35 = vadd.f32 %v3039_v32, %v10861_v2  ;;  %v2589_v36 = vpop.f32.mrb[11].mxu0  ;;  %v3041_v38 = vpop.f32.mrb[11].mxu1  ;;  %3629 = vmatmul.mubr.bf16.gmra.mrb[36].mxu0 %v3162_v14  ;;  %v3110_v43 = vmax.f32 %v8252_v24, 0.0  ;;  %v3112_v44 = vmax.f32 %v8284_v25, 0.0 }
 0x1ed   : > { %v8255_v40 = vadd.f32 %v2589_v36, %v10864_v3  ;;  %v8287_v41 = vadd.f32 %v3041_v38, %v10867_v4  ;;  %3704 = vmatpush1.bf16.msra.mxu0 %v9237_v22  ;;  %v3111_v48 = vmax.f32 %v8253_v29, 0.0  ;;  %v3113_v49 = vmax.f32 %v8285_v30, 0.0  ;;  %v9246_v22 = vld [vmem:[%s12742_s4 + $0x150] ss:$8 sps:$4 sm:$0xff]  }
 0x1ee   : > { %v3114_v45 = vmax.f32 %v8254_v33, 0.0  ;;  %v3116_v46 = vmax.f32 %v8286_v35, 0.0  ;;  %3705 = vmatprep.subr.bf16.mxu0 %v9242_v28 }
 0x1ef   : > { %v3115_v50 = vmax.f32 %v8255_v40, 0.0  ;;  %v3117_v51 = vmax.f32 %v8287_v41, 0.0  ;;  %v9249_v40 = vld [vmem:[%s12742_s4 + $0x160] ss:$8 sps:$4 sm:$0xff]  }
 0x1f0   : > { %v3166_v52 = vpack.c.bf16 %v3114_v45, %v3110_v43  ;;  %v10955_v53 = vpack.c.bf16 %v3116_v46, %v3112_v44  ;;  %v9254_v45 = vld [vmem:[%s12742_s4 + $0x174] ss:$8 sps:$4 sm:$0xff]  }
 0x1f1   : > { %v3167_v54 = vpack.c.bf16 %v3115_v50, %v3111_v48  ;;  %v10957_v55 = vpack.c.bf16 %v3117_v51, %v3113_v49  ;;  %v2593_v56 = vpop.f32.mrb[12].mxu0  ;;  %v3045_v57 = vpop.f32.mrb[12].mxu1  ;;  %3706 = vmatpush1.bf16.msra.mxu0 %v9240_v42 }
 0x1f2   : > { %v8256_v62 = vadd.f32 %v2593_v56, %v10858_v1  ;;  %v8288_v5 = vadd.f32 %v3045_v57, %v10861_v2  ;;  %v2595_v6 = vpop.f32.mrb[13].mxu0  ;;  %v3047_v7 = vpop.f32.mrb[13].mxu1  ;;  %3707 = vmatprep.subr.bf16.mxu0 %v9245_v47 }
 0x1f3   : > { %v8257_v9 = vadd.f32 %v2595_v6, %v10864_v3  ;;  %v8289_v10 = vadd.f32 %v3047_v7, %v10867_v4  ;;  %v2597_v11 = vpop.f32.mrb[14].mxu0  ;;  %v3049_v12 = vpop.f32.mrb[14].mxu1  ;;  %3638 = vmatprep.mubr.bf16.mxu0 %v3167_v54 }
 0x1f4   : > { %v8258_v13 = vadd.f32 %v2597_v11, %v10858_v1  ;;  %v8290_v14 = vadd.f32 %v3049_v12, %v10861_v2  ;;  %v2599_v16 = vpop.f32.mrb[15].mxu0  ;;  %v3051_v18 = vpop.f32.mrb[15].mxu1  ;;  %3639 = vmatmul.mubr.bf16.gmra.mrb[40].mxu0 %v3166_v52  ;;  %v3118_v23 = vmax.f32 %v8256_v62, 0.0  ;;  %v3120_v24 = vmax.f32 %v8288_v5, 0.0 }
 0x1f5   : > { %v8259_v20 = vadd.f32 %v2599_v16, %v10864_v3  ;;  %v8291_v21 = vadd.f32 %v3051_v18, %v10867_v4  ;;  %3708 = vmatpush1.bf16.msra.mxu0 %v9243_v58  ;;  %v3119_v28 = vmax.f32 %v8257_v9, 0.0  ;;  %v3121_v29 = vmax.f32 %v8289_v10, 0.0  ;;  %v9252_v58 = vld [vmem:[%s12742_s4 + $0x170] ss:$8 sps:$4 sm:$0xff]  }
 0x1f6   : > { %v3122_v25 = vmax.f32 %v8258_v13, 0.0  ;;  %v3124_v26 = vmax.f32 %v8290_v14, 0.0  ;;  %3709 = vmatprep.subr.bf16.mxu0 %v9248_v8  ;;  %v9257_v8 = vld [vmem:[%s12742_s4 + $0x184] ss:$8 sps:$4 sm:$0xff]  }
 0x1f7   : > { %v3123_v30 = vmax.f32 %v8259_v20, 0.0  ;;  %v3125_v31 = vmax.f32 %v8291_v21, 0.0 }
 0x1f8   : > { %v3170_v32 = vpack.c.bf16 %v3122_v25, %v3118_v23  ;;  %v10979_v33 = vpack.c.bf16 %v3124_v26, %v3120_v24 }
 0x1f9   : > { %v3171_v35 = vpack.c.bf16 %v3123_v30, %v3119_v28  ;;  %v10981_v36 = vpack.c.bf16 %v3125_v31, %v3121_v29  ;;  %v2603_v38 = vpop.f32.mrb[16].mxu0  ;;  %v3055_v39 = vpop.f32.mrb[16].mxu1  ;;  %3710 = vmatpush1.bf16.msra.mxu0 %v9246_v22  ;;  %v9255_v22 = vld [vmem:[%s12742_s4 + $0x180] ss:$8 sps:$4 sm:$0xff]  }
 0x1fa   : > { %v8260_v41 = vadd.f32 %v2603_v38, %v10858_v1  ;;  %v8292_v42 = vadd.f32 %v3055_v39, %v10861_v2  ;;  %v2605_v43 = vpop.f32.mrb[17].mxu0  ;;  %v3057_v44 = vpop.f32.mrb[17].mxu1  ;;  %3711 = vmatprep.subr.bf16.mxu0 %v9251_v27  ;;  %v9260_v27 = vld [vmem:[%s12742_s4 + $0x194] ss:$8 sps:$4 sm:$0xff]  }
 0x1fb   : > { %v8261_v46 = vadd.f32 %v2605_v43, %v10864_v3  ;;  %v8293_v47 = vadd.f32 %v3057_v44, %v10867_v4  ;;  %v2607_v48 = vpop.f32.mrb[18].mxu0  ;;  %v3059_v49 = vpop.f32.mrb[18].mxu1  ;;  %3648 = vmatprep.mubr.bf16.mxu0 %v3171_v35 }
 0x1fc   : > { %v8262_v50 = vadd.f32 %v2607_v48, %v10858_v1  ;;  %v8294_v51 = vadd.f32 %v3059_v49, %v10861_v2  ;;  %v2609_v52 = vpop.f32.mrb[19].mxu0  ;;  %v3061_v54 = vpop.f32.mrb[19].mxu1  ;;  %3649 = vmatmul.mubr.bf16.gmra.mrb[44].mxu0 %v3170_v32  ;;  %v3126_v62 = vmax.f32 %v8260_v41, 0.0  ;;  %v3128_v5 = vmax.f32 %v8292_v42, 0.0  ;;  %v9258_v42 = vld [vmem:[%s12742_s4 + $0x190] ss:$8 sps:$4 sm:$0xff]  }
 0x1fd   : > { %v8263_v56 = vadd.f32 %v2609_v52, %v10864_v3  ;;  %v8295_v57 = vadd.f32 %v3061_v54, %v10867_v4  ;;  %3712 = vmatpush1.bf16.msra.mxu0 %v9249_v40  ;;  %v3127_v9 = vmax.f32 %v8261_v46, 0.0  ;;  %v3129_v10 = vmax.f32 %v8293_v47, 0.0  ;;  %v9263_v47 = vld [vmem:[%s12742_s4 + $0x1a4] ss:$8 sps:$4 sm:$0xff]  }
 0x1fe   : > { %v3130_v6 = vmax.f32 %v8262_v50, 0.0  ;;  %v3132_v7 = vmax.f32 %v8294_v51, 0.0  ;;  %3713 = vmatprep.subr.bf16.mxu0 %v9254_v45 }
 0x1ff   : > { %v3131_v11 = vmax.f32 %v8263_v56, 0.0  ;;  %v3133_v12 = vmax.f32 %v8295_v57, 0.0 }
 0x200   : > { %v3174_v13 = vpack.c.bf16 %v3130_v6, %v3126_v62  ;;  %v11003_v14 = vpack.c.bf16 %v3132_v7, %v3128_v5  ;;  %v9261_v5 = vld [vmem:[%s12742_s4 + $0x1a0] ss:$8 sps:$4 sm:$0xff]  }
 0x201   : > { %v3175_v16 = vpack.c.bf16 %v3131_v11, %v3127_v9  ;;  %v11005_v18 = vpack.c.bf16 %v3133_v12, %v3129_v10  ;;  %v2613_v20 = vpop.f32.mrb[20].mxu0  ;;  %v3065_v21 = vpop.f32.mrb[20].mxu1  ;;  %3714 = vmatpush1.bf16.msra.mxu0 %v9252_v58  ;;  %v9266_v10 = vld [vmem:[%s12742_s4 + $0x1b4] ss:$8 sps:$4 sm:$0xff]  }
 0x202   : > { %v8264_v23 = vadd.f32 %v2613_v20, %v10858_v1  ;;  %v8296_v24 = vadd.f32 %v3065_v21, %v10861_v2  ;;  %v2615_v25 = vpop.f32.mrb[21].mxu0  ;;  %v3067_v26 = vpop.f32.mrb[21].mxu1  ;;  %3715 = vmatprep.subr.bf16.mxu0 %v9257_v8 }
 0x203   : > { %v8265_v28 = vadd.f32 %v2615_v25, %v10864_v3  ;;  %v8297_v29 = vadd.f32 %v3067_v26, %v10867_v4  ;;  %v2617_v30 = vpop.f32.mrb[22].mxu0  ;;  %v3069_v31 = vpop.f32.mrb[22].mxu1  ;;  %3658 = vmatprep.mubr.bf16.mxu0 %v3175_v16  ;;  %v9264_v26 = vld [vmem:[%s12742_s4 + $0x1b0] ss:$8 sps:$4 sm:$0xff]  }
 0x204   : > { %v8266_v32 = vadd.f32 %v2617_v30, %v10858_v1  ;;  %v8298_v35 = vadd.f32 %v3069_v31, %v10861_v2  ;;  %v2619_v38 = vpop.f32.mrb[23].mxu0  ;;  %v3071_v39 = vpop.f32.mrb[23].mxu1  ;;  %3659 = vmatmul.mubr.bf16.gmra.mrb[48].mxu0 %v3174_v13  ;;  %v3134_v43 = vmax.f32 %v8264_v23, 0.0  ;;  %v3136_v44 = vmax.f32 %v8296_v24, 0.0  ;;  %v9269_v31 = vld [vmem:[%s12742_s4 + $0x1c4] ss:$8 sps:$4 sm:$0xff]  }
 0x205   : > { %v8267_v40 = vadd.f32 %v2619_v38, %v10864_v3  ;;  %v8299_v41 = vadd.f32 %v3071_v39, %v10867_v4  ;;  %3716 = vmatpush1.bf16.msra.mxu0 %v9255_v22  ;;  %v3135_v48 = vmax.f32 %v8265_v28, 0.0  ;;  %v3137_v49 = vmax.f32 %v8297_v29, 0.0 }
 0x206   : > { %v3138_v45 = vmax.f32 %v8266_v32, 0.0  ;;  %v3140_v46 = vmax.f32 %v8298_v35, 0.0  ;;  %3717 = vmatprep.subr.bf16.mxu0 %v9260_v27 }
 0x207   : > { %v3139_v50 = vmax.f32 %v8267_v40, 0.0  ;;  %v3141_v51 = vmax.f32 %v8299_v41, 0.0 }
 0x208   : > { %v3178_v52 = vpack.c.bf16 %v3138_v45, %v3134_v43  ;;  %v11027_v54 = vpack.c.bf16 %v3140_v46, %v3136_v44  ;;  %v9267_v46 = vld [vmem:[%s12742_s4 + $0x1c0] ss:$8 sps:$4 sm:$0xff]  }
 0x209   : > { %v3179_v56 = vpack.c.bf16 %v3139_v50, %v3135_v48  ;;  %v11029_v57 = vpack.c.bf16 %v3141_v51, %v3137_v49  ;;  %v2623_v58 = vpop.f32.mrb[24].mxu0  ;;  %v3075_v62 = vpop.f32.mrb[24].mxu1  ;;  %3718 = vmatpush1.bf16.msra.mxu0 %v9258_v42  ;;  %v9272_v51 = vld [vmem:[%s12742_s4 + $0x1d4] ss:$8 sps:$4 sm:$0xff]  }
 0x20a   : > { %v8268_v6 = vadd.f32 %v2623_v58, %v10858_v1  ;;  %v8300_v7 = vadd.f32 %v3075_v62, %v10861_v2  ;;  %v2625_v8 = vpop.f32.mrb[25].mxu0  ;;  %v3077_v9 = vpop.f32.mrb[25].mxu1  ;;  %3719 = vmatprep.subr.bf16.mxu0 %v9263_v47 }
 0x20b   : > { %v8269_v11 = vadd.f32 %v2625_v8, %v10864_v3  ;;  %v8301_v12 = vadd.f32 %v3077_v9, %v10867_v4  ;;  %v2627_v13 = vpop.f32.mrb[26].mxu0  ;;  %v3079_v16 = vpop.f32.mrb[26].mxu1  ;;  %3668 = vmatprep.mubr.bf16.mxu0 %v3179_v56 }
 0x20c   : > { %v8270_v20 = vadd.f32 %v2627_v13, %v10858_v1  ;;  %v8302_v21 = vadd.f32 %v3079_v16, %v10861_v2  ;;  %v2629_v22 = vpop.f32.mrb[27].mxu0  ;;  %v3081_v23 = vpop.f32.mrb[27].mxu1  ;;  %3669 = vmatmul.mubr.bf16.gmra.mrb[52].mxu0 %v3178_v52  ;;  %v3142_v27 = vmax.f32 %v8268_v6, 0.0  ;;  %v3144_v28 = vmax.f32 %v8300_v7, 0.0 }
 0x20d   : > { %v8271_v24 = vadd.f32 %v2629_v22, %v10864_v3  ;;  %v8303_v25 = vadd.f32 %v3081_v23, %v10867_v4  ;;  %3720 = vmatpush1.bf16.msra.mxu0 %v9261_v5  ;;  %v3143_v32 = vmax.f32 %v8269_v11, 0.0  ;;  %v3145_v35 = vmax.f32 %v8301_v12, 0.0  ;;  %v9270_v11 = vld [vmem:[%s12742_s4 + $0x1d0] ss:$8 sps:$4 sm:$0xff]  }
 0x20e   : > { %v3146_v29 = vmax.f32 %v8270_v20, 0.0  ;;  %v3148_v30 = vmax.f32 %v8302_v21, 0.0  ;;  %3721 = vmatprep.subr.bf16.mxu0 %v9266_v10 }
 0x20f   : > { %v3147_v38 = vmax.f32 %v8271_v24, 0.0  ;;  %v3149_v39 = vmax.f32 %v8303_v25, 0.0 }
 0x210   : > { %v3182_v40 = vpack.c.bf16 %v3146_v29, %v3142_v27  ;;  %v11051_v41 = vpack.c.bf16 %v3148_v30, %v3144_v28  ;;  %v9278_v27 = vld [vmem:[%s12742_s4 + $0x1f4] ss:$8 sps:$4 sm:$0xff]   ;;  %v9276_v28 = vld [vmem:[%s12742_s4 + $0x1f0] ss:$8 sps:$4 sm:$0xff]  }
 0x211   : > { %v3183_v42 = vpack.c.bf16 %v3147_v38, %v3143_v32  ;;  %v3185_v43 = vpack.c.bf16 %v3149_v39, %v3145_v35  ;;  %v2633_v44 = vpop.f32.mrb[28].mxu0  ;;  %v3085_v45 = vpop.f32.mrb[28].mxu1  ;;  %3722 = vmatpush1.bf16.msra.mxu0 %v9264_v26  ;;  %v9273_v26 = vld [vmem:[%s12742_s4 + $0x1e0] ss:$8 sps:$4 sm:$0xff]  }
 0x212   : > { %v8272_v47 = vadd.f32 %v2633_v44, %v10858_v1  ;;  %v8304_v48 = vadd.f32 %v3085_v45, %v10861_v2  ;;  %v2635_v49 = vpop.f32.mrb[29].mxu0  ;;  %v3087_v50 = vpop.f32.mrb[29].mxu1  ;;  %3723 = vmatprep.subr.bf16.mxu0 %v9269_v31 }
 0x213   : > { %v8273_v52 = vadd.f32 %v2635_v49, %v10864_v3  ;;  %v8305_v56 = vadd.f32 %v3087_v50, %v10867_v4  ;;  %v2637_v58 = vpop.f32.mrb[30].mxu0  ;;  %v3089_v62 = vpop.f32.mrb[30].mxu1  ;;  %3678 = vmatprep.mubr.bf16.mxu0 %v3183_v42 }
 0x214   : > { %v8274_v5 = vadd.f32 %v2637_v58, %v10858_v1  ;;  %v8306_v6 = vadd.f32 %v3089_v62, %v10861_v2  ;;  %v2639_v7 = vpop.f32.mrb[31].mxu0  ;;  %v3091_v8 = vpop.f32.mrb[31].mxu1  ;;  %3679 = vmatmul.mubr.bf16.gmra.mrb[56].mxu0 %v3182_v40  ;;  %v3150_v12 = vmax.f32 %v8272_v47, 0.0  ;;  %v3152_v13 = vmax.f32 %v8304_v48, 0.0  ;;  %v9275_v1 = vld [vmem:[%s12742_s4 + $0x1e4] ss:$8 sps:$4 sm:$0xff]  }
 0x215   : > { %v8275_v9 = vadd.f32 %v2639_v7, %v10864_v3  ;;  %v8307_v10 = vadd.f32 %v3091_v8, %v10867_v4  ;;  %3724 = vmatpush1.bf16.msra.mxu0 %v9267_v46  ;;  %v3151_v2 = vmax.f32 %v8273_v52, 0.0  ;;  %v3153_v21 = vmax.f32 %v8305_v56, 0.0  ;;  %v3812_v58 = vld [vmem:[%s11163_s20] sm:$0xff] }
 0x216   : > { %v3154_v16 = vmax.f32 %v8274_v5, 0.0  ;;  %v3156_v20 = vmax.f32 %v8306_v6, 0.0  ;;  %3725 = vmatprep.subr.bf16.mxu0 %v9272_v51 }
 0x217   : > { %v3155_v22 = vmax.f32 %v8275_v9, 0.0  ;;  %v3157_v3 = vmax.f32 %v8307_v10, 0.0  ;;  %v3813_v9 = vld [vmem:[%s11163_s20 + $0x8] sm:$0xff] }
 0x218   : > { %v3186_v23 = vpack.c.bf16 %v3154_v16, %v3150_v12  ;;  %v3188_v4 = vpack.c.bf16 %v3156_v20, %v3152_v13  ;;  %v9327_v20 = vld [vmem:[%s12746_s8] ss:$28 sps:$4 sm:$0xff]  }
 0x219   : > { %v3187_v24 = vpack.c.bf16 %v3155_v22, %v3151_v2  ;;  %v3189_v25 = vpack.c.bf16 %v3157_v3, %v3153_v21  ;;  %3726 = vmatpush1.bf16.msra.mxu0 %v9270_v11 }
 0x21a   : > { %3727 = vmatprep.subr.bf16.mxu0 %v9275_v1  ;;  %v9329_v1 = vld [vmem:[%s12746_s8 + $0x4] ss:$28 sps:$4 sm:$0xff]  }
 0x21b   : > { %3688 = vmatprep.mubr.bf16.mxu0 %v3187_v24 }
 0x21c   : > { %3689 = vmatmul.mubr.bf16.gmra.mrb[60].mxu0 %v3186_v23 }
 0x21d   : > { %3728 = vmatpush1.bf16.msra.mxu0 %v9273_v26  ;;  %3731 = vmatprep.mubr.bf16.mxu0 %v10891_v37  ;;  %v9294_v37 = vld [vmem:[%s12744_s6 + $0xa0] ss:$16 sps:$4 sm:$0xff]   ;;  %v9333_v26 = vld [vmem:[%s12746_s8 + $0x38] ss:$28 sps:$4 sm:$0xff]  }
 0x21e   : > { %3729 = vmatprep.subr.bf16.mxu0 %v9278_v27 }
 0x221   : > { %3730 = vmatpush1.bf16.msra.mxu0 %v9276_v28  ;;  %v9341_v28 = vld [vmem:[%s12746_s8 + $0x74] ss:$28 sps:$4 sm:$0xff]  }
 0x222   : > { %5897 = vmatprep.subr.bf16.mxu0 %v9329_v1 }
 0x224   : > { %3732 = vmatmul.mubr.bf16.vlgmr.msra.gmra.mrb[32].mxu0 %v10886_v34  ;;  %v9296_v34 = vld [vmem:[%s12744_s6 + $0xa4] ss:$16 sps:$4 sm:$0xff]  }
 0x225   : > { %3741 = vmatprep.mubr.bf16.mxu0 %v10927_v19  ;;  %4140 = vmatprep.subr.bf16.mxu1 %v9296_v34  ;;  %v9297_v19 = vld [vmem:[%s12744_s6 + $0xc0] ss:$16 sps:$4 sm:$0xff]  }
 0x226   : > { %4141 = vmatpush1.bf16.msra.mxu1 %v9294_v37  ;;  %5898 = vmatpush1.bf16.msra.mxu0 %v9327_v20  ;;  %v9351_v20 = vld [vmem:[%s12746_s8 + $0xe0] ss:$28 sps:$4 sm:$0xff]  }
 0x22c   : > { %3742 = vmatmul.mubr.bf16.gmra.mrb[36].mxu0 %v10922_v15  ;;  %v9299_v15 = vld [vmem:[%s12744_s6 + $0xc4] ss:$16 sps:$4 sm:$0xff]  }
 0x22d   : > { %3751 = vmatprep.mubr.bf16.mxu0 %v10957_v55  ;;  %4142 = vmatprep.subr.bf16.mxu1 %v9299_v15  ;;  %v9300_v55 = vld [vmem:[%s12744_s6 + $0xe0] ss:$16 sps:$4 sm:$0xff]   ;;  %v9303_v15 = vld [vmem:[%s12744_s6 + $0x8] ss:$16 sps:$4 sm:$0xff]  }
 0x22e   : > { %4143 = vmatpush1.bf16.msra.mxu1 %v9297_v19  ;;  %v3814_v19 = vld [vmem:[%s11163_s20 + $0x10] sm:$0xff] }
 0x234   : > { %3752 = vmatmul.mubr.bf16.gmra.mrb[40].mxu0 %v10955_v53  ;;  %v9302_v53 = vld [vmem:[%s12744_s6 + $0xe4] ss:$16 sps:$4 sm:$0xff]  }
 0x235   : > { %3761 = vmatprep.mubr.bf16.mxu0 %v10981_v36  ;;  %4144 = vmatprep.subr.bf16.mxu1 %v9302_v53  ;;  %v3254_v36 = vld [vmem:[%s12743_s5] sm:$0x3] }
 0x236   : > { %4145 = vmatpush1.bf16.msra.mxu1 %v9300_v55 }
 0x23c   : > { %3762 = vmatmul.mubr.bf16.gmra.mrb[44].mxu0 %v10979_v33  ;;  %v9305_v33 = vld [vmem:[%s12744_s6 + $0xc] ss:$16 sps:$4 sm:$0xff]  }
 0x23d   : > { %3771 = vmatprep.mubr.bf16.mxu0 %v11005_v18  ;;  %4243 = vmatprep.subr.bf16.mxu1 %v9305_v33  ;;  %v11126_v18 = vrot.slane %v3254_v36, %v10852_v63 }
 0x244   : > { %3772 = vmatmul.mubr.bf16.gmra.mrb[48].mxu0 %v11003_v14  ;;  %v11123_v14 = vrot.slane %v3254_v36, %v10843_v60  ;;  %v9308_v36 = vld [vmem:[%s12744_s6 + $0x2c] ss:$16 sps:$4 sm:$0xff]  }
 0x245   : > { %3781 = vmatprep.mubr.bf16.mxu0 %v11029_v57 }
 0x24c   : > { %3782 = vmatmul.mubr.bf16.gmra.mrb[52].mxu0 %v11027_v54 }
 0x24d   : > { %3791 = vmatprep.mubr.bf16.mxu0 %v3185_v43 }
 0x254   : > { %3792 = vmatmul.mubr.bf16.gmra.mrb[56].mxu0 %v11051_v41 }
 0x255   : > { %3801 = vmatprep.mubr.bf16.mxu0 %v3189_v25 }
 0x25c   : > { %3802 = vmatmul.mubr.bf16.gmra.mrb[60].mxu0 %v3188_v4  ;;  %v9335_v4 = vld [vmem:[%s12746_s8 + $0x3c] ss:$28 sps:$4 sm:$0xff]  }
 0x25d   : > { %5899 = vmatprep.subr.bf16.mxu0 %v9335_v4 }
 0x25e   : > { %5900 = vmatpush1.bf16.msra.mxu0 %v9333_v26 }
 0x25f   : > { %5901 = vmatprep.subr.bf16.mxu0 %v9341_v28 }
 0x2f7   : > { %v3733_v54 = vpop.f32.mrb[32].mxu0 }
 0x2f8   : > { %v8308_v57 = vadd.f32 %v3733_v54, %v11123_v14  ;;  %v3735_v29 = vpop.f32.mrb[33].mxu0 }
 0x2f9   : > { %v8309_v30 = vadd.f32 %v3735_v29, %v11126_v18  ;;  %v3737_v31 = vpop.f32.mrb[34].mxu0 }
 0x2fa   : > { %7329 = vst [vmem:[%s11132_s13] sm:$0xff] %v8308_v57  ;;  %v8310_v32 = vadd.f32 %v3737_v31, %v11123_v14  ;;  %v3739_v35 = vpop.f32.mrb[35].mxu0  ;;  %v9339_v31 = vld [vmem:[%s12746_s8 + $0x70] ss:$28 sps:$4 sm:$0xff]  }
 0x2fb   : > { %v3828_v38 = vmul.f32 0.5, %v8309_v30  ;;  %7345 = vst [vmem:[%s11139_s16] sm:$0xff] %v8309_v30  ;;  %v8311_v39 = vadd.f32 %v3739_v35, %v11126_v18  ;;  %v3815_v30 = vld [vmem:[%s11163_s20 + $0x18] sm:$0xff]  ;;  %5902 = vmatpush1.bf16.msra.mxu0 %v9339_v31 }
 0x2fc   : > { %7330 = vst [vmem:[%s11132_s13 + $0x8] sm:$0xff] %v8310_v32 }
 0x2fd   : > { %v3844_v40 = vmul.f32 1.442695, %v3828_v38  ;;  %v3829_v41 = vmul.f32 0.5, %v8311_v39  ;;  %7346 = vst [vmem:[%s11139_s16 + $0x8] sm:$0xff] %v8311_v39  ;;  %v9347_v39 = vld [vmem:[%s12746_s8 + $0xac] ss:$28 sps:$4 sm:$0xff]  }
 0x2fe   : > { %5903 = vmatprep.subr.bf16.mxu0 %v9347_v39  ;;  %v3819_v39 = vld [vmem:[%s11163_s20 + $0x38] sm:$0xff] }
 0x2ff   : > { %9647 = vpow2.f32 %v3844_v40  ;;  %v3846_v42 = vmul.f32 1.442695, %v3829_v41  ;;  %v3743_v43 = vpop.f32.mrb[36].mxu0 }
 0x300   : > { %v11149_v44 = vadd.f32 %v3743_v43, %v11123_v14  ;;  %v3745_v45 = vpop.f32.mrb[37].mxu0  ;;  %v9306_v43 = vld [vmem:[%s12744_s6 + $0x28] ss:$16 sps:$4 sm:$0xff]  }
 0x301   : > { %9649 = vpow2.f32 %v3846_v42  ;;  %v8313_v46 = vadd.f32 %v3745_v45, %v11126_v18  ;;  %v3747_v47 = vpop.f32.mrb[38].mxu0 }
 0x302   : > { %7331 = vst [vmem:[%s11132_s13 + $0x10] sm:$0xff] %v11149_v44  ;;  %v11155_v48 = vadd.f32 %v3747_v47, %v11123_v14  ;;  %v3749_v49 = vpop.f32.mrb[39].mxu0  ;;  %v9311_v47 = vld [vmem:[%s12744_s6 + $0x4c] ss:$16 sps:$4 sm:$0xff]  }
 0x303   : > { %v3830_v50 = vmul.f32 0.5, %v8313_v46  ;;  %7347 = vst [vmem:[%s11139_s16 + $0x10] sm:$0xff] %v8313_v46  ;;  %v8315_v51 = vadd.f32 %v3749_v49, %v11126_v18 }
 0x304   : > { %7332 = vst [vmem:[%s11132_s13 + $0x18] sm:$0xff] %v11155_v48 }
 0x305   : > { %v3848_v52 = vmul.f32 1.442695, %v3830_v50  ;;  %v3831_v56 = vmul.f32 0.5, %v8315_v51  ;;  %7348 = vst [vmem:[%s11139_s16 + $0x18] sm:$0xff] %v8315_v51  ;;  %v9345_v51 = vld [vmem:[%s12746_s8 + $0xa8] ss:$28 sps:$4 sm:$0xff]  }
 0x306   : > { %5904 = vmatpush1.bf16.msra.mxu0 %v9345_v51 }
 0x307   : > { %9651 = vpow2.f32 %v3848_v52  ;;  %v3850_v62 = vmul.f32 1.442695, %v3831_v56  ;;  %v3753_v5 = vpop.f32.mrb[40].mxu0 }
 0x308   : > { %v11170_v6 = vadd.f32 %v3753_v5, %v11123_v14  ;;  %v3755_v7 = vpop.f32.mrb[41].mxu0  ;;  %v9309_v5 = vld [vmem:[%s12744_s6 + $0x48] ss:$16 sps:$4 sm:$0xff]  }
 0x309   : > { %v9648_v8 = vpop.eup %9647  ;;  %9653 = vpow2.f32 %v3850_v62  ;;  %v8317_v10 = vadd.f32 %v3755_v7, %v11126_v18  ;;  %v3757_v11 = vpop.f32.mrb[42].mxu0  ;;  %v3816_v62 = vld [vmem:[%s11163_s20 + $0x20] sm:$0xff] }
 0x30a   : > { %v3876_v12 = vmul.f32 %v9648_v8, %v3812_v58  ;;  %7333 = vst [vmem:[%s11132_s13 + $0x20] sm:$0xff] %v11170_v6  ;;  %v11177_v13 = vadd.f32 %v3757_v11, %v11123_v14  ;;  %v3759_v16 = vpop.f32.mrb[43].mxu0 }
 0x30b   : > { %v9650_v2 = vpop.eup %9649  ;;  %v3832_v21 = vmul.f32 0.5, %v8317_v10  ;;  %7349 = vst [vmem:[%s11139_s16 + $0x20] sm:$0xff] %v8317_v10  ;;  %v8319_v22 = vadd.f32 %v3759_v16, %v11126_v18  ;;  %v3817_v16 = vld [vmem:[%s11163_s20 + $0x28] sm:$0xff] }
 0x30c   : > { %v3877_v3 = vmul.f32 %v9650_v2, %v3813_v9  ;;  %7334 = vst [vmem:[%s11132_s13 + $0x28] sm:$0xff] %v11177_v13  ;;  %v3892_v23 = vadd.f32 %v8308_v57, %v3876_v12  ;;  %v9314_v9 = vld [vmem:[%s12744_s6 + $0x6c] ss:$16 sps:$4 sm:$0xff]  }
 0x30d   : > { %v3852_v24 = vmul.f32 1.442695, %v3832_v21  ;;  %v3833_v25 = vmul.f32 0.5, %v8319_v22  ;;  %7350 = vst [vmem:[%s11139_s16 + $0x28] sm:$0xff] %v8319_v22  ;;  %v9359_v22 = vld [vmem:[%s12746_s8 + $0x11c] ss:$28 sps:$4 sm:$0xff]  }
 0x30e   : > { %v3893_v27 = vadd.f32 %v8310_v32, %v3877_v3 }
 0x30f   : > { %9655 = vpow2.f32 %v3852_v24  ;;  %v3854_v34 = vmul.f32 1.442695, %v3833_v25  ;;  %v3763_v37 = vpop.f32.mrb[44].mxu0  ;;  %v9312_v24 = vld [vmem:[%s12744_s6 + $0x68] ss:$16 sps:$4 sm:$0xff]  }
 0x310   : > { %v11204_v53 = vadd.f32 %v3763_v37, %v11123_v14  ;;  %v3765_v55 = vpop.f32.mrb[45].mxu0  ;;  %v11206_v33 = vpack.c.bf16 %v3893_v27, %v3892_v23  ;;  %v9317_v27 = vld [vmem:[%s12744_s6 + $0x8c] ss:$16 sps:$4 sm:$0xff]   ;;  %v9357_v37 = vld [vmem:[%s12746_s8 + $0x118] ss:$28 sps:$4 sm:$0xff]  }
 0x311   : > { %v9652_v54 = vpop.eup %9651  ;;  %9657 = vpow2.f32 %v3854_v34  ;;  %v8321_v57 = vadd.f32 %v3765_v55, %v11126_v18  ;;  %v3767_v29 = vpop.f32.mrb[46].mxu0 }
 0x312   : > { %7335 = vst [vmem:[%s11132_s13 + $0x30] sm:$0xff] %v11204_v53  ;;  %v11219_v32 = vadd.f32 %v3767_v29, %v11123_v14  ;;  %v3769_v35 = vpop.f32.mrb[47].mxu0  ;;  %4163 = vmatmul.mubr.bf16.vlgmr.msra.gmra.mrb[32].mxu1 %v11206_v33  ;;  %v3878_v38 = vmul.f32 %v9652_v54, %v3814_v19  ;;  %v9315_v54 = vld [vmem:[%s12744_s6 + $0x88] ss:$16 sps:$4 sm:$0xff]  }
 0x313   : > { %v9654_v40 = vpop.eup %9653  ;;  %v3834_v41 = vmul.f32 0.5, %v8321_v57  ;;  %7351 = vst [vmem:[%s11139_s16 + $0x30] sm:$0xff] %v8321_v57  ;;  %v8323_v42 = vadd.f32 %v3769_v35, %v11126_v18  ;;  %4244 = vmatpush1.bf16.msra.mxu1 %v9303_v15  ;;  %4172 = vmatprep.mubr.bf16.mxu1 %v9912_v17 }
 0x314   : > { %7336 = vst [vmem:[%s11132_s13 + $0x38] sm:$0xff] %v11219_v32  ;;  %v3879_v45 = vmul.f32 %v9654_v40, %v3815_v30  ;;  %v3894_v46 = vadd.f32 %v11149_v44, %v3878_v38  ;;  %4245 = vmatprep.subr.bf16.mxu1 %v9308_v36  ;;  %v9353_v44 = vld [vmem:[%s12746_s8 + $0xe4] ss:$28 sps:$4 sm:$0xff]   ;;  %v3818_v36 = vld [vmem:[%s11163_s20 + $0x30] sm:$0xff]  ;;  %v9320_v30 = vld [vmem:[%s12744_s6 + $0xac] ss:$16 sps:$4 sm:$0xff]  }
 0x315   : > { %v3856_v49 = vmul.f32 1.442695, %v3834_v41  ;;  %v3835_v50 = vmul.f32 0.5, %v8323_v42  ;;  %7352 = vst [vmem:[%s11139_s16 + $0x38] sm:$0xff] %v8323_v42  ;;  %5905 = vmatprep.subr.bf16.mxu0 %v9353_v44  ;;  %v9363_v40 = vld [vmem:[%s12746_s8 + $0x150] ss:$28 sps:$4 sm:$0xff]  }
 0x316   : > { %v3895_v52 = vadd.f32 %v11155_v48, %v3879_v45  ;;  %5906 = vmatpush1.bf16.msra.mxu0 %v9351_v20  ;;  %v9371_v45 = vld [vmem:[%s12746_s8 + $0x18c] ss:$28 sps:$4 sm:$0xff]  }
 0x317   : > { %9659 = vpow2.f32 %v3856_v49  ;;  %v3858_v56 = vmul.f32 1.442695, %v3835_v50  ;;  %v3773_v58 = vpop.f32.mrb[48].mxu0  ;;  %4246 = vmatpush1.bf16.msra.mxu1 %v9306_v43  ;;  %5907 = vmatprep.subr.bf16.mxu0 %v9359_v22  ;;  %v9318_v50 = vld [vmem:[%s12744_s6 + $0xa8] ss:$16 sps:$4 sm:$0xff]  }
 0x318   : > { %v11250_v7 = vadd.f32 %v3773_v58, %v11123_v14  ;;  %v3775_v48 = vpop.f32.mrb[49].mxu0  ;;  %v11252_v8 = vpack.c.bf16 %v3895_v52, %v3894_v46  ;;  %4247 = vmatprep.subr.bf16.mxu1 %v9311_v47  ;;  %v9323_v44 = vld [vmem:[%s12744_s6 + $0xcc] ss:$16 sps:$4 sm:$0xff]  }
 0x319   : > { %v9656_v10 = vpop.eup %9655  ;;  %9661 = vpow2.f32 %v3858_v56  ;;  %v8325_v11 = vadd.f32 %v3775_v48, %v11126_v18  ;;  %v3777_v12 = vpop.f32.mrb[50].mxu0  ;;  %v9326_v20 = vld [vmem:[%s12744_s6 + $0xec] ss:$16 sps:$4 sm:$0xff]  }
 0x31a   : > { %7337 = vst [vmem:[%s11132_s13 + $0x40] sm:$0xff] %v11250_v7  ;;  %v11265_v1 = vadd.f32 %v3777_v12, %v11123_v14  ;;  %v3779_v2 = vpop.f32.mrb[51].mxu0  ;;  %4173 = vmatmul.mubr.bf16.gmra.mrb[36].mxu1 %v11252_v8  ;;  %v3880_v21 = vmul.f32 %v9656_v10, %v3816_v62  ;;  %5908 = vmatpush1.bf16.msra.mxu0 %v9357_v37  ;;  %v9369_v62 = vld [vmem:[%s12746_s8 + $0x188] ss:$28 sps:$4 sm:$0xff]  }
 0x31b   : > { %v9658_v3 = vpop.eup %9657  ;;  %v3836_v23 = vmul.f32 0.5, %v8325_v11  ;;  %7353 = vst [vmem:[%s11139_s16 + $0x40] sm:$0xff] %v8325_v11  ;;  %v8327_v4 = vadd.f32 %v3779_v2, %v11126_v18  ;;  %4182 = vmatprep.mubr.bf16.mxu1 %v9912_v17  ;;  %4248 = vmatpush1.bf16.msra.mxu1 %v9309_v5  ;;  %v3820_v10 = vld [vmem:[%s11163_s20 + $0x40] sm:$0xff]  ;;  %v9321_v11 = vld [vmem:[%s12744_s6 + $0xc8] ss:$16 sps:$4 sm:$0xff]  }
 0x31c   : > { %7338 = vst [vmem:[%s11132_s13 + $0x48] sm:$0xff] %v11265_v1  ;;  %v3881_v25 = vmul.f32 %v9658_v3, %v3817_v16  ;;  %v3896_v26 = vadd.f32 %v11170_v6, %v3880_v21  ;;  %4249 = vmatprep.subr.bf16.mxu1 %v9314_v9  ;;  %v9365_v6 = vld [vmem:[%s12746_s8 + $0x154] ss:$28 sps:$4 sm:$0xff]   ;;  %v3821_v3 = vld [vmem:[%s11163_s20 + $0x48] sm:$0xff] }
 0x31d   : > { %v3860_v28 = vmul.f32 1.442695, %v3836_v23  ;;  %v3837_v34 = vmul.f32 0.5, %v8327_v4  ;;  %7354 = vst [vmem:[%s11139_s16 + $0x48] sm:$0xff] %v8327_v4  ;;  %5909 = vmatprep.subr.bf16.mxu0 %v9365_v6  ;;  %v9375_v23 = vld [vmem:[%s12746_s8 + $0x1c0] ss:$28 sps:$4 sm:$0xff]  }
 0x31e   : > { %v3897_v15 = vadd.f32 %v11177_v13, %v3881_v25  ;;  %5910 = vmatpush1.bf16.msra.mxu0 %v9363_v40  ;;  %v9324_v37 = vld [vmem:[%s12744_s6 + $0xe8] ss:$16 sps:$4 sm:$0xff]  }
 0x31f   : > { %9663 = vpow2.f32 %v3860_v28  ;;  %v3862_v19 = vmul.f32 1.442695, %v3837_v34  ;;  %v3783_v55 = vpop.f32.mrb[52].mxu0  ;;  %4250 = vmatpush1.bf16.msra.mxu1 %v9312_v24  ;;  %5911 = vmatprep.subr.bf16.mxu0 %v9371_v45  ;;  %v3823_v45 = vld [vmem:[%s11163_s20 + $0x58] sm:$0xff] }
 0x320   : > { %v11296_v57 = vadd.f32 %v3783_v55, %v11123_v14  ;;  %v3785_v13 = vpop.f32.mrb[53].mxu0  ;;  %v11298_v29 = vpack.c.bf16 %v3897_v15, %v3896_v26  ;;  %4251 = vmatprep.subr.bf16.mxu1 %v9317_v27  ;;  %v9383_v26 = vld [vmem:[%s12746_s8 + $0x1fc] ss:$28 sps:$4 sm:$0xff]  }
 0x321   : > { %v9660_v31 = vpop.eup %9659  ;;  %9665 = vpow2.f32 %v3862_v19  ;;  %v8329_v35 = vadd.f32 %v3785_v13, %v11126_v18  ;;  %v3787_v38 = vpop.f32.mrb[54].mxu0  ;;  %v9332_v19 = vld [vmem:[%s12746_s8 + $0xc] ss:$28 sps:$4 sm:$0xff]  }
 0x322   : > { %7339 = vst [vmem:[%s11132_s13 + $0x50] sm:$0xff] %v11296_v57  ;;  %v11311_v41 = vadd.f32 %v3787_v38, %v11123_v14  ;;  %v3789_v42 = vpop.f32.mrb[55].mxu0  ;;  %4183 = vmatmul.mubr.bf16.gmra.mrb[40].mxu1 %v11298_v29  ;;  %v3882_v43 = vmul.f32 %v9660_v31, %v3818_v36  ;;  %5912 = vmatpush1.bf16.msra.mxu0 %v9369_v62 }
 0x323   : > { %v9662_v46 = vpop.eup %9661  ;;  %v3838_v47 = vmul.f32 0.5, %v8329_v35  ;;  %7355 = vst [vmem:[%s11139_s16 + $0x50] sm:$0xff] %v8329_v35  ;;  %v8331_v49 = vadd.f32 %v3789_v42, %v11126_v18  ;;  %4192 = vmatprep.mubr.bf16.mxu1 %v9912_v17  ;;  %4252 = vmatpush1.bf16.msra.mxu1 %v9315_v54  ;;  %v9381_v54 = vld [vmem:[%s12746_s8 + $0x1f8] ss:$28 sps:$4 sm:$0xff]  }
 0x324   : > { %7340 = vst [vmem:[%s11132_s13 + $0x58] sm:$0xff] %v11311_v41  ;;  %v3883_v51 = vmul.f32 %v9662_v46, %v3819_v39  ;;  %v3898_v52 = vadd.f32 %v11204_v53, %v3882_v43  ;;  %4253 = vmatprep.subr.bf16.mxu1 %v9320_v30  ;;  %v9377_v53 = vld [vmem:[%s12746_s8 + $0x1c4] ss:$28 sps:$4 sm:$0xff]   ;;  %v3822_v35 = vld [vmem:[%s11163_s20 + $0x50] sm:$0xff] }
 0x325   : > { %v3864_v56 = vmul.f32 1.442695, %v3838_v47  ;;  %v3839_v58 = vmul.f32 0.5, %v8331_v49  ;;  %7356 = vst [vmem:[%s11139_s16 + $0x58] sm:$0xff] %v8331_v49  ;;  %5913 = vmatprep.subr.bf16.mxu0 %v9377_v53  ;;  %v9387_v46 = vld [vmem:[%s12746_s8 + $0x230] ss:$28 sps:$4 sm:$0xff]  }
 0x326   : > { %v3899_v5 = vadd.f32 %v11219_v32, %v3883_v51  ;;  %5914 = vmatpush1.bf16.msra.mxu0 %v9375_v23  ;;  %v9395_v51 = vld [vmem:[%s12746_s8 + $0x26c] ss:$28 sps:$4 sm:$0xff]   ;;  %v9405_v23 = vld [vmem:[%s12746_s8 + $0x2d8] ss:$28 sps:$4 sm:$0xff]  }
 0x327   : > { %9667 = vpow2.f32 %v3864_v56  ;;  %v3866_v48 = vmul.f32 1.442695, %v3839_v58  ;;  %v3793_v9 = vpop.f32.mrb[56].mxu0  ;;  %4254 = vmatpush1.bf16.msra.mxu1 %v9318_v50  ;;  %5915 = vmatprep.subr.bf16.mxu0 %v9383_v26  ;;  %v9393_v53 = vld [vmem:[%s12746_s8 + $0x268] ss:$28 sps:$4 sm:$0xff]  }
 0x328   : > { %v11342_v12 = vadd.f32 %v3793_v9, %v11123_v14  ;;  %v3795_v32 = vpop.f32.mrb[57].mxu0  ;;  %v11344_v16 = vpack.c.bf16 %v3899_v5, %v3898_v52  ;;  %4255 = vmatprep.subr.bf16.mxu1 %v9323_v44 }
 0x329   : > { %v9664_v2 = vpop.eup %9663  ;;  %9669 = vpow2.f32 %v3866_v48  ;;  %v8333_v21 = vadd.f32 %v3795_v32, %v11126_v18  ;;  %v3797_v22 = vpop.f32.mrb[58].mxu0  ;;  %v3825_v32 = vld [vmem:[%s11163_s20 + $0x68] sm:$0xff] }
 0x32a   : > { %7341 = vst [vmem:[%s11132_s13 + $0x60] sm:$0xff] %v11342_v12  ;;  %v11357_v4 = vadd.f32 %v3797_v22, %v11123_v14  ;;  %v3799_v24 = vpop.f32.mrb[59].mxu0  ;;  %4193 = vmatmul.mubr.bf16.gmra.mrb[44].mxu1 %v11344_v16  ;;  %v3884_v25 = vmul.f32 %v9664_v2, %v3820_v10  ;;  %5916 = vmatpush1.bf16.msra.mxu0 %v9381_v54  ;;  %v3824_v10 = vld [vmem:[%s11163_s20 + $0x60] sm:$0xff]  ;;  %v9407_v2 = vld [vmem:[%s12746_s8 + $0x2dc] ss:$28 sps:$4 sm:$0xff]  }
 0x32b   : > { %v9666_v27 = vpop.eup %9665  ;;  %v3840_v28 = vmul.f32 0.5, %v8333_v21  ;;  %7357 = vst [vmem:[%s11139_s16 + $0x60] sm:$0xff] %v8333_v21  ;;  %v8335_v34 = vadd.f32 %v3799_v24, %v11126_v18  ;;  %4202 = vmatprep.mubr.bf16.mxu1 %v9912_v17  ;;  %4256 = vmatpush1.bf16.msra.mxu1 %v9321_v11  ;;  %v9344_v54 = vld [vmem:[%s12746_s8 + $0x7c] ss:$28 sps:$4 sm:$0xff]  }
 0x32c   : > { %7342 = vst [vmem:[%s11132_s13 + $0x68] sm:$0xff] %v11357_v4  ;;  %v3885_v15 = vmul.f32 %v9666_v27, %v3821_v3  ;;  %v3900_v6 = vadd.f32 %v11250_v7, %v3884_v25  ;;  %4257 = vmatprep.subr.bf16.mxu1 %v9326_v20  ;;  %v9389_v7 = vld [vmem:[%s12746_s8 + $0x234] ss:$28 sps:$4 sm:$0xff]   ;;  %v9399_v20 = vld [vmem:[%s12746_s8 + $0x2a0] ss:$28 sps:$4 sm:$0xff]  }
 0x32d   : > { %v3868_v55 = vmul.f32 1.442695, %v3840_v28  ;;  %v3841_v36 = vmul.f32 0.5, %v8335_v34  ;;  %7358 = vst [vmem:[%s11139_s16 + $0x68] sm:$0xff] %v8335_v34  ;;  %5917 = vmatprep.subr.bf16.mxu0 %v9389_v7  ;;  %v3826_v25 = vld [vmem:[%s11163_s20 + $0x70] sm:$0xff]  ;;  %v3827_v28 = vld [vmem:[%s11163_s20 + $0x78] sm:$0xff] }
 0x32e   : > { %v3901_v13 = vadd.f32 %v11265_v1, %v3885_v15  ;;  %5918 = vmatpush1.bf16.msra.mxu0 %v9387_v46  ;;  %v9348_v7 = vld [vmem:[%s12746_s8 + $0xb0] ss:$28 sps:$4 sm:$0xff]   ;;  %v9417_v46 = vld [vmem:[%s12746_s8 + $0x348] ss:$28 sps:$4 sm:$0xff]  }
 0x32f   : > { %9671 = vpow2.f32 %v3868_v55  ;;  %v3870_v30 = vmul.f32 1.442695, %v3841_v36  ;;  %v3803_v31 = vpop.f32.mrb[60].mxu0  ;;  %4258 = vmatpush1.bf16.msra.mxu1 %v9324_v37  ;;  %5919 = vmatprep.subr.bf16.mxu0 %v9395_v51  ;;  %v9338_v55 = vld [vmem:[%s12746_s8 + $0x44] ss:$28 sps:$4 sm:$0xff]  }
 0x330   : > { %v11385_v38 = vadd.f32 %v3803_v31, %v11123_v14  ;;  %v3805_v39 = vpop.f32.mrb[61].mxu0  ;;  %v11387_v40 = vpack.c.bf16 %v3901_v13, %v3900_v6  ;;  %6123 = vmatprep.subr.bf16.mxu1 %v9332_v19  ;;  %v9336_v36 = vld [vmem:[%s12746_s8 + $0x40] ss:$28 sps:$4 sm:$0xff]   ;;  %v9342_v13 = vld [vmem:[%s12746_s8 + $0x78] ss:$28 sps:$4 sm:$0xff]  }
 0x331   : > { %v9668_v1 = vpop.eup %9667  ;;  %9673 = vpow2.f32 %v3870_v30  ;;  %v8337_v42 = vadd.f32 %v3805_v39, %v11126_v18  ;;  %v3807_v43 = vpop.f32.mrb[62].mxu0  ;;  %v9356_v30 = vld [vmem:[%s12746_s8 + $0xec] ss:$28 sps:$4 sm:$0xff]   ;;  %v9413_v39 = vld [vmem:[%s12746_s8 + $0x314] ss:$28 sps:$4 sm:$0xff]  }
 0x332   : > { %7343 = vst [vmem:[%s11132_s13 + $0x70] sm:$0xff] %v11385_v38  ;;  %v8338_v47 = vadd.f32 %v3807_v43, %v11123_v14  ;;  %v3809_v49 = vpop.f32.mrb[63].mxu0  ;;  %4203 = vmatmul.mubr.bf16.gmra.mrb[48].mxu1 %v11387_v40  ;;  %v3886_v50 = vmul.f32 %v9668_v1, %v3822_v35  ;;  %5920 = vmatpush1.bf16.msra.mxu0 %v9393_v53  ;;  %v9354_v31 = vld [vmem:[%s12746_s8 + $0xe8] ss:$28 sps:$4 sm:$0xff]   ;;  %v9360_v35 = vld [vmem:[%s12746_s8 + $0x120] ss:$28 sps:$4 sm:$0xff]  }
 0x333   : > { %v9670_v52 = vpop.eup %9669  ;;  %v3842_v44 = vmul.f32 0.5, %v8337_v42  ;;  %7359 = vst [vmem:[%s11139_s16 + $0x70] sm:$0xff] %v8337_v42  ;;  %v8339_v56 = vadd.f32 %v3809_v49, %v11126_v18  ;;  %4212 = vmatprep.mubr.bf16.mxu1 %v9912_v17  ;;  %v9401_v18 = vld [vmem:[%s12746_s8 + $0x2a4] ss:$28 sps:$4 sm:$0xff]   ;;  %v9411_v1 = vld [vmem:[%s12746_s8 + $0x310] ss:$28 sps:$4 sm:$0xff]  }
 0x334   : > { %7344 = vst [vmem:[%s11132_s13 + $0x78] sm:$0xff] %v8338_v47  ;;  %v3887_v14 = vmul.f32 %v9670_v52, %v3823_v45  ;;  %v3902_v58 = vadd.f32 %v11296_v57, %v3886_v50  ;;  %5921 = vmatprep.subr.bf16.mxu0 %v9401_v18  ;;  %v9374_v42 = vld [vmem:[%s12746_s8 + $0x194] ss:$28 sps:$4 sm:$0xff]   ;;  %v9419_v43 = vld [vmem:[%s12746_s8 + $0x34c] ss:$28 sps:$4 sm:$0xff]   ;;  %s8757_s13 = smul.u32 56, %s12752_s17 }
 0x335   : > { %v3872_v62 = vmul.f32 1.442695, %v3842_v44  ;;  %v3843_v5 = vmul.f32 0.5, %v8339_v56  ;;  %7360 = vst [vmem:[%s11139_s16 + $0x78] sm:$0xff] %v8339_v56  ;;  %v9372_v45 = vld [vmem:[%s12746_s8 + $0x190] ss:$28 sps:$4 sm:$0xff]  }
 0x336   : > { %v3903_v48 = vadd.f32 %v11311_v41, %v3887_v14  ;;  %5922 = vmatpush1.bf16.msra.mxu0 %v9399_v20  ;;  %v9378_v49 = vld [vmem:[%s12746_s8 + $0x1c8] ss:$28 sps:$4 sm:$0xff]   ;;  %v9384_v51 = vld [vmem:[%s12746_s8 + $0x200] ss:$28 sps:$4 sm:$0xff]   ;;  %v9390_v44 = vld [vmem:[%s12746_s8 + $0x238] ss:$28 sps:$4 sm:$0xff]   ;;  %s12354_s22 = scalar_lea.vmem %s12748_s10, %s8757_s13 }
 0x337   : > { %9675 = vpow2.f32 %v3872_v62  ;;  %v3874_v9 = vmul.f32 1.442695, %v3843_v5  ;;  %5923 = vmatprep.subr.bf16.mxu0 %v9407_v2  ;;  %v9386_v50 = vld [vmem:[%s12746_s8 + $0x204] ss:$28 sps:$4 sm:$0xff]   ;;  %v9392_v52 = vld [vmem:[%s12746_s8 + $0x23c] ss:$28 sps:$4 sm:$0xff]  }
 0x338   : > { %v11415_v11 = vpack.c.bf16 %v3903_v48, %v3902_v58  ;;  %v9396_v56 = vld [vmem:[%s12746_s8 + $0x270] ss:$28 sps:$4 sm:$0xff]   ;;  %v9402_v58 = vld [vmem:[%s12746_s8 + $0x2a8] ss:$28 sps:$4 sm:$0xff]   ;;  %v9408_v5 = vld [vmem:[%s12746_s8 + $0x2e0] ss:$28 sps:$4 sm:$0xff]  }
 0x339   : > { %v9672_v57 = vpop.eup %9671  ;;  %9677 = vpow2.f32 %v3874_v9  ;;  %v9404_v14 = vld [vmem:[%s12746_s8 + $0x2ac] ss:$28 sps:$4 sm:$0xff]   ;;  %v9410_v62 = vld [vmem:[%s12746_s8 + $0x2e4] ss:$28 sps:$4 sm:$0xff]   ;;  %v9416_v53 = vld [vmem:[%s12746_s8 + $0x31c] ss:$28 sps:$4 sm:$0xff]  }
 0x33a   : > { %4213 = vmatmul.mubr.bf16.gmra.mrb[52].mxu1 %v11415_v11  ;;  %v3888_v41 = vmul.f32 %v9672_v57, %v3824_v10  ;;  %5924 = vmatpush1.bf16.msra.mxu0 %v9405_v23  ;;  %v9414_v48 = vld [vmem:[%s12746_s8 + $0x318] ss:$28 sps:$4 sm:$0xff]   ;;  %v9420_v18 = vld [vmem:[%s12746_s8 + $0x350] ss:$28 sps:$4 sm:$0xff]   ;;  %v11571_v10 = vld [vmem:[%s12745_s7] sm:$0xf] }
 0x33b   : > { %v9674_v21 = vpop.eup %9673  ;;  %4222 = vmatprep.mubr.bf16.mxu1 %v9912_v17  ;;  %5925 = vmatprep.subr.bf16.mxu0 %v9413_v39  ;;  %v9428_v9 = vld [vmem:[%s12746_s8 + $0x38c] ss:$28 sps:$4 sm:$0xff]   ;;  %v11579_v57 = vrot.slane %v11571_v10, %v10852_v63  ;;  %v9440_v39 = vld [vmem:[%s12746_s8 + $0x3fc] ss:$28 sps:$4 sm:$0xff]  }
 0x33c   : > { %v3889_v22 = vmul.f32 %v9674_v21, %v3825_v32  ;;  %v3904_v3 = vadd.f32 %v11342_v12, %v3888_v41 }
 0x33e   : > { %v3905_v24 = vadd.f32 %v11357_v4, %v3889_v22  ;;  %v9330_v4 = vld [vmem:[%s12746_s8 + $0x8] ss:$28 sps:$4 sm:$0xff]   ;;  %5926 = vmatpush1.bf16.msra.mxu0 %v9411_v1 }
 0x33f   : > { %5927 = vmatprep.subr.bf16.mxu0 %v9419_v43 }
 0x340   : > { %v11432_v26 = vpack.c.bf16 %v3905_v24, %v3904_v3 }
 0x341   : > { %v9676_v27 = vpop.eup %9675 }
 0x342   : > { %4223 = vmatmul.mubr.bf16.gmra.mrb[56].mxu1 %v11432_v26  ;;  %v3890_v34 = vmul.f32 %v9676_v27, %v3826_v25  ;;  %5928 = vmatpush1.bf16.msra.mxu0 %v9417_v46  ;;  %v9435_v46 = vld [vmem:[%s12746_s8 + $0x3f0] ss:$28 sps:$4 sm:$0xff]  }
 0x343   : > { %v9678_v37 = vpop.eup %9677  ;;  %4232 = vmatprep.mubr.bf16.mxu1 %v9912_v17 }
 0x344   : > { %v3891_v12 = vmul.f32 %v9678_v37, %v3827_v28  ;;  %v3906_v15 = vadd.f32 %v11385_v38, %v3890_v34  ;;  %v9368_v38 = vld [vmem:[%s12746_s8 + $0x15c] ss:$28 sps:$4 sm:$0xff]  }
 0x346   : > { %v3907_v6 = vadd.f32 %v8338_v47, %v3891_v12  ;;  %v9425_v47 = vld [vmem:[%s12746_s8 + $0x384] ss:$28 sps:$4 sm:$0xff]  }
 0x347   : > { %6010 = vmatprep.subr.bf16.mxu0 %v9425_v47  ;;  %v9423_v12 = vld [vmem:[%s12746_s8 + $0x380] ss:$28 sps:$4 sm:$0xff]  }
 0x348   : > { %v11438_v19 = vpack.c.bf16 %v3907_v6, %v3906_v15  ;;  %v9426_v15 = vld [vmem:[%s12746_s8 + $0x388] ss:$28 sps:$4 sm:$0xff]  }
 0x34a   : > { %4233 = vmatmul.mubr.bf16.gmra.mrb[60].mxu1 %v11438_v19 }
 0x34b   : > { %4275 = vmatprep.mubr.bf16.mxu1 %v9912_v17 }
 0x352   : > { %4276 = vmatmul.mubr.bf16.vlgmr.msra.gmra.mrb[64].mxu1 %v11206_v33  ;;  %v9350_v33 = vld [vmem:[%s12746_s8 + $0xb4] ss:$28 sps:$4 sm:$0xff]  }
 0x353   : > { %4285 = vmatprep.mubr.bf16.mxu1 %v9912_v17  ;;  %6124 = vmatpush1.bf16.msra.mxu1 %v9330_v4  ;;  %v9431_v4 = vld [vmem:[%s12746_s8 + $0x3bc] ss:$28 sps:$4 sm:$0xff]  }
 0x354   : > { %6125 = vmatprep.subr.bf16.mxu1 %v9338_v55  ;;  %v9434_v55 = vld [vmem:[%s12746_s8 + $0x3c4] ss:$28 sps:$4 sm:$0xff]  }
 0x357   : > { %6126 = vmatpush1.bf16.msra.mxu1 %v9336_v36 }
 0x358   : > { %6127 = vmatprep.subr.bf16.mxu1 %v9344_v54 }
 0x35a   : > { %4286 = vmatmul.mubr.bf16.gmra.mrb[68].mxu1 %v11252_v8  ;;  %v9362_v8 = vld [vmem:[%s12746_s8 + $0x124] ss:$28 sps:$4 sm:$0xff]  }
 0x35b   : > { %4295 = vmatprep.mubr.bf16.mxu1 %v9912_v17  ;;  %6128 = vmatpush1.bf16.msra.mxu1 %v9342_v13 }
 0x35c   : > { %6129 = vmatprep.subr.bf16.mxu1 %v9350_v33 }
 0x35f   : > { %6130 = vmatpush1.bf16.msra.mxu1 %v9348_v7 }
 0x360   : > { %6131 = vmatprep.subr.bf16.mxu1 %v9356_v30  ;;  %v9429_v30 = vld [vmem:[%s12746_s8 + $0x3b8] ss:$28 sps:$4 sm:$0xff]  }
 0x362   : > { %4296 = vmatmul.mubr.bf16.gmra.mrb[72].mxu1 %v11298_v29  ;;  %v9366_v29 = vld [vmem:[%s12746_s8 + $0x158] ss:$28 sps:$4 sm:$0xff]  }
 0x363   : > { %4305 = vmatprep.mubr.bf16.mxu1 %v9912_v17  ;;  %6132 = vmatpush1.bf16.msra.mxu1 %v9354_v31  ;;  %v9432_v31 = vld [vmem:[%s12746_s8 + $0x3c0] ss:$28 sps:$4 sm:$0xff]  }
 0x364   : > { %6133 = vmatprep.subr.bf16.mxu1 %v9362_v8 }
 0x367   : > { %6134 = vmatpush1.bf16.msra.mxu1 %v9360_v35 }
 0x368   : > { %6135 = vmatprep.subr.bf16.mxu1 %v9368_v38  ;;  %v9437_v38 = vld [vmem:[%s12746_s8 + $0x3f4] ss:$28 sps:$4 sm:$0xff]  }
 0x36a   : > { %4306 = vmatmul.mubr.bf16.gmra.mrb[76].mxu1 %v11344_v16  ;;  %v9380_v16 = vld [vmem:[%s12746_s8 + $0x1cc] ss:$28 sps:$4 sm:$0xff]  }
 0x36b   : > { %4315 = vmatprep.mubr.bf16.mxu1 %v9912_v17  ;;  %6136 = vmatpush1.bf16.msra.mxu1 %v9366_v29 }
 0x36c   : > { %6137 = vmatprep.subr.bf16.mxu1 %v9374_v42 }
 0x36f   : > { %6138 = vmatpush1.bf16.msra.mxu1 %v9372_v45 }
 0x370   : > { %6139 = vmatprep.subr.bf16.mxu1 %v9380_v16  ;;  %v9438_v16 = vld [vmem:[%s12746_s8 + $0x3f8] ss:$28 sps:$4 sm:$0xff]  }
 0x372   : > { %4316 = vmatmul.mubr.bf16.gmra.mrb[80].mxu1 %v11387_v40  ;;  %v9398_v40 = vld [vmem:[%s12746_s8 + $0x274] ss:$28 sps:$4 sm:$0xff]  }
 0x373   : > { %4325 = vmatprep.mubr.bf16.mxu1 %v9912_v17  ;;  %6140 = vmatpush1.bf16.msra.mxu1 %v9378_v49 }
 0x374   : > { %6141 = vmatprep.subr.bf16.mxu1 %v9386_v50  ;;  %v9443_v50 = vld [vmem:[%s12746_s8 + $0x42c] ss:$28 sps:$4 sm:$0xff]  }
 0x377   : > { %6142 = vmatpush1.bf16.msra.mxu1 %v9384_v51  ;;  %v9446_v51 = vld [vmem:[%s12746_s8 + $0x434] ss:$28 sps:$4 sm:$0xff]  }
 0x378   : > { %6143 = vmatprep.subr.bf16.mxu1 %v9392_v52 }
 0x37a   : > { %4326 = vmatmul.mubr.bf16.gmra.mrb[84].mxu1 %v11415_v11  ;;  %v11575_v11 = vrot.slane %v11571_v10, %v10843_v60 }
 0x37b   : > { %4335 = vmatprep.mubr.bf16.mxu1 %v9912_v17  ;;  %6144 = vmatpush1.bf16.msra.mxu1 %v9390_v44 }
 0x37c   : > { %6145 = vmatprep.subr.bf16.mxu1 %v9398_v40 }
 0x37f   : > { %6146 = vmatpush1.bf16.msra.mxu1 %v9396_v56 }
 0x380   : > { %6147 = vmatprep.subr.bf16.mxu1 %v9404_v14 }
 0x382   : > { %4336 = vmatmul.mubr.bf16.gmra.mrb[88].mxu1 %v11432_v26 }
 0x383   : > { %4345 = vmatprep.mubr.bf16.mxu1 %v9912_v17  ;;  %6148 = vmatpush1.bf16.msra.mxu1 %v9402_v58  ;;  %v9422_v17 = vld [vmem:[%s12746_s8 + $0x354] ss:$28 sps:$4 sm:$0xff]   ;;  %v9441_v58 = vld [vmem:[%s12746_s8 + $0x428] ss:$28 sps:$4 sm:$0xff]  }
 0x384   : > { %6149 = vmatprep.subr.bf16.mxu1 %v9410_v62  ;;  %v9444_v62 = vld [vmem:[%s12746_s8 + $0x430] ss:$28 sps:$4 sm:$0xff]  }
 0x387   : > { %6150 = vmatpush1.bf16.msra.mxu1 %v9408_v5 }
 0x388   : > { %6151 = vmatprep.subr.bf16.mxu1 %v9416_v53 }
 0x38a   : > { %4346 = vmatmul.mubr.bf16.gmra.mrb[92].mxu1 %v11438_v19 }
 0x38b   : > { %6152 = vmatpush1.bf16.msra.mxu1 %v9414_v48  ;;  %v9449_v48 = vld [vmem:[%s12746_s8 + $0x464] ss:$28 sps:$4 sm:$0xff]  }
 0x38c   : > { %6153 = vmatprep.subr.bf16.mxu1 %v9422_v17  ;;  %v9452_v17 = vld [vmem:[%s12746_s8 + $0x46c] ss:$28 sps:$4 sm:$0xff]  }
 0x38f   : > { %6154 = vmatpush1.bf16.msra.mxu1 %v9420_v18 }
 0x390   : > { %6236 = vmatprep.subr.bf16.mxu1 %v9428_v9 }
 0x3e5   : > { %v4164_v32 = vpop.f32.mrb[32].mxu1 }
 0x3e6   : > { %v4165_v20 = vadd.f32 %v4164_v32, %v11575_v11  ;;  %v4166_v41 = vpop.f32.mrb[33].mxu1 }
 0x3e7   : > { %v4167_v2 = vadd.f32 %v4166_v41, %v11579_v57  ;;  %v4168_v21 = vpop.f32.mrb[34].mxu1 }
 0x3e8   : > { %v4169_v22 = vadd.f32 %v4168_v21, %v11575_v11  ;;  %v4170_v3 = vpop.f32.mrb[35].mxu1  ;;  %v4356_v24 = vmax.f32 %v4165_v20, 0.0  ;;  %v9450_v21 = vld [vmem:[%s12746_s8 + $0x468] ss:$28 sps:$4 sm:$0xff]  }
 0x3e9   : > { %v4171_v23 = vadd.f32 %v4170_v3, %v11579_v57  ;;  %v4357_v26 = vmax.f32 %v4167_v2, 0.0  ;;  %v9447_v2 = vld [vmem:[%s12746_s8 + $0x460] ss:$28 sps:$4 sm:$0xff]  }
 0x3ea   : > { %v4360_v25 = vmax.f32 %v4169_v22, 0.0 }
 0x3eb   : > { %v4361_v27 = vmax.f32 %v4171_v23, 0.0  ;;  %v9455_v23 = vld [vmem:[%s12746_s8 + $0x49c] ss:$28 sps:$4 sm:$0xff]  }
 0x3ec   : > { %v11585_v28 = vpack.c.bf16 %v4360_v25, %v4356_v24  ;;  %v9458_v24 = vld [vmem:[%s12746_s8 + $0x4a4] ss:$28 sps:$4 sm:$0xff]  }
 0x3ed   : > { %v11587_v34 = vpack.c.bf16 %v4361_v27, %v4357_v26  ;;  %v4174_v37 = vpop.f32.mrb[36].mxu1 }
 0x3ee   : > { %v4175_v6 = vadd.f32 %v4174_v37, %v11575_v11  ;;  %v4176_v19 = vpop.f32.mrb[37].mxu1 }
 0x3ef   : > { %v4177_v36 = vadd.f32 %v4176_v19, %v11579_v57  ;;  %v4178_v54 = vpop.f32.mrb[38].mxu1  ;;  %5929 = vmatprep.mubr.bf16.mxu0 %v11587_v34  ;;  %6155 = vmatprep.mubr.bf16.mxu1 %v11587_v34 }
 0x3f0   : > { %v4179_v13 = vadd.f32 %v4178_v54, %v11575_v11  ;;  %v4180_v33 = vpop.f32.mrb[39].mxu1  ;;  %5930 = vmatmul.mubr.bf16.vlgmr.msra.gmra.mrb[64].mxu0 %v11585_v28  ;;  %6156 = vmatmul.mubr.bf16.vlgmr.msra.gmra.mrb[96].mxu1 %v11585_v28  ;;  %v4364_v8 = vmax.f32 %v4175_v6, 0.0  ;;  %v9456_v6 = vld [vmem:[%s12746_s8 + $0x4a0] ss:$28 sps:$4 sm:$0xff]  }
 0x3f1   : > { %v4181_v7 = vadd.f32 %v4180_v33, %v11579_v57  ;;  %6011 = vmatpush1.bf16.msra.mxu0 %v9423_v12  ;;  %6237 = vmatpush1.bf16.msra.mxu1 %v9426_v15  ;;  %v4365_v29 = vmax.f32 %v4177_v36, 0.0  ;;  %v9453_v15 = vld [vmem:[%s12746_s8 + $0x498] ss:$28 sps:$4 sm:$0xff]  }
 0x3f2   : > { %v4368_v35 = vmax.f32 %v4179_v13, 0.0  ;;  %6012 = vmatprep.subr.bf16.mxu0 %v9431_v4  ;;  %6238 = vmatprep.subr.bf16.mxu1 %v9434_v55  ;;  %v9461_v55 = vld [vmem:[%s12746_s8 + $0x4d4] ss:$28 sps:$4 sm:$0xff]   ;;  %v9464_v36 = vld [vmem:[%s12746_s8 + $0x4dc] ss:$28 sps:$4 sm:$0xff]  }
 0x3f3   : > { %v4369_v1 = vmax.f32 %v4181_v7, 0.0 }
 0x3f4   : > { %v11621_v42 = vpack.c.bf16 %v4368_v35, %v4364_v8  ;;  %v9462_v8 = vld [vmem:[%s12746_s8 + $0x4d8] ss:$28 sps:$4 sm:$0xff]  }
 0x3f5   : > { %v11623_v43 = vpack.c.bf16 %v4369_v1, %v4365_v29  ;;  %v4184_v45 = vpop.f32.mrb[40].mxu1  ;;  %6013 = vmatpush1.bf16.msra.mxu0 %v9429_v30  ;;  %6239 = vmatpush1.bf16.msra.mxu1 %v9432_v31  ;;  %v9459_v31 = vld [vmem:[%s12746_s8 + $0x4d0] ss:$28 sps:$4 sm:$0xff]  }
 0x3f6   : > { %v4185_v47 = vadd.f32 %v4184_v45, %v11575_v11  ;;  %v4186_v49 = vpop.f32.mrb[41].mxu1  ;;  %6014 = vmatprep.subr.bf16.mxu0 %v9437_v38  ;;  %6240 = vmatprep.subr.bf16.mxu1 %v9440_v39  ;;  %v9467_v39 = vld [vmem:[%s12746_s8 + $0x50c] ss:$28 sps:$4 sm:$0xff]   ;;  %v9470_v29 = vld [vmem:[%s12746_s8 + $0x514] ss:$28 sps:$4 sm:$0xff]  }
 0x3f7   : > { %v4187_v52 = vadd.f32 %v4186_v49, %v11579_v57  ;;  %v4188_v44 = vpop.f32.mrb[42].mxu1  ;;  %5939 = vmatprep.mubr.bf16.mxu0 %v11623_v43  ;;  %6165 = vmatprep.mubr.bf16.mxu1 %v11623_v43  ;;  %v9465_v49 = vld [vmem:[%s12746_s8 + $0x508] ss:$28 sps:$4 sm:$0xff]  }
 0x3f8   : > { %v4189_v40 = vadd.f32 %v4188_v44, %v11575_v11  ;;  %v4190_v56 = vpop.f32.mrb[43].mxu1  ;;  %5940 = vmatmul.mubr.bf16.gmra.mrb[68].mxu0 %v11621_v42  ;;  %6166 = vmatmul.mubr.bf16.gmra.mrb[100].mxu1 %v11621_v42  ;;  %v4372_v5 = vmax.f32 %v4185_v47, 0.0  ;;  %v9473_v44 = vld [vmem:[%s12746_s8 + $0x544] ss:$28 sps:$4 sm:$0xff]  }
 0x3f9   : > { %v4191_v14 = vadd.f32 %v4190_v56, %v11579_v57  ;;  %6015 = vmatpush1.bf16.msra.mxu0 %v9435_v46  ;;  %6241 = vmatpush1.bf16.msra.mxu1 %v9438_v16  ;;  %v4373_v18 = vmax.f32 %v4187_v52, 0.0 }
 0x3fa   : > { %v4376_v53 = vmax.f32 %v4189_v40, 0.0  ;;  %6016 = vmatprep.subr.bf16.mxu0 %v9443_v50  ;;  %6242 = vmatprep.subr.bf16.mxu1 %v9446_v51  ;;  %v9468_v50 = vld [vmem:[%s12746_s8 + $0x510] ss:$28 sps:$4 sm:$0xff]  }
 0x3fb   : > { %v4377_v9 = vmax.f32 %v4191_v14, 0.0  ;;  %v9476_v40 = vld [vmem:[%s12746_s8 + $0x54c] ss:$28 sps:$4 sm:$0xff]  }
 0x3fc   : > { %v11657_v32 = vpack.c.bf16 %v4376_v53, %v4372_v5  ;;  %v9471_v53 = vld [vmem:[%s12746_s8 + $0x540] ss:$28 sps:$4 sm:$0xff]  }
 0x3fd   : > { %v11659_v20 = vpack.c.bf16 %v4377_v9, %v4373_v18  ;;  %v4194_v41 = vpop.f32.mrb[44].mxu1  ;;  %6017 = vmatpush1.bf16.msra.mxu0 %v9441_v58  ;;  %6243 = vmatpush1.bf16.msra.mxu1 %v9444_v62  ;;  %v9479_v9 = vld [vmem:[%s12746_s8 + $0x57c] ss:$28 sps:$4 sm:$0xff]  }
 0x3fe   : > { %v4195_v22 = vadd.f32 %v4194_v41, %v11575_v11  ;;  %v4196_v3 = vpop.f32.mrb[45].mxu1  ;;  %6018 = vmatprep.subr.bf16.mxu0 %v9449_v48  ;;  %6244 = vmatprep.subr.bf16.mxu1 %v9452_v17  ;;  %v9474_v48 = vld [vmem:[%s12746_s8 + $0x548] ss:$28 sps:$4 sm:$0xff]  }
 0x3ff   : > { %v4197_v25 = vadd.f32 %v4196_v3, %v11579_v57  ;;  %v4198_v26 = vpop.f32.mrb[46].mxu1  ;;  %5949 = vmatprep.mubr.bf16.mxu0 %v11659_v20  ;;  %6175 = vmatprep.mubr.bf16.mxu1 %v11659_v20  ;;  %v9482_v41 = vld [vmem:[%s12746_s8 + $0x584] ss:$28 sps:$4 sm:$0xff]  }
 0x400   : > { %v4199_v27 = vadd.f32 %v4198_v26, %v11575_v11  ;;  %v4200_v37 = vpop.f32.mrb[47].mxu1  ;;  %5950 = vmatmul.mubr.bf16.gmra.mrb[72].mxu0 %v11657_v32  ;;  %6176 = vmatmul.mubr.bf16.gmra.mrb[104].mxu1 %v11657_v32  ;;  %v4380_v19 = vmax.f32 %v4195_v22, 0.0 }
 0x401   : > { %v4201_v12 = vadd.f32 %v4200_v37, %v11579_v57  ;;  %6019 = vmatpush1.bf16.msra.mxu0 %v9447_v2  ;;  %6245 = vmatpush1.bf16.msra.mxu1 %v9450_v21  ;;  %v4381_v54 = vmax.f32 %v4197_v25, 0.0  ;;  %v9480_v25 = vld [vmem:[%s12746_s8 + $0x580] ss:$28 sps:$4 sm:$0xff]   ;;  %v9485_v37 = vld [vmem:[%s12746_s8 + $0x5b4] ss:$28 sps:$4 sm:$0xff]  }
 0x402   : > { %v4384_v4 = vmax.f32 %v4199_v27, 0.0  ;;  %6020 = vmatprep.subr.bf16.mxu0 %v9455_v23  ;;  %6246 = vmatprep.subr.bf16.mxu1 %v9458_v24  ;;  %v9477_v24 = vld [vmem:[%s12746_s8 + $0x578] ss:$28 sps:$4 sm:$0xff]  }
 0x403   : > { %v4385_v13 = vmax.f32 %v4201_v12, 0.0  ;;  %v9488_v12 = vld [vmem:[%s12746_s8 + $0x5bc] ss:$28 sps:$4 sm:$0xff]  }
 0x404   : > { %v11693_v33 = vpack.c.bf16 %v4384_v4, %v4380_v19 }
 0x405   : > { %v11695_v7 = vpack.c.bf16 %v4385_v13, %v4381_v54  ;;  %v4204_v30 = vpop.f32.mrb[48].mxu1  ;;  %6021 = vmatpush1.bf16.msra.mxu0 %v9453_v15  ;;  %6247 = vmatpush1.bf16.msra.mxu1 %v9456_v6  ;;  %v9486_v54 = vld [vmem:[%s12746_s8 + $0x5b8] ss:$28 sps:$4 sm:$0xff]  }
 0x406   : > { %v4205_v35 = vadd.f32 %v4204_v30, %v11575_v11  ;;  %v4206_v38 = vpop.f32.mrb[49].mxu1  ;;  %6022 = vmatprep.subr.bf16.mxu0 %v9461_v55  ;;  %6248 = vmatprep.subr.bf16.mxu1 %v9464_v36  ;;  %v9483_v36 = vld [vmem:[%s12746_s8 + $0x5b0] ss:$28 sps:$4 sm:$0xff]  }
 0x407   : > { %v4207_v1 = vadd.f32 %v4206_v38, %v11579_v57  ;;  %v4208_v45 = vpop.f32.mrb[50].mxu1  ;;  %5959 = vmatprep.mubr.bf16.mxu0 %v11695_v7  ;;  %6185 = vmatprep.mubr.bf16.mxu1 %v11695_v7 }
 0x408   : > { %v4209_v46 = vadd.f32 %v4208_v45, %v11575_v11  ;;  %v4210_v16 = vpop.f32.mrb[51].mxu1  ;;  %5960 = vmatmul.mubr.bf16.gmra.mrb[76].mxu0 %v11693_v33  ;;  %6186 = vmatmul.mubr.bf16.gmra.mrb[108].mxu1 %v11693_v33  ;;  %v4388_v51 = vmax.f32 %v4205_v35, 0.0  ;;  %v9489_v45 = vld [vmem:[%s12746_s8 + $0x5e8] ss:$28 sps:$4 sm:$0xff]  }
 0x409   : > { %v4211_v47 = vadd.f32 %v4210_v16, %v11579_v57  ;;  %6023 = vmatpush1.bf16.msra.mxu0 %v9459_v31  ;;  %6249 = vmatpush1.bf16.msra.mxu1 %v9462_v8  ;;  %v4389_v56 = vmax.f32 %v4207_v1, 0.0  ;;  %v9491_v31 = vld [vmem:[%s12746_s8 + $0x5ec] ss:$28 sps:$4 sm:$0xff]   ;;  %v9494_v8 = vld [vmem:[%s12746_s8 + $0x5f4] ss:$28 sps:$4 sm:$0xff]  }
 0x40a   : > { %v4392_v52 = vmax.f32 %v4209_v46, 0.0  ;;  %6024 = vmatprep.subr.bf16.mxu0 %v9467_v39  ;;  %6250 = vmatprep.subr.bf16.mxu1 %v9470_v29  ;;  %v9492_v46 = vld [vmem:[%s12746_s8 + $0x5f0] ss:$28 sps:$4 sm:$0xff]  }
 0x40b   : > { %v4393_v14 = vmax.f32 %v4211_v47, 0.0 }
 0x40c   : > { %v11729_v58 = vpack.c.bf16 %v4392_v52, %v4388_v51 }
 0x40d   : > { %v11731_v62 = vpack.c.bf16 %v4393_v14, %v4389_v56  ;;  %v4214_v5 = vpop.f32.mrb[52].mxu1  ;;  %6025 = vmatpush1.bf16.msra.mxu0 %v9465_v49  ;;  %6251 = vmatpush1.bf16.msra.mxu1 %v9468_v50  ;;  %v9497_v49 = vld [vmem:[%s12746_s8 + $0x624] ss:$28 sps:$4 sm:$0xff]   ;;  %v9500_v50 = vld [vmem:[%s12746_s8 + $0x62c] ss:$28 sps:$4 sm:$0xff]  }
 0x40e   : > { %v4215_v17 = vadd.f32 %v4214_v5, %v11575_v11  ;;  %v4216_v18 = vpop.f32.mrb[53].mxu1  ;;  %6026 = vmatprep.subr.bf16.mxu0 %v9473_v44  ;;  %6252 = vmatprep.subr.bf16.mxu1 %v9476_v40  ;;  %v9495_v14 = vld [vmem:[%s12746_s8 + $0x620] ss:$28 sps:$4 sm:$0xff]   ;;  %v9498_v5 = vld [vmem:[%s12746_s8 + $0x628] ss:$28 sps:$4 sm:$0xff]  }
 0x40f   : > { %v4217_v2 = vadd.f32 %v4216_v18, %v11579_v57  ;;  %v4218_v21 = vpop.f32.mrb[54].mxu1  ;;  %5969 = vmatprep.mubr.bf16.mxu0 %v11731_v62  ;;  %6195 = vmatprep.mubr.bf16.mxu1 %v11731_v62  ;;  %v9506_v18 = vld [vmem:[%s12746_s8 + $0x664] ss:$28 sps:$4 sm:$0xff]  }
 0x410   : > { %v4219_v22 = vadd.f32 %v4218_v21, %v11575_v11  ;;  %v4220_v3 = vpop.f32.mrb[55].mxu1  ;;  %5970 = vmatmul.mubr.bf16.gmra.mrb[80].mxu0 %v11729_v58  ;;  %6196 = vmatmul.mubr.bf16.gmra.mrb[112].mxu1 %v11729_v58  ;;  %v4396_v26 = vmax.f32 %v4215_v17, 0.0  ;;  %v9503_v17 = vld [vmem:[%s12746_s8 + $0x65c] ss:$28 sps:$4 sm:$0xff]  }
 0x411   : > { %v4221_v23 = vadd.f32 %v4220_v3, %v11579_v57  ;;  %6027 = vmatpush1.bf16.msra.mxu0 %v9471_v53  ;;  %6253 = vmatpush1.bf16.msra.mxu1 %v9474_v48  ;;  %v4397_v15 = vmax.f32 %v4217_v2, 0.0  ;;  %v9501_v3 = vld [vmem:[%s12746_s8 + $0x658] ss:$28 sps:$4 sm:$0xff]  }
 0x412   : > { %v4400_v27 = vmax.f32 %v4219_v22, 0.0  ;;  %6028 = vmatprep.subr.bf16.mxu0 %v9479_v9  ;;  %6254 = vmatprep.subr.bf16.mxu1 %v9482_v41 }
 0x413   : > { %v4401_v6 = vmax.f32 %v4221_v23, 0.0  ;;  %v9504_v23 = vld [vmem:[%s12746_s8 + $0x660] ss:$28 sps:$4 sm:$0xff]  }
 0x414   : > { %v11765_v19 = vpack.c.bf16 %v4400_v27, %v4396_v26  ;;  %v9512_v26 = vld [vmem:[%s12746_s8 + $0x69c] ss:$28 sps:$4 sm:$0xff]  }
 0x415   : > { %v11767_v4 = vpack.c.bf16 %v4401_v6, %v4397_v15  ;;  %v4224_v55 = vpop.f32.mrb[56].mxu1  ;;  %6029 = vmatpush1.bf16.msra.mxu0 %v9477_v24  ;;  %6255 = vmatpush1.bf16.msra.mxu1 %v9480_v25 }
 0x416   : > { %v4225_v13 = vadd.f32 %v4224_v55, %v11575_v11  ;;  %v4226_v30 = vpop.f32.mrb[57].mxu1  ;;  %6030 = vmatprep.subr.bf16.mxu0 %v9485_v37  ;;  %6256 = vmatprep.subr.bf16.mxu1 %v9488_v12  ;;  %v11843_v12 = vrot.slane %v11571_v10, %v10855_v0 }
 0x417   : > { %v4227_v35 = vadd.f32 %v4226_v30, %v11579_v57  ;;  %v4228_v38 = vpop.f32.mrb[58].mxu1  ;;  %5979 = vmatprep.mubr.bf16.mxu0 %v11767_v4  ;;  %6205 = vmatprep.mubr.bf16.mxu1 %v11767_v4 }
 0x418   : > { %v4229_v39 = vadd.f32 %v4228_v38, %v11575_v11  ;;  %v4230_v29 = vpop.f32.mrb[59].mxu1  ;;  %5980 = vmatmul.mubr.bf16.gmra.mrb[84].mxu0 %v11765_v19  ;;  %6206 = vmatmul.mubr.bf16.gmra.mrb[116].mxu1 %v11765_v19  ;;  %v4404_v16 = vmax.f32 %v4225_v13, 0.0 }
 0x419   : > { %v4231_v1 = vadd.f32 %v4230_v29, %v11579_v57  ;;  %6031 = vmatpush1.bf16.msra.mxu0 %v9483_v36  ;;  %6257 = vmatpush1.bf16.msra.mxu1 %v9486_v54  ;;  %v4405_v51 = vmax.f32 %v4227_v35, 0.0  ;;  %v9507_v36 = vld [vmem:[%s12746_s8 + $0x690] ss:$28 sps:$4 sm:$0xff]   ;;  %v9510_v54 = vld [vmem:[%s12746_s8 + $0x698] ss:$28 sps:$4 sm:$0xff]  }
 0x41a   : > { %v4408_v47 = vmax.f32 %v4229_v39, 0.0  ;;  %6032 = vmatprep.subr.bf16.mxu0 %v9491_v31  ;;  %6258 = vmatprep.subr.bf16.mxu1 %v9494_v8  ;;  %v9518_v31 = vld [vmem:[%s12746_s8 + $0x6d4] ss:$28 sps:$4 sm:$0xff]  }
 0x41b   : > { %v4409_v52 = vmax.f32 %v4231_v1, 0.0  ;;  %v9513_v1 = vld [vmem:[%s12746_s8 + $0x6c8] ss:$28 sps:$4 sm:$0xff]  }
 0x41c   : > { %v11801_v44 = vpack.c.bf16 %v4408_v47, %v4404_v16  ;;  %v9521_v47 = vld [vmem:[%s12746_s8 + $0x14] ss:$28 sps:$4 sm:$0xff]  }
 0x41d   : > { %v11803_v40 = vpack.c.bf16 %v4409_v52, %v4405_v51  ;;  %v4234_v56 = vpop.f32.mrb[60].mxu1  ;;  %6033 = vmatpush1.bf16.msra.mxu0 %v9489_v45  ;;  %6259 = vmatpush1.bf16.msra.mxu1 %v9492_v46  ;;  %v9516_v45 = vld [vmem:[%s12746_s8 + $0x6d0] ss:$28 sps:$4 sm:$0xff]  }
 0x41e   : > { %v4235_v53 = vadd.f32 %v4234_v56, %v11575_v11  ;;  %v4236_v48 = vpop.f32.mrb[61].mxu1  ;;  %6034 = vmatprep.subr.bf16.mxu0 %v9497_v49  ;;  %6260 = vmatprep.subr.bf16.mxu1 %v9500_v50  ;;  %v9522_v49 = vld [vmem:[%s12746_s8 + $0x1d8] ss:$28 sps:$4 sm:$0xff]  }
 0x41f   : > { %v4237_v9 = vadd.f32 %v4236_v48, %v11579_v57  ;;  %v4238_v41 = vpop.f32.mrb[62].mxu1  ;;  %5989 = vmatprep.mubr.bf16.mxu0 %v11803_v40  ;;  %6215 = vmatprep.mubr.bf16.mxu1 %v11803_v40 }
 0x420   : > { %v4239_v2 = vadd.f32 %v4238_v41, %v11575_v11  ;;  %v4240_v21 = vpop.f32.mrb[63].mxu1  ;;  %5990 = vmatmul.mubr.bf16.gmra.mrb[88].mxu0 %v11801_v44  ;;  %6216 = vmatmul.mubr.bf16.gmra.mrb[120].mxu1 %v11801_v44  ;;  %v4412_v24 = vmax.f32 %v4235_v53, 0.0  ;;  %v11833_v11 = vrot.slane %v11571_v10, %v10846_v61  ;;  %v9515_v10 = vld [vmem:[%s12746_s8 + $0x6cc] ss:$28 sps:$4 sm:$0xff]   ;;  %v9523_v53 = vld [vmem:[%s12746_s8 + $0x18] ss:$28 sps:$4 sm:$0xff]  }
 0x421   : > { %v4241_v22 = vadd.f32 %v4240_v21, %v11579_v57  ;;  %6035 = vmatpush1.bf16.msra.mxu0 %v9495_v14  ;;  %6261 = vmatpush1.bf16.msra.mxu1 %v9498_v5  ;;  %v9509_v57 = vld [vmem:[%s12746_s8 + $0x694] ss:$28 sps:$4 sm:$0xff]   ;;  %v4413_v27 = vmax.f32 %v4237_v9, 0.0 }
 0x422   : > { %v4416_v25 = vmax.f32 %v4239_v2, 0.0  ;;  %6036 = vmatprep.subr.bf16.mxu0 %v9503_v17  ;;  %6262 = vmatprep.subr.bf16.mxu1 %v9506_v18  ;;  %v9519_v5 = vld [vmem:[%s12746_s8 + $0x10] ss:$28 sps:$4 sm:$0xff]  }
 0x423   : > { %v4417_v37 = vmax.f32 %v4241_v22, 0.0  ;;  %v9526_v18 = vld [vmem:[%s12746_s8 + $0x4c] ss:$28 sps:$4 sm:$0xff]  }
 0x424   : > { %v11845_v15 = vpack.c.bf16 %v4416_v25, %v4412_v24  ;;  %v9530_v9 = vld [vmem:[%s12746_s8 + $0x210] ss:$28 sps:$4 sm:$0xff]  }
 0x425   : > { %v11847_v6 = vpack.c.bf16 %v4417_v37, %v4413_v27  ;;  %v4277_v55 = vpop.f32.mrb[64].mxu1  ;;  %6037 = vmatpush1.bf16.msra.mxu0 %v9501_v3  ;;  %6263 = vmatpush1.bf16.msra.mxu1 %v9504_v23  ;;  %v9524_v23 = vld [vmem:[%s12746_s8 + $0x48] ss:$28 sps:$4 sm:$0xff]   ;;  %v9531_v24 = vld [vmem:[%s12746_s8 + $0x50] ss:$28 sps:$4 sm:$0xff]  }
 0x426   : > { %v4278_v13 = vadd.f32 %v4277_v55, %v11833_v11  ;;  %v4279_v30 = vpop.f32.mrb[65].mxu1  ;;  %6038 = vmatprep.subr.bf16.mxu0 %v9509_v57  ;;  %6264 = vmatprep.subr.bf16.mxu1 %v9512_v26  ;;  %v9529_v26 = vld [vmem:[%s12746_s8 + $0x84] ss:$28 sps:$4 sm:$0xff]  }
 0x427   : > { %v4280_v8 = vadd.f32 %v4279_v30, %v11843_v12  ;;  %v4281_v35 = vpop.f32.mrb[66].mxu1  ;;  %5999 = vmatprep.mubr.bf16.mxu0 %v11847_v6  ;;  %6225 = vmatprep.mubr.bf16.mxu1 %v11847_v6  ;;  %v9538_v27 = vld [vmem:[%s12746_s8 + $0x248] ss:$28 sps:$4 sm:$0xff]   ;;  %v9527_v30 = vld [vmem:[%s12746_s8 + $0x80] ss:$28 sps:$4 sm:$0xff]  }
 0x428   : > { %v4282_v38 = vadd.f32 %v4281_v35, %v11833_v11  ;;  %v4283_v39 = vpop.f32.mrb[67].mxu1  ;;  %6000 = vmatmul.mubr.bf16.gmra.mrb[92].mxu0 %v11845_v15  ;;  %6226 = vmatmul.mubr.bf16.gmra.mrb[124].mxu1 %v11845_v15  ;;  %v4358_v46 = vmax.f32 %v4278_v13, 0.0  ;;  %v9534_v35 = vld [vmem:[%s12746_s8 + $0xbc] ss:$28 sps:$4 sm:$0xff]  }
 0x429   : > { %v4284_v29 = vadd.f32 %v4283_v39, %v11843_v12  ;;  %6039 = vmatpush1.bf16.msra.mxu0 %v9507_v36  ;;  %6265 = vmatpush1.bf16.msra.mxu1 %v9510_v54  ;;  %v4359_v50 = vmax.f32 %v4280_v8, 0.0 }
 0x42a   : > { %v4362_v16 = vmax.f32 %v4282_v38, 0.0  ;;  %6040 = vmatprep.subr.bf16.mxu0 %v9515_v10  ;;  %6266 = vmatprep.subr.bf16.mxu1 %v9518_v31  ;;  %v9539_v10 = vld [vmem:[%s12746_s8 + $0x88] ss:$28 sps:$4 sm:$0xff]   ;;  %v9546_v38 = vld [vmem:[%s12746_s8 + $0x280] ss:$28 sps:$4 sm:$0xff]  }
 0x42b   : > { %v4363_v51 = vmax.f32 %v4284_v29, 0.0 }
 0x42c   : > { %v11881_v52 = vpack.c.bf16 %v4362_v16, %v4358_v46  ;;  %v9532_v16 = vld [vmem:[%s12746_s8 + $0xb8] ss:$28 sps:$4 sm:$0xff]  }
 0x42d   : > { %v11883_v56 = vpack.c.bf16 %v4363_v51, %v4359_v50  ;;  %v4287_v14 = vpop.f32.mrb[68].mxu1  ;;  %6041 = vmatpush1.bf16.msra.mxu0 %v9513_v1  ;;  %6267 = vmatpush1.bf16.msra.mxu1 %v9516_v45  ;;  %v9537_v51 = vld [vmem:[%s12746_s8 + $0xf4] ss:$28 sps:$4 sm:$0xff]  }
 0x42e   : > { %v4288_v48 = vadd.f32 %v4287_v14, %v11833_v11  ;;  %v4289_v17 = vpop.f32.mrb[69].mxu1  ;;  %6349 = vmatprep.subr.bf16.mxu0 %v9521_v47  ;;  %8116 = vmatprep.subr.bf16.mxu1 %v9522_v49  ;;  %v9547_v47 = vld [vmem:[%s12746_s8 + $0xc0] ss:$28 sps:$4 sm:$0xff]   ;;  %v9554_v14 = vld [vmem:[%s12746_s8 + $0x2b8] ss:$28 sps:$4 sm:$0xff]  }
 0x42f   : > { %v4290_v41 = vadd.f32 %v4289_v17, %v11843_v12  ;;  %v4291_v2 = vpop.f32.mrb[70].mxu1  ;;  %6042 = vmatprep.mubr.bf16.mxu0 %v11883_v56  ;;  %6268 = vmatprep.mubr.bf16.mxu1 %v11883_v56 }
 0x430   : > { %v4292_v21 = vadd.f32 %v4291_v2, %v11833_v11  ;;  %v4293_v22 = vpop.f32.mrb[71].mxu1  ;;  %6043 = vmatmul.mubr.bf16.vlgmr.msra.gmra.mrb[64].mxu0 %v11881_v52  ;;  %6269 = vmatmul.mubr.bf16.vlgmr.msra.gmra.mrb[96].mxu1 %v11881_v52  ;;  %v4366_v25 = vmax.f32 %v4288_v48, 0.0 }
 0x431   : > { %v4294_v3 = vadd.f32 %v4293_v22, %v11843_v12  ;;  %6350 = vmatpush1.bf16.msra.mxu0 %v9519_v5  ;;  %8117 = vmatpush3.bf16.msra.mxu1 %v9523_v53  ;;  %v4367_v37 = vmax.f32 %v4290_v41, 0.0  ;;  %v9555_v41 = vld [vmem:[%s12746_s8 + $0xf8] ss:$28 sps:$4 sm:$0xff]   ;;  %v9542_v22 = vld [vmem:[%s12746_s8 + $0x12c] ss:$28 sps:$4 sm:$0xff]  }
 0x432   : > { %v4370_v57 = vmax.f32 %v4292_v21, 0.0  ;;  %6351 = vmatprep.subr.bf16.mxu0 %v9526_v18  ;;  %8118 = vmatprep.subr.bf16.mxu1 %v9530_v9  ;;  %v9535_v9 = vld [vmem:[%s12746_s8 + $0xf0] ss:$28 sps:$4 sm:$0xff]  }
 0x433   : > { %v4371_v55 = vmax.f32 %v4294_v3, 0.0  ;;  %v9562_v3 = vld [vmem:[%s12746_s8 + $0x2f0] ss:$28 sps:$4 sm:$0xff]  }
 0x434   : > { %v11917_v36 = vpack.c.bf16 %v4370_v57, %v4366_v25 }
 0x435   : > { %v11919_v54 = vpack.c.bf16 %v4371_v55, %v4367_v37  ;;  %v4297_v13 = vpop.f32.mrb[72].mxu1  ;;  %6352 = vmatpush1.bf16.msra.mxu0 %v9524_v23  ;;  %8119 = vmatpush3.bf16.msra.mxu1 %v9531_v24  ;;  %v9563_v37 = vld [vmem:[%s12746_s8 + $0x130] ss:$28 sps:$4 sm:$0xff]  }
 0x436   : > { %v4298_v31 = vadd.f32 %v4297_v13, %v11833_v11  ;;  %v4299_v8 = vpop.f32.mrb[73].mxu1  ;;  %6353 = vmatprep.subr.bf16.mxu0 %v9529_v26  ;;  %8120 = vmatprep.subr.bf16.mxu1 %v9538_v27  ;;  %v9540_v27 = vld [vmem:[%s12746_s8 + $0x128] ss:$28 sps:$4 sm:$0xff]  }
 0x437   : > { %v4300_v39 = vadd.f32 %v4299_v8, %v11843_v12  ;;  %v4301_v29 = vpop.f32.mrb[74].mxu1  ;;  %6052 = vmatprep.mubr.bf16.mxu0 %v11919_v54  ;;  %6278 = vmatprep.mubr.bf16.mxu1 %v11919_v54 }
 0x438   : > { %v4302_v1 = vadd.f32 %v4301_v29, %v11833_v11  ;;  %v4303_v45 = vpop.f32.mrb[75].mxu1  ;;  %6053 = vmatmul.mubr.bf16.gmra.mrb[68].mxu0 %v11917_v36  ;;  %6279 = vmatmul.mubr.bf16.gmra.mrb[100].mxu1 %v11917_v36  ;;  %v4374_v49 = vmax.f32 %v4298_v31, 0.0  ;;  %v9543_v29 = vld [vmem:[%s12746_s8 + $0x160] ss:$28 sps:$4 sm:$0xff]  }
 0x439   : > { %v4304_v46 = vadd.f32 %v4303_v45, %v11843_v12  ;;  %6354 = vmatpush1.bf16.msra.mxu0 %v9527_v30  ;;  %8121 = vmatpush3.bf16.msra.mxu1 %v9539_v10  ;;  %v4375_v5 = vmax.f32 %v4300_v39, 0.0  ;;  %v9545_v30 = vld [vmem:[%s12746_s8 + $0x164] ss:$28 sps:$4 sm:$0xff]  }
 0x43a   : > { %v4378_v50 = vmax.f32 %v4302_v1, 0.0  ;;  %6355 = vmatprep.subr.bf16.mxu0 %v9534_v35  ;;  %8122 = vmatprep.subr.bf16.mxu1 %v9546_v38  ;;  %v9570_v10 = vld [vmem:[%s12746_s8 + $0x328] ss:$28 sps:$4 sm:$0xff]  }
 0x43b   : > { %v4379_v53 = vmax.f32 %v4304_v46, 0.0  ;;  %v9571_v1 = vld [vmem:[%s12746_s8 + $0x168] ss:$28 sps:$4 sm:$0xff]  }
 0x43c   : > { %v11953_v48 = vpack.c.bf16 %v4378_v50, %v4374_v49 }
 0x43d   : > { %v11955_v17 = vpack.c.bf16 %v4379_v53, %v4375_v5  ;;  %v4307_v18 = vpop.f32.mrb[76].mxu1  ;;  %6356 = vmatpush1.bf16.msra.mxu0 %v9532_v16  ;;  %8123 = vmatpush3.bf16.msra.mxu1 %v9547_v47  ;;  %v9550_v16 = vld [vmem:[%s12746_s8 + $0x19c] ss:$28 sps:$4 sm:$0xff]  }
 0x43e   : > { %v4308_v2 = vadd.f32 %v4307_v18, %v11833_v11  ;;  %v4309_v21 = vpop.f32.mrb[77].mxu1  ;;  %6357 = vmatprep.subr.bf16.mxu0 %v9537_v51  ;;  %8124 = vmatprep.subr.bf16.mxu1 %v9554_v14  ;;  %v9578_v47 = vld [vmem:[%s12746_s8 + $0x360] ss:$28 sps:$4 sm:$0xff]   ;;  %v9548_v53 = vld [vmem:[%s12746_s8 + $0x198] ss:$28 sps:$4 sm:$0xff]  }
 0x43f   : > { %v4310_v23 = vadd.f32 %v4309_v21, %v11843_v12  ;;  %v4311_v24 = vpop.f32.mrb[78].mxu1  ;;  %6062 = vmatprep.mubr.bf16.mxu0 %v11955_v17  ;;  %6288 = vmatprep.mubr.bf16.mxu1 %v11955_v17  ;;  %v9579_v18 = vld [vmem:[%s12746_s8 + $0x1a0] ss:$28 sps:$4 sm:$0xff]   ;;  %v9586_v21 = vld [vmem:[%s12746_s8 + $0x558] ss:$28 sps:$4 sm:$0xff]  }
 0x440   : > { %v4312_v25 = vadd.f32 %v4311_v24, %v11833_v11  ;;  %v4313_v57 = vpop.f32.mrb[79].mxu1  ;;  %6063 = vmatmul.mubr.bf16.gmra.mrb[72].mxu0 %v11953_v48  ;;  %6289 = vmatmul.mubr.bf16.gmra.mrb[104].mxu1 %v11953_v48  ;;  %v4382_v55 = vmax.f32 %v4308_v2, 0.0  ;;  %v9553_v2 = vld [vmem:[%s12746_s8 + $0x1d4] ss:$28 sps:$4 sm:$0xff]  }
 0x441   : > { %v4314_v26 = vadd.f32 %v4313_v57, %v11843_v12  ;;  %6358 = vmatpush1.bf16.msra.mxu0 %v9535_v9  ;;  %8125 = vmatpush3.bf16.msra.mxu1 %v9555_v41  ;;  %v4383_v31 = vmax.f32 %v4310_v23, 0.0  ;;  %v9551_v57 = vld [vmem:[%s12746_s8 + $0x1d0] ss:$28 sps:$4 sm:$0xff]  }
 0x442   : > { %v4386_v13 = vmax.f32 %v4312_v25, 0.0  ;;  %6359 = vmatprep.subr.bf16.mxu0 %v9542_v22  ;;  %8126 = vmatprep.subr.bf16.mxu1 %v9562_v3 }
 0x443   : > { %v4387_v8 = vmax.f32 %v4314_v26, 0.0 }
 0x444   : > { %v11989_v35 = vpack.c.bf16 %v4386_v13, %v4382_v55 }
 0x445   : > { %v11991_v38 = vpack.c.bf16 %v4387_v8, %v4383_v31  ;;  %v4317_v39 = vpop.f32.mrb[80].mxu1  ;;  %6360 = vmatpush1.bf16.msra.mxu0 %v9540_v27  ;;  %8127 = vmatpush3.bf16.msra.mxu1 %v9563_v37  ;;  %v9558_v37 = vld [vmem:[%s12746_s8 + $0x20c] ss:$28 sps:$4 sm:$0xff]  }
 0x446   : > { %v4318_v45 = vadd.f32 %v4317_v39, %v11833_v11  ;;  %v4319_v46 = vpop.f32.mrb[81].mxu1  ;;  %6361 = vmatprep.subr.bf16.mxu0 %v9545_v30  ;;  %8128 = vmatprep.subr.bf16.mxu1 %v9570_v10  ;;  %v9556_v8 = vld [vmem:[%s12746_s8 + $0x208] ss:$28 sps:$4 sm:$0xff]  }
 0x447   : > { %v4320_v49 = vadd.f32 %v4319_v46, %v11843_v12  ;;  %v4321_v50 = vpop.f32.mrb[82].mxu1  ;;  %6072 = vmatprep.mubr.bf16.mxu0 %v11991_v38  ;;  %6298 = vmatprep.mubr.bf16.mxu1 %v11991_v38 }
 0x448   : > { %v4322_v51 = vadd.f32 %v4321_v50, %v11833_v11  ;;  %v4323_v14 = vpop.f32.mrb[83].mxu1  ;;  %6073 = vmatmul.mubr.bf16.gmra.mrb[76].mxu0 %v11989_v35  ;;  %6299 = vmatmul.mubr.bf16.gmra.mrb[108].mxu1 %v11989_v35  ;;  %v4390_v9 = vmax.f32 %v4318_v45, 0.0  ;;  %v9559_v50 = vld [vmem:[%s12746_s8 + $0x240] ss:$28 sps:$4 sm:$0xff]  }
 0x449   : > { %v4324_v5 = vadd.f32 %v4323_v14, %v11843_v12  ;;  %6362 = vmatpush1.bf16.msra.mxu0 %v9543_v29  ;;  %8129 = vmatpush3.bf16.msra.mxu1 %v9571_v1  ;;  %v4391_v22 = vmax.f32 %v4320_v49, 0.0  ;;  %v9561_v1 = vld [vmem:[%s12746_s8 + $0x244] ss:$28 sps:$4 sm:$0xff]  }
 0x44a   : > { %v4394_v41 = vmax.f32 %v4322_v51, 0.0  ;;  %6363 = vmatprep.subr.bf16.mxu0 %v9550_v16  ;;  %8130 = vmatprep.subr.bf16.mxu1 %v9578_v47 }
 0x44b   : > { %v4395_v3 = vmax.f32 %v4324_v5, 0.0  ;;  %v9566_v5 = vld [vmem:[%s12746_s8 + $0x27c] ss:$28 sps:$4 sm:$0xff]  }
 0x44c   : > { %v12025_v23 = vpack.c.bf16 %v4394_v41, %v4390_v9 }
 0x44d   : > { %v12027_v24 = vpack.c.bf16 %v4395_v3, %v4391_v22  ;;  %v4327_v25 = vpop.f32.mrb[84].mxu1  ;;  %6364 = vmatpush1.bf16.msra.mxu0 %v9548_v53  ;;  %8131 = vmatpush3.bf16.msra.mxu1 %v9579_v18 }
 0x44e   : > { %v4328_v26 = vadd.f32 %v4327_v25, %v11833_v11  ;;  %v4329_v27 = vpop.f32.mrb[85].mxu1  ;;  %6365 = vmatprep.subr.bf16.mxu0 %v9553_v2  ;;  %8180 = vmatprep.subr.bf16.mxu1 %v9586_v21  ;;  %v9564_v21 = vld [vmem:[%s12746_s8 + $0x278] ss:$28 sps:$4 sm:$0xff]  }
 0x44f   : > { %v4330_v55 = vadd.f32 %v4329_v27, %v11843_v12  ;;  %v4331_v13 = vpop.f32.mrb[86].mxu1  ;;  %6082 = vmatprep.mubr.bf16.mxu0 %v12027_v24  ;;  %6308 = vmatprep.mubr.bf16.mxu1 %v12027_v24  ;;  %v9569_v25 = vld [vmem:[%s12746_s8 + $0x2b4] ss:$28 sps:$4 sm:$0xff]  }
 0x450   : > { %v4332_v30 = vadd.f32 %v4331_v13, %v11833_v11  ;;  %v4333_v10 = vpop.f32.mrb[87].mxu1  ;;  %6083 = vmatmul.mubr.bf16.gmra.mrb[80].mxu0 %v12025_v23  ;;  %6309 = vmatmul.mubr.bf16.gmra.mrb[112].mxu1 %v12025_v23  ;;  %v4398_v39 = vmax.f32 %v4328_v26, 0.0  ;;  %v9567_v13 = vld [vmem:[%s12746_s8 + $0x2b0] ss:$28 sps:$4 sm:$0xff]  }
 0x451   : > { %v4334_v31 = vadd.f32 %v4333_v10, %v11843_v12  ;;  %6366 = vmatpush1.bf16.msra.mxu0 %v9551_v57  ;;  %v4399_v45 = vmax.f32 %v4330_v55, 0.0 }
 0x452   : > { %v4402_v29 = vmax.f32 %v4332_v30, 0.0  ;;  %6367 = vmatprep.subr.bf16.mxu0 %v9558_v37 }
 0x453   : > { %v4403_v46 = vmax.f32 %v4334_v31, 0.0  ;;  %v9574_v31 = vld [vmem:[%s12746_s8 + $0x2ec] ss:$28 sps:$4 sm:$0xff]  }
 0x454   : > { %v12049_v16 = vpack.c.bf16 %v4402_v29, %v4398_v39 }
 0x455   : > { %v12051_v47 = vpack.c.bf16 %v4403_v46, %v4399_v45  ;;  %v4337_v49 = vpop.f32.mrb[88].mxu1  ;;  %6368 = vmatpush1.bf16.msra.mxu0 %v9556_v8  ;;  %v9572_v46 = vld [vmem:[%s12746_s8 + $0x2e8] ss:$28 sps:$4 sm:$0xff]  }
 0x456   : > { %v4338_v51 = vadd.f32 %v4337_v49, %v11833_v11  ;;  %v4339_v14 = vpop.f32.mrb[89].mxu1  ;;  %6369 = vmatprep.subr.bf16.mxu0 %v9561_v1 }
 0x457   : > { %v4340_v53 = vadd.f32 %v4339_v14, %v11843_v12  ;;  %v4341_v18 = vpop.f32.mrb[90].mxu1  ;;  %6092 = vmatprep.mubr.bf16.mxu0 %v12051_v47  ;;  %6318 = vmatprep.mubr.bf16.mxu1 %v12051_v47 }
 0x458   : > { %v4342_v9 = vadd.f32 %v4341_v18, %v11833_v11  ;;  %v4343_v41 = vpop.f32.mrb[91].mxu1  ;;  %6093 = vmatmul.mubr.bf16.gmra.mrb[84].mxu0 %v12049_v16  ;;  %6319 = vmatmul.mubr.bf16.gmra.mrb[116].mxu1 %v12049_v16  ;;  %v4406_v22 = vmax.f32 %v4338_v51, 0.0  ;;  %v9577_v51 = vld [vmem:[%s12746_s8 + $0x324] ss:$28 sps:$4 sm:$0xff]   ;;  %v9582_v18 = vld [vmem:[%s12746_s8 + $0x35c] ss:$28 sps:$4 sm:$0xff]  }
 0x459   : > { %v4344_v2 = vadd.f32 %v4343_v41, %v11843_v12  ;;  %6370 = vmatpush1.bf16.msra.mxu0 %v9559_v50  ;;  %v4407_v57 = vmax.f32 %v4340_v53, 0.0  ;;  %v9585_v41 = vld [vmem:[%s12746_s8 + $0x394] ss:$28 sps:$4 sm:$0xff]  }
 0x45a   : > { %v4410_v3 = vmax.f32 %v4342_v9, 0.0  ;;  %6371 = vmatprep.subr.bf16.mxu0 %v9566_v5  ;;  %v9580_v9 = vld [vmem:[%s12746_s8 + $0x358] ss:$28 sps:$4 sm:$0xff]  }
 0x45b   : > { %v4411_v26 = vmax.f32 %v4344_v2, 0.0  ;;  %v9583_v2 = vld [vmem:[%s12746_s8 + $0x390] ss:$28 sps:$4 sm:$0xff]  }
 0x45c   : > { %v12073_v27 = vpack.c.bf16 %v4410_v3, %v4406_v22  ;;  %v9590_v22 = vld [vmem:[%s12746_s8 + $0x3cc] ss:$28 sps:$4 sm:$0xff]  }
 0x45d   : > { %v12075_v37 = vpack.c.bf16 %v4411_v26, %v4407_v57  ;;  %v4347_v55 = vpop.f32.mrb[92].mxu1  ;;  %6372 = vmatpush1.bf16.msra.mxu0 %v9564_v21  ;;  %v9587_v21 = vld [vmem:[%s12746_s8 + $0x398] ss:$28 sps:$4 sm:$0xff]   ;;  %v9588_v3 = vld [vmem:[%s12746_s8 + $0x3c8] ss:$28 sps:$4 sm:$0xff]  }
 0x45e   : > { %v4348_v30 = vadd.f32 %v4347_v55, %v11833_v11  ;;  %v4349_v10 = vpop.f32.mrb[93].mxu1  ;;  %6373 = vmatprep.subr.bf16.mxu0 %v9569_v25  ;;  %v9593_v25 = vld [vmem:[%s12746_s8 + $0x404] ss:$28 sps:$4 sm:$0xff]   ;;  %v9595_v57 = vld [vmem:[%s12746_s8 + $0x3d0] ss:$28 sps:$4 sm:$0xff]  }
 0x45f   : > { %v4350_v8 = vadd.f32 %v4349_v10, %v11843_v12  ;;  %v4351_v39 = vpop.f32.mrb[94].mxu1  ;;  %6102 = vmatprep.mubr.bf16.mxu0 %v12075_v37  ;;  %6328 = vmatprep.mubr.bf16.mxu1 %v12075_v37  ;;  %v9598_v26 = vld [vmem:[%s12746_s8 + $0x43c] ss:$28 sps:$4 sm:$0xff]   ;;  %v9603_v55 = vld [vmem:[%s12746_s8 + $0x408] ss:$28 sps:$4 sm:$0xff]  }
 0x460   : > { %v4352_v29 = vadd.f32 %v4351_v39, %v11833_v11  ;;  %v4353_v1 = vpop.f32.mrb[95].mxu1  ;;  %6103 = vmatmul.mubr.bf16.gmra.mrb[88].mxu0 %v12073_v27  ;;  %6329 = vmatmul.mubr.bf16.gmra.mrb[120].mxu1 %v12073_v27  ;;  %v4414_v49 = vmax.f32 %v4348_v30, 0.0  ;;  %v9596_v30 = vld [vmem:[%s12746_s8 + $0x438] ss:$28 sps:$4 sm:$0xff]  }
 0x461   : > { %v4354_v45 = vadd.f32 %v4353_v1, %v11843_v12  ;;  %6374 = vmatpush1.bf16.msra.mxu0 %v9567_v13  ;;  %v4415_v11 = vmax.f32 %v4350_v8, 0.0  ;;  %v9575_v12 = vld [vmem:[%s12746_s8 + $0x320] ss:$28 sps:$4 sm:$0xff]   ;;  %v9601_v10 = vld [vmem:[%s12746_s8 + $0x474] ss:$28 sps:$4 sm:$0xff]  }
 0x462   : > { %v4418_v50 = vmax.f32 %v4352_v29, 0.0  ;;  %6375 = vmatprep.subr.bf16.mxu0 %v9574_v31  ;;  %v9610_v13 = vld [vmem:[%s12746_s8 + $0x600] ss:$28 sps:$4 sm:$0xff]   ;;  %v9599_v31 = vld [vmem:[%s12746_s8 + $0x470] ss:$28 sps:$4 sm:$0xff]  }
 0x463   : > { %v4419_v14 = vmax.f32 %v4354_v45, 0.0  ;;  %v9618_v8 = vld [vmem:[%s12746_s8 + $0x638] ss:$28 sps:$4 sm:$0xff]   ;;  %v9604_v29 = vld [vmem:[%s12746_s8 + $0x4a8] ss:$28 sps:$4 sm:$0xff]  }
 0x464   : > { %v12097_v5 = vpack.c.bf16 %v4418_v50, %v4414_v49  ;;  %v9619_v39 = vld [vmem:[%s12746_s8 + $0x478] ss:$28 sps:$4 sm:$0xff]   ;;  %v9626_v1 = vld [vmem:[%s12746_s8 + $0x670] ss:$28 sps:$4 sm:$0xff]   ;;  %v9607_v45 = vld [vmem:[%s12746_s8 + $0x4e0] ss:$28 sps:$4 sm:$0xff]  }
 0x465   : > { %v12099_v53 = vpack.c.bf16 %v4419_v14, %v4415_v11  ;;  %6376 = vmatpush1.bf16.msra.mxu0 %v9572_v46  ;;  %v9614_v46 = vld [vmem:[%s12746_s8 + $0x51c] ss:$28 sps:$4 sm:$0xff]   ;;  %v9634_v49 = vld [vmem:[%s12746_s8 + $0x6a8] ss:$28 sps:$4 sm:$0xff]   ;;  %v9615_v11 = vld [vmem:[%s12746_s8 + $0x550] ss:$28 sps:$4 sm:$0xff]  }
 0x466   : > { %6377 = vmatprep.subr.bf16.mxu0 %v9577_v51  ;;  %v9612_v50 = vld [vmem:[%s12746_s8 + $0x518] ss:$28 sps:$4 sm:$0xff]   ;;  %v9642_v14 = vld [vmem:[%s12746_s8 + $0x6e0] ss:$28 sps:$4 sm:$0xff]  }
 0x467   : > { %6112 = vmatprep.mubr.bf16.mxu0 %v12099_v53  ;;  %6338 = vmatprep.mubr.bf16.mxu1 %v12099_v53  ;;  %v9617_v51 = vld [vmem:[%s12746_s8 + $0x554] ss:$28 sps:$4 sm:$0xff]  }
 0x468   : > { %6113 = vmatmul.mubr.bf16.gmra.mrb[92].mxu0 %v12097_v5  ;;  %6339 = vmatmul.mubr.bf16.gmra.mrb[124].mxu1 %v12097_v5 }
 0x469   : > { %6378 = vmatpush1.bf16.msra.mxu0 %v9575_v12  ;;  %6381 = vmatprep.mubr.bf16.mxu0 %v11587_v34  ;;  %v9643_v12 = vld [vmem:[%s12746_s8 + $0x520] ss:$28 sps:$4 sm:$0xff]  }
 0x46a   : > { %6607 = vmatprep.mubr.bf16.mxu1 %v11587_v34  ;;  %6379 = vmatprep.subr.bf16.mxu0 %v9582_v18  ;;  %v9594_v34 = vld [vmem:[%s12746_s8 + $0x590] ss:$28 sps:$4 sm:$0xff]   ;;  %v9620_v18 = vld [vmem:[%s12746_s8 + $0x588] ss:$28 sps:$4 sm:$0xff]  }
 0x46d   : > { %6380 = vmatpush1.bf16.msra.mxu0 %v9580_v9  ;;  %v9625_v9 = vld [vmem:[%s12746_s8 + $0x5c4] ss:$28 sps:$4 sm:$0xff]  }
 0x46e   : > { %6462 = vmatprep.subr.bf16.mxu0 %v9585_v41  ;;  %v9630_v41 = vld [vmem:[%s12746_s8 + $0x5fc] ss:$28 sps:$4 sm:$0xff]  }
 0x470   : > { %6382 = vmatmul.mubr.bf16.vlgmr.msra.gmra.mrb[96].mxu0 %v11585_v28  ;;  %6608 = vmatmul.mubr.bf16.vlgmr.msra.gmra.mrb[128].mxu1 %v11585_v28  ;;  %v9602_v28 = vld [vmem:[%s12746_s8 + $0x5c8] ss:$28 sps:$4 sm:$0xff]  }
 0x471   : > { %6391 = vmatprep.mubr.bf16.mxu0 %v11623_v43  ;;  %6463 = vmatpush1.bf16.msra.mxu0 %v9583_v2  ;;  %v9633_v2 = vld [vmem:[%s12746_s8 + $0x634] ss:$28 sps:$4 sm:$0xff]  }
 0x472   : > { %6615 = vmatprep.mubr.bf16.mxu1 %v11623_v43  ;;  %8181 = vmatpush3.bf16.msra.mxu1 %v9587_v21  ;;  %v9591_v43 = vld [vmem:[%s12746_s8 + $0x400] ss:$28 sps:$4 sm:$0xff]   ;;  %v9631_v21 = vld [vmem:[%s12746_s8 + $0x630] ss:$28 sps:$4 sm:$0xff]  }
 0x473   : > { %6464 = vmatprep.subr.bf16.mxu0 %v9590_v22  ;;  %8182 = vmatprep.subr.bf16.mxu1 %v9594_v34  ;;  %v9641_v22 = vld [vmem:[%s12746_s8 + $0x6a4] ss:$28 sps:$4 sm:$0xff]  }
 0x474   : > { %v9639_v34 = vld [vmem:[%s12746_s8 + $0x6a0] ss:$28 sps:$4 sm:$0xff]  }
 0x475   : > { %6465 = vmatpush1.bf16.msra.mxu0 %v9588_v3 }
 0x476   : > { %6466 = vmatprep.subr.bf16.mxu0 %v9593_v25  ;;  %8183 = vmatpush3.bf16.msra.mxu1 %v9595_v57 }
 0x477   : > { %8184 = vmatprep.subr.bf16.mxu1 %v9602_v28 }
 0x478   : > { %6392 = vmatmul.mubr.bf16.gmra.mrb[100].mxu0 %v11621_v42  ;;  %6616 = vmatmul.mubr.bf16.gmra.mrb[132].mxu1 %v11621_v42  ;;  %v9611_v42 = vld [vmem:[%s12746_s8 + $0x440] ss:$28 sps:$4 sm:$0xff]  }
 0x479   : > { %6401 = vmatprep.mubr.bf16.mxu0 %v11659_v20  ;;  %6467 = vmatpush1.bf16.msra.mxu0 %v9591_v43 }
 0x47a   : > { %6623 = vmatprep.mubr.bf16.mxu1 %v11659_v20  ;;  %6468 = vmatprep.subr.bf16.mxu0 %v9598_v26  ;;  %v9606_v20 = vld [vmem:[%s12746_s8 + $0x4ac] ss:$28 sps:$4 sm:$0xff]  }
 0x47b   : > { %8185 = vmatpush3.bf16.msra.mxu1 %v9603_v55 }
 0x47c   : > { %8186 = vmatprep.subr.bf16.mxu1 %v9610_v13 }
 0x47d   : > { %6469 = vmatpush1.bf16.msra.mxu0 %v9596_v30 }
 0x47e   : > { %6470 = vmatprep.subr.bf16.mxu0 %v9601_v10 }
 0x47f   : > { %8187 = vmatpush3.bf16.msra.mxu1 %v9611_v42 }
 0x480   : > { %6402 = vmatmul.mubr.bf16.gmra.mrb[104].mxu0 %v11657_v32  ;;  %6624 = vmatmul.mubr.bf16.gmra.mrb[136].mxu1 %v11657_v32  ;;  %v9609_v32 = vld [vmem:[%s12746_s8 + $0x4e4] ss:$28 sps:$4 sm:$0xff]  }
 0x481   : > { %6411 = vmatprep.mubr.bf16.mxu0 %v11695_v7  ;;  %6471 = vmatpush1.bf16.msra.mxu0 %v9599_v31 }
 0x482   : > { %6631 = vmatprep.mubr.bf16.mxu1 %v11695_v7  ;;  %6472 = vmatprep.subr.bf16.mxu0 %v9606_v20  ;;  %v9627_v7 = vld [vmem:[%s12746_s8 + $0x4b0] ss:$28 sps:$4 sm:$0xff]  }
 0x483   : > { %8188 = vmatprep.subr.bf16.mxu1 %v9618_v8 }
 0x484   : > { %8189 = vmatpush3.bf16.msra.mxu1 %v9619_v39 }
 0x485   : > { %6473 = vmatpush1.bf16.msra.mxu0 %v9604_v29  ;;  %8190 = vmatprep.subr.bf16.mxu1 %v9626_v1 }
 0x486   : > { %6474 = vmatprep.subr.bf16.mxu0 %v9609_v32 }
 0x488   : > { %6412 = vmatmul.mubr.bf16.gmra.mrb[108].mxu0 %v11693_v33  ;;  %6632 = vmatmul.mubr.bf16.gmra.mrb[140].mxu1 %v11693_v33  ;;  %v9635_v33 = vld [vmem:[%s12746_s8 + $0x4e8] ss:$28 sps:$4 sm:$0xff]  }
 0x489   : > { %6421 = vmatprep.mubr.bf16.mxu0 %v11731_v62  ;;  %6475 = vmatpush1.bf16.msra.mxu0 %v9607_v45 }
 0x48a   : > { %6639 = vmatprep.mubr.bf16.mxu1 %v11731_v62  ;;  %6476 = vmatprep.subr.bf16.mxu0 %v9614_v46  ;;  %v9622_v62 = vld [vmem:[%s12746_s8 + $0x58c] ss:$28 sps:$4 sm:$0xff]  }
 0x48b   : > { %8191 = vmatpush3.bf16.msra.mxu1 %v9627_v7 }
 0x48c   : > { %8192 = vmatprep.subr.bf16.mxu1 %v9634_v49 }
 0x48d   : > { %6477 = vmatpush1.bf16.msra.mxu0 %v9612_v50 }
 0x48e   : > { %6478 = vmatprep.subr.bf16.mxu0 %v9617_v51 }
 0x48f   : > { %8193 = vmatpush3.bf16.msra.mxu1 %v9635_v33 }
 0x490   : > { %6422 = vmatmul.mubr.bf16.gmra.mrb[112].mxu0 %v11729_v58  ;;  %6640 = vmatmul.mubr.bf16.gmra.mrb[144].mxu1 %v11729_v58  ;;  %v9623_v58 = vld [vmem:[%s12746_s8 + $0x5c0] ss:$28 sps:$4 sm:$0xff]  }
 0x491   : > { %6431 = vmatprep.mubr.bf16.mxu0 %v11767_v4  ;;  %6479 = vmatpush1.bf16.msra.mxu0 %v9615_v11 }
 0x492   : > { %6647 = vmatprep.mubr.bf16.mxu1 %v11767_v4  ;;  %6480 = vmatprep.subr.bf16.mxu0 %v9622_v62  ;;  %v9628_v4 = vld [vmem:[%s12746_s8 + $0x5f8] ss:$28 sps:$4 sm:$0xff]  }
 0x493   : > { %8194 = vmatprep.subr.bf16.mxu1 %v9642_v14 }
 0x494   : > { %8195 = vmatpush3.bf16.msra.mxu1 %v9643_v12 }
 0x495   : > { %6481 = vmatpush1.bf16.msra.mxu0 %v9620_v18 }
 0x496   : > { %6482 = vmatprep.subr.bf16.mxu0 %v9625_v9 }
 0x498   : > { %6432 = vmatmul.mubr.bf16.gmra.mrb[116].mxu0 %v11765_v19  ;;  %6648 = vmatmul.mubr.bf16.gmra.mrb[148].mxu1 %v11765_v19  ;;  %v9638_v19 = vld [vmem:[%s12746_s8 + $0x66c] ss:$28 sps:$4 sm:$0xff]  }
 0x499   : > { %6441 = vmatprep.mubr.bf16.mxu0 %v11803_v40  ;;  %6483 = vmatpush1.bf16.msra.mxu0 %v9623_v58 }
 0x49a   : > { %6655 = vmatprep.mubr.bf16.mxu1 %v11803_v40  ;;  %6484 = vmatprep.subr.bf16.mxu0 %v9630_v41  ;;  %v9636_v40 = vld [vmem:[%s12746_s8 + $0x668] ss:$28 sps:$4 sm:$0xff]  }
 0x49d   : > { %6485 = vmatpush1.bf16.msra.mxu0 %v9628_v4 }
 0x49e   : > { %6486 = vmatprep.subr.bf16.mxu0 %v9633_v2 }
 0x4a0   : > { %6442 = vmatmul.mubr.bf16.gmra.mrb[120].mxu0 %v11801_v44  ;;  %6656 = vmatmul.mubr.bf16.gmra.mrb[152].mxu1 %v11801_v44  ;;  %v9646_v44 = vld [vmem:[%s12746_s8 + $0x6dc] ss:$28 sps:$4 sm:$0xff]  }
 0x4a1   : > { %6451 = vmatprep.mubr.bf16.mxu0 %v11847_v6  ;;  %6487 = vmatpush1.bf16.msra.mxu0 %v9631_v21 }
 0x4a2   : > { %6663 = vmatprep.mubr.bf16.mxu1 %v11847_v6  ;;  %6488 = vmatprep.subr.bf16.mxu0 %v9638_v19  ;;  %v9644_v6 = vld [vmem:[%s12746_s8 + $0x6d8] ss:$28 sps:$4 sm:$0xff]  }
 0x4a5   : > { %6489 = vmatpush1.bf16.msra.mxu0 %v9636_v40 }
 0x4a6   : > { %6490 = vmatprep.subr.bf16.mxu0 %v9641_v22 }
 0x4a8   : > { %6452 = vmatmul.mubr.bf16.gmra.mrb[124].mxu0 %v11845_v15  ;;  %6664 = vmatmul.mubr.bf16.gmra.mrb[156].mxu1 %v11845_v15  ;;  %v4708_v15 = vld [vmem:[%s12747_s9] sm:$0xff] }
 0x4a9   : > { %6491 = vmatpush1.bf16.msra.mxu0 %v9639_v34  ;;  %6494 = vmatprep.mubr.bf16.mxu0 %v11883_v56 }
 0x4aa   : > { %6704 = vmatprep.mubr.bf16.mxu1 %v11883_v56  ;;  %6492 = vmatprep.subr.bf16.mxu0 %v9646_v44  ;;  %v12326_v56 = vrot.slane %v4708_v15, %v10846_v61 }
 0x4ad   : > { %6493 = vmatpush1.bf16.msra.mxu0 %v9644_v6 }
 0x4b0   : > { %6495 = vmatmul.mubr.bf16.vlgmr.msra.gmra.mrb[96].mxu0 %v11881_v52  ;;  %6705 = vmatmul.mubr.bf16.vlgmr.msra.gmra.mrb[160].mxu1 %v11881_v52  ;;  %v12323_v52 = vrot.slane %v4708_v15, %v10843_v60 }
 0x4b1   : > { %6504 = vmatprep.mubr.bf16.mxu0 %v11919_v54  ;;  %6712 = vmatprep.mubr.bf16.mxu1 %v11919_v54  ;;  %v12332_v54 = vrot.slane %v4708_v15, %v10855_v0 }
 0x4b8   : > { %6505 = vmatmul.mubr.bf16.gmra.mrb[100].mxu0 %v11917_v36  ;;  %6713 = vmatmul.mubr.bf16.gmra.mrb[164].mxu1 %v11917_v36  ;;  %v12329_v36 = vrot.slane %v4708_v15, %v10852_v63 }
 0x4b9   : > { %6514 = vmatprep.mubr.bf16.mxu0 %v11955_v17  ;;  %6720 = vmatprep.mubr.bf16.mxu1 %v11955_v17 }
 0x4c0   : > { %6515 = vmatmul.mubr.bf16.gmra.mrb[104].mxu0 %v11953_v48  ;;  %6721 = vmatmul.mubr.bf16.gmra.mrb[168].mxu1 %v11953_v48 }
 0x4c1   : > { %6524 = vmatprep.mubr.bf16.mxu0 %v11991_v38  ;;  %6728 = vmatprep.mubr.bf16.mxu1 %v11991_v38 }
 0x4c8   : > { %6525 = vmatmul.mubr.bf16.gmra.mrb[108].mxu0 %v11989_v35  ;;  %6729 = vmatmul.mubr.bf16.gmra.mrb[172].mxu1 %v11989_v35 }
 0x4c9   : > { %6534 = vmatprep.mubr.bf16.mxu0 %v12027_v24  ;;  %6736 = vmatprep.mubr.bf16.mxu1 %v12027_v24 }
 0x4d0   : > { %6535 = vmatmul.mubr.bf16.gmra.mrb[112].mxu0 %v12025_v23  ;;  %6737 = vmatmul.mubr.bf16.gmra.mrb[176].mxu1 %v12025_v23 }
 0x4d1   : > { %6544 = vmatprep.mubr.bf16.mxu0 %v12051_v47  ;;  %6744 = vmatprep.mubr.bf16.mxu1 %v12051_v47 }
 0x4d8   : > { %6545 = vmatmul.mubr.bf16.gmra.mrb[116].mxu0 %v12049_v16  ;;  %6745 = vmatmul.mubr.bf16.gmra.mrb[180].mxu1 %v12049_v16 }
 0x4d9   : > { %6554 = vmatprep.mubr.bf16.mxu0 %v12075_v37  ;;  %6752 = vmatprep.mubr.bf16.mxu1 %v12075_v37 }
 0x4e0   : > { %6555 = vmatmul.mubr.bf16.gmra.mrb[120].mxu0 %v12073_v27  ;;  %6753 = vmatmul.mubr.bf16.gmra.mrb[184].mxu1 %v12073_v27 }
 0x4e1   : > { %6564 = vmatprep.mubr.bf16.mxu0 %v12099_v53  ;;  %6760 = vmatprep.mubr.bf16.mxu1 %v12099_v53 }
 0x4e8   : > { %6565 = vmatmul.mubr.bf16.gmra.mrb[124].mxu0 %v12097_v5  ;;  %6761 = vmatmul.mubr.bf16.gmra.mrb[188].mxu1 %v12097_v5 }
 0x503   : > { %v6044_v48 = vpop.f32.mrb[64].mxu0  ;;  %v6270_v17 = vpop.f32.mrb[96].mxu1 }
 0x504   : > { %v8340_v35 = vadd.f32 %v6044_v48, %v12323_v52  ;;  %v8372_v38 = vadd.f32 %v6270_v17, %v12326_v56  ;;  %v6046_v23 = vpop.f32.mrb[65].mxu0  ;;  %v6272_v24 = vpop.f32.mrb[97].mxu1 }
 0x505   : > { %v8341_v60 = vadd.f32 %v6046_v23, %v12329_v36  ;;  %v8373_v16 = vadd.f32 %v6272_v24, %v12332_v54  ;;  %v6048_v61 = vpop.f32.mrb[66].mxu0  ;;  %v6274_v47 = vpop.f32.mrb[98].mxu1 }
 0x506   : > { %v6769_v27 = vmul.f32 0.5, %v8340_v35  ;;  %v6771_v63 = vmul.f32 0.5, %v8372_v38  ;;  %v8342_v37 = vadd.f32 %v6048_v61, %v12323_v52  ;;  %v8374_v0 = vadd.f32 %v6274_v47, %v12326_v56  ;;  %v6050_v5 = vpop.f32.mrb[67].mxu0  ;;  %v6276_v53 = vpop.f32.mrb[99].mxu1 }
 0x507   : > { %v6770_v3 = vmul.f32 0.5, %v8341_v60  ;;  %v6772_v25 = vmul.f32 0.5, %v8373_v16  ;;  %v8343_v57 = vadd.f32 %v6050_v5, %v12329_v36  ;;  %v8375_v28 = vadd.f32 %v6276_v53, %v12332_v54 }
 0x508   : > { %9679 = vtanh.f32 %v6769_v27  ;;  %v6776_v43 = vmul.f32 0.5, %v8342_v37  ;;  %v6778_v26 = vmul.f32 0.5, %v8374_v0 }
 0x509   : > { %9681 = vtanh.f32 %v6771_v63  ;;  %v6777_v55 = vmul.f32 0.5, %v8343_v57  ;;  %v6779_v13 = vmul.f32 0.5, %v8375_v28 }
 0x50a   : > { %9683 = vtanh.f32 %v6770_v3 }
 0x50b   : > { %9685 = vtanh.f32 %v6772_v25  ;;  %v6054_v30 = vpop.f32.mrb[68].mxu0  ;;  %v6280_v10 = vpop.f32.mrb[100].mxu1 }
 0x50c   : > { %9687 = vtanh.f32 %v6776_v43  ;;  %v8344_v42 = vadd.f32 %v6054_v30, %v12323_v52  ;;  %v8376_v31 = vadd.f32 %v6280_v10, %v12326_v56  ;;  %v6056_v20 = vpop.f32.mrb[69].mxu0  ;;  %v6282_v8 = vpop.f32.mrb[101].mxu1 }
 0x50d   : > { %9689 = vtanh.f32 %v6778_v26  ;;  %v8345_v39 = vadd.f32 %v6056_v20, %v12329_v36  ;;  %v8377_v29 = vadd.f32 %v6282_v8, %v12332_v54  ;;  %v6058_v1 = vpop.f32.mrb[70].mxu0  ;;  %v6284_v32 = vpop.f32.mrb[102].mxu1 }
 0x50e   : > { %9691 = vtanh.f32 %v6777_v55  ;;  %v6783_v45 = vmul.f32 0.5, %v8344_v42  ;;  %v6785_v46 = vmul.f32 0.5, %v8376_v31  ;;  %v8346_v7 = vadd.f32 %v6058_v1, %v12323_v52  ;;  %v6060_v49 = vpop.f32.mrb[71].mxu0  ;;  %v6286_v50 = vpop.f32.mrb[103].mxu1 }
 0x50f   : > { %9693 = vtanh.f32 %v6779_v13  ;;  %v6784_v51 = vmul.f32 0.5, %v8345_v39  ;;  %v6786_v33 = vmul.f32 0.5, %v8377_v29  ;;  %v8378_v11 = vadd.f32 %v6284_v32, %v12326_v56 }
 0x510   : > { %9695 = vtanh.f32 %v6783_v45  ;;  %v6790_v62 = vmul.f32 0.5, %v8346_v7  ;;  %v8347_v14 = vadd.f32 %v6060_v49, %v12329_v36  ;;  %v8379_v12 = vadd.f32 %v6286_v50, %v12332_v54 }
 0x511   : > { %9697 = vtanh.f32 %v6785_v46  ;;  %v6792_v18 = vmul.f32 0.5, %v8378_v11 }
 0x512   : > { %v9680_v9 = vpop.eup %9679  ;;  %9699 = vtanh.f32 %v6784_v51  ;;  %v6791_v58 = vmul.f32 0.5, %v8347_v14  ;;  %v6793_v2 = vmul.f32 0.5, %v8379_v12 }
 0x513   : > { %v9682_v41 = vpop.eup %9681  ;;  %v6993_v4 = vmul.f32 0.5, %v9680_v9  ;;  %9701 = vtanh.f32 %v6786_v33  ;;  %v6064_v21 = vpop.f32.mrb[72].mxu0 }
 0x514   : > { %v6290_v19 = vpop.f32.mrb[104].mxu1  ;;  %v9684_v40 = vpop.eup %9683  ;;  %v6995_v22 = vmul.f32 0.5, %v9682_v41  ;;  %9703 = vtanh.f32 %v6790_v62  ;;  %v8348_v34 = vadd.f32 %v6064_v21, %v12323_v52 }
 0x515   : > { %v8380_v44 = vadd.f32 %v6290_v19, %v12326_v56  ;;  %v6066_v6 = vpop.f32.mrb[73].mxu0  ;;  %v6292_v15 = vpop.f32.mrb[105].mxu1  ;;  %v7105_v17 = vadd.f32 0.5, %v6993_v4  ;;  %v6994_v35 = vmul.f32 0.5, %v9684_v40  ;;  %9705 = vtanh.f32 %v6792_v18 }
 0x516   : > { %v9686_v48 = vpop.eup %9685  ;;  %v8349_v38 = vadd.f32 %v6066_v6, %v12329_v36  ;;  %v6068_v23 = vpop.f32.mrb[74].mxu0  ;;  %v7107_v16 = vadd.f32 0.5, %v6995_v22  ;;  %9707 = vtanh.f32 %v6791_v58  ;;  %v6797_v47 = vmul.f32 0.5, %v8348_v34 }
 0x517   : > { %v6294_v24 = vpop.f32.mrb[106].mxu1  ;;  %v9688_v60 = vpop.eup %9687  ;;  %v6996_v61 = vmul.f32 0.5, %v9686_v48  ;;  %7217 = vst [vmem:[%s12354_s22] sm:$0xff] %v7105_v17  ;;  %v7106_v0 = vadd.f32 0.5, %v6994_v35  ;;  %9709 = vtanh.f32 %v6793_v2  ;;  %v6799_v53 = vmul.f32 0.5, %v8380_v44 }
 0x518   : > { %v6070_v27 = vpop.f32.mrb[75].mxu0  ;;  %v6296_v63 = vpop.f32.mrb[107].mxu1  ;;  %v7000_v5 = vmul.f32 0.5, %v9688_v60  ;;  %7219 = vst [vmem:[%s12354_s22 + $0x10] sm:$0xff] %v7107_v16  ;;  %9711 = vtanh.f32 %v6797_v47  ;;  %v6798_v28 = vmul.f32 0.5, %v8349_v38  ;;  %v8381_v13 = vadd.f32 %v6292_v15, %v12332_v54 }
 0x519   : > { %v9690_v37 = vpop.eup %9689  ;;  %v7108_v25 = vadd.f32 0.5, %v6996_v61  ;;  %7218 = vst [vmem:[%s12354_s22 + $0x8] sm:$0xff] %v7106_v0  ;;  %9713 = vtanh.f32 %v6799_v53  ;;  %v8350_v31 = vadd.f32 %v6068_v23, %v12323_v52  ;;  %v8382_v1 = vadd.f32 %v6294_v24, %v12326_v56 }
 0x51a   : > { %v9692_v3 = vpop.eup %9691  ;;  %v7002_v57 = vmul.f32 0.5, %v9690_v37  ;;  %v7112_v26 = vadd.f32 0.5, %v7000_v5  ;;  %9715 = vtanh.f32 %v6798_v28  ;;  %v6800_v29 = vmul.f32 0.5, %v8381_v13 }
 0x51b   : > { %v9694_v43 = vpop.eup %9693  ;;  %v7001_v55 = vmul.f32 0.5, %v9692_v3  ;;  %7220 = vst [vmem:[%s12354_s22 + $0x18] sm:$0xff] %v7108_v25  ;;  %v6074_v32 = vpop.f32.mrb[76].mxu0  ;;  %v6804_v50 = vmul.f32 0.5, %v8350_v31  ;;  %v8351_v51 = vadd.f32 %v6070_v27, %v12329_v36  ;;  %v6806_v18 = vmul.f32 0.5, %v8382_v1 }
 0x51c   : > { %v9696_v30 = vpop.eup %9695  ;;  %v7114_v10 = vadd.f32 0.5, %v7002_v57  ;;  %v7003_v42 = vmul.f32 0.5, %v9694_v43  ;;  %7224 = vst [vmem:[%s12354_s22 + $0x38] sm:$0xff] %v7112_v26  ;;  %v6300_v45 = vpop.f32.mrb[108].mxu1  ;;  %9717 = vtanh.f32 %v6800_v29  ;;  %v8383_v6 = vadd.f32 %v6296_v63, %v12332_v54 }
 0x51d   : > { %v9698_v20 = vpop.eup %9697  ;;  %v7113_v8 = vadd.f32 0.5, %v7001_v55  ;;  %v7007_v39 = vmul.f32 0.5, %v9696_v30  ;;  %v6076_v33 = vpop.f32.mrb[77].mxu0  ;;  %9719 = vtanh.f32 %v6804_v50  ;;  %v6805_v21 = vmul.f32 0.5, %v8351_v51 }
 0x51e   : > { %v9700_v46 = vpop.eup %9699  ;;  %7226 = vst [vmem:[%s12354_s22 + $0x48] sm:$0xff] %v7114_v10  ;;  %v7115_v7 = vadd.f32 0.5, %v7003_v42  ;;  %v7009_v49 = vmul.f32 0.5, %v9698_v20  ;;  %v6302_v11 = vpop.f32.mrb[109].mxu1  ;;  %9721 = vtanh.f32 %v6806_v18  ;;  %v8352_v35 = vadd.f32 %v6074_v32, %v12323_v52 }
 0x51f   : > { %v9702_v62 = vpop.eup %9701  ;;  %7225 = vst [vmem:[%s12354_s22 + $0x40] sm:$0xff] %v7113_v8  ;;  %v7119_v14 = vadd.f32 0.5, %v7007_v39  ;;  %v7008_v12 = vmul.f32 0.5, %v9700_v46  ;;  %v6078_v9 = vpop.f32.mrb[78].mxu0  ;;  %9723 = vtanh.f32 %v6805_v21  ;;  %v6807_v60 = vmul.f32 0.5, %v8383_v6 }
 0x520   : > { %v6304_v58 = vpop.f32.mrb[110].mxu1  ;;  %v9704_v41 = vpop.eup %9703  ;;  %7227 = vst [vmem:[%s12354_s22 + $0x50] sm:$0xff] %v7115_v7  ;;  %v7121_v4 = vadd.f32 0.5, %v7009_v49  ;;  %v7010_v2 = vmul.f32 0.5, %v9702_v62  ;;  %v8384_v16 = vadd.f32 %v6300_v45, %v12326_v56  ;;  %v6811_v63 = vmul.f32 0.5, %v8352_v35 }
 0x521   : > { %v6080_v19 = vpop.f32.mrb[79].mxu0  ;;  %v6306_v40 = vpop.f32.mrb[111].mxu1  ;;  %7231 = vst [vmem:[%s12354_s22 + $0x70] sm:$0xff] %v7119_v14  ;;  %v7120_v34 = vadd.f32 0.5, %v7008_v12  ;;  %v7014_v44 = vmul.f32 0.5, %v9704_v41  ;;  %v8353_v37 = vadd.f32 %v6076_v33, %v12329_v36  ;;  %9725 = vtanh.f32 %v6807_v60 }
 0x522   : > { %v9706_v22 = vpop.eup %9705  ;;  %7233 = vst [vmem:[%s12354_s22 + $0x80] sm:$0xff] %v7121_v4  ;;  %v7122_v48 = vadd.f32 0.5, %v7010_v2  ;;  %v6813_v3 = vmul.f32 0.5, %v8384_v16  ;;  %9727 = vtanh.f32 %v6811_v63  ;;  %v8385_v31 = vadd.f32 %v6302_v11, %v12332_v54 }
 0x523   : > { %v9708_v15 = vpop.eup %9707  ;;  %v7016_v17 = vmul.f32 0.5, %v9706_v22  ;;  %7232 = vst [vmem:[%s12354_s22 + $0x78] sm:$0xff] %v7120_v34  ;;  %v7126_v23 = vadd.f32 0.5, %v7014_v44  ;;  %v6084_v25 = vpop.f32.mrb[80].mxu0  ;;  %v6812_v55 = vmul.f32 0.5, %v8353_v37  ;;  %v8354_v29 = vadd.f32 %v6078_v9, %v12323_v52 }
 0x524   : > { %v9710_v38 = vpop.eup %9709  ;;  %v7015_v24 = vmul.f32 0.5, %v9708_v15  ;;  %7234 = vst [vmem:[%s12354_s22 + $0x88] sm:$0xff] %v7122_v48  ;;  %v6310_v57 = vpop.f32.mrb[112].mxu1  ;;  %9729 = vtanh.f32 %v6813_v3  ;;  %v8386_v1 = vadd.f32 %v6304_v58, %v12326_v56  ;;  %v6814_v49 = vmul.f32 0.5, %v8385_v31 }
 0x525   : > { %v9712_v61 = vpop.eup %9711  ;;  %v7128_v47 = vadd.f32 0.5, %v7016_v17  ;;  %v7017_v27 = vmul.f32 0.5, %v9710_v38  ;;  %7238 = vst [vmem:[%s12354_s22 + $0xa8] sm:$0xff] %v7126_v23  ;;  %v6086_v13 = vpop.f32.mrb[81].mxu0  ;;  %9731 = vtanh.f32 %v6812_v55  ;;  %v8355_v50 = vadd.f32 %v6080_v19, %v12329_v36 }
 0x526   : > { %v9714_v0 = vpop.eup %9713  ;;  %v7127_v5 = vadd.f32 0.5, %v7015_v24  ;;  %v7021_v53 = vmul.f32 0.5, %v9712_v61  ;;  %v6312_v30 = vpop.f32.mrb[113].mxu1  ;;  %v8387_v51 = vadd.f32 %v6306_v40, %v12332_v54  ;;  %v6818_v62 = vmul.f32 0.5, %v8354_v29 }
 0x527   : > { %v9716_v28 = vpop.eup %9715  ;;  %7240 = vst [vmem:[%s12354_s22 + $0xb8] sm:$0xff] %v7128_v47  ;;  %v7129_v43 = vadd.f32 0.5, %v7017_v27  ;;  %v7023_v26 = vmul.f32 0.5, %v9714_v0  ;;  %v6088_v20 = vpop.f32.mrb[82].mxu0  ;;  %v6820_v14 = vmul.f32 0.5, %v8386_v1  ;;  %v8356_v12 = vadd.f32 %v6084_v25, %v12323_v52 }
 0x528   : > { %7239 = vst [vmem:[%s12354_s22 + $0xb0] sm:$0xff] %v7127_v5  ;;  %v7133_v10 = vadd.f32 0.5, %v7021_v53  ;;  %v7022_v42 = vmul.f32 0.5, %v9716_v28  ;;  %v12383_v8 = vpop.f32.mrb[114].mxu1  ;;  %v12388_v32 = vpop.f32.mrb[83].mxu0  ;;  %9733 = vtanh.f32 %v6814_v49  ;;  %v6819_v58 = vmul.f32 0.5, %v8355_v50 }
 0x529   : > { %7241 = vst [vmem:[%s12354_s22 + $0xc0] sm:$0xff] %v7129_v43  ;;  %v7135_v39 = vadd.f32 0.5, %v7023_v26  ;;  %v12390_v45 = vpop.f32.mrb[115].mxu1  ;;  %v9718_v46 = vpop.eup %9717  ;;  %v6821_v41 = vmul.f32 0.5, %v8387_v51  ;;  %9735 = vtanh.f32 %v6818_v62  ;;  %v6825_v19 = vmul.f32 0.5, %v8356_v12 }
 0x52a   : > { %7245 = vst [vmem:[%s12354_s22 + $0xe0] sm:$0xff] %v7133_v10  ;;  %v7134_v7 = vadd.f32 0.5, %v7022_v42  ;;  %v9720_v33 = vpop.eup %9719  ;;  %v7024_v11 = vmul.f32 0.5, %v9718_v46  ;;  %9737 = vtanh.f32 %v6820_v14  ;;  %v8388_v34 = vadd.f32 %v6310_v57, %v12326_v56 }
 0x52b   : > { %7247 = vst [vmem:[%s12354_s22 + $0xf0] sm:$0xff] %v7135_v39  ;;  %v9722_v18 = vpop.eup %9721  ;;  %v7028_v9 = vmul.f32 0.5, %v9720_v33  ;;  %v6094_v44 = vpop.f32.mrb[84].mxu0  ;;  %9739 = vtanh.f32 %v6819_v58  ;;  %v8357_v48 = vadd.f32 %v6086_v13, %v12329_v36  ;;  %v8389_v17 = vadd.f32 %v6312_v30, %v12332_v54 }
 0x52c   : > { %7246 = vst [vmem:[%s12354_s22 + $0xe8] sm:$0xff] %v7134_v7  ;;  %v9724_v4 = vpop.eup %9723  ;;  %v7136_v2 = vadd.f32 0.5, %v7024_v11  ;;  %v7030_v21 = vmul.f32 0.5, %v9722_v18  ;;  %v6320_v6 = vpop.f32.mrb[116].mxu1  ;;  %9741 = vtanh.f32 %v6821_v41  ;;  %v6827_v60 = vmul.f32 0.5, %v8388_v34 }
 0x52d   : > { %v7140_v40 = vadd.f32 0.5, %v7028_v9  ;;  %v7029_v22 = vmul.f32 0.5, %v9724_v4  ;;  %v6096_v35 = vpop.f32.mrb[85].mxu0  ;;  %v6322_v38 = vpop.f32.mrb[117].mxu1  ;;  %v8358_v16 = vadd.f32 %v6088_v20, %v12323_v52  ;;  %9743 = vtanh.f32 %v6825_v19 }
 0x52e   : > { %7248 = vst [vmem:[%s12354_s22 + $0xf8] sm:$0xff] %v7136_v2  ;;  %v7142_v15 = vadd.f32 0.5, %v7030_v21  ;;  %v9726_v23 = vpop.eup %9725  ;;  %v12404_v61 = vpop.f32.mrb[86].mxu0  ;;  %v6826_v37 = vmul.f32 0.5, %v8357_v48  ;;  %v6828_v0 = vmul.f32 0.5, %v8389_v17  ;;  %9745 = vtanh.f32 %v6827_v60 }
 0x52f   : > { %7252 = vst [vmem:[%s12354_s22 + $0x118] sm:$0xff] %v7140_v40  ;;  %v7141_v24 = vadd.f32 0.5, %v7029_v22  ;;  %v12406_v47 = vpop.f32.mrb[118].mxu1  ;;  %v9728_v27 = vpop.eup %9727  ;;  %v7031_v63 = vmul.f32 0.5, %v9726_v23  ;;  %v6832_v57 = vmul.f32 0.5, %v8358_v16  ;;  %v8390_v28 = vadd.f32 %v12383_v8, %v12326_v56 }
 0x530   : > { %7254 = vst [vmem:[%s12354_s22 + $0x128] sm:$0xff] %v7142_v15  ;;  %v12409_v5 = vpop.f32.mrb[87].mxu0  ;;  %v12411_v53 = vpop.f32.mrb[119].mxu1  ;;  %v7035_v25 = vmul.f32 0.5, %v9728_v27  ;;  %9747 = vtanh.f32 %v6826_v37  ;;  %v8359_v13 = vadd.f32 %v12388_v32, %v12329_v36  ;;  %v8391_v8 = vadd.f32 %v12390_v45, %v12332_v54 }
 0x531   : > { %v9730_v3 = vpop.eup %9729  ;;  %7253 = vst [vmem:[%s12354_s22 + $0x120] sm:$0xff] %v7141_v24  ;;  %v7143_v26 = vadd.f32 0.5, %v7031_v63  ;;  %9749 = vtanh.f32 %v6828_v0  ;;  %v6834_v42 = vmul.f32 0.5, %v8390_v28  ;;  %v8360_v1 = vadd.f32 %v6094_v44, %v12323_v52 }
 0x532   : > { %v9732_v43 = vpop.eup %9731  ;;  %v7037_v55 = vmul.f32 0.5, %v9730_v3  ;;  %v7147_v30 = vadd.f32 0.5, %v7035_v25  ;;  %9751 = vtanh.f32 %v6832_v57  ;;  %v6833_v20 = vmul.f32 0.5, %v8359_v13 }
 0x533   : > { %v7036_v10 = vmul.f32 0.5, %v9732_v43  ;;  %7255 = vst [vmem:[%s12354_s22 + $0x130] sm:$0xff] %v7143_v26  ;;  %v9734_v39 = vpop.eup %9733  ;;  %9753 = vtanh.f32 %v6834_v42  ;;  %v8392_v32 = vadd.f32 %v6320_v6, %v12326_v56  ;;  %v12424_v46 = vpop.f32.mrb[88].mxu0  ;;  %v6835_v51 = vmul.f32 0.5, %v8391_v8 }
 0x534   : > { %v7149_v31 = vadd.f32 0.5, %v7037_v55  ;;  %7259 = vst [vmem:[%s12354_s22 + $0x150] sm:$0xff] %v7147_v30  ;;  %v12426_v7 = vpop.f32.mrb[120].mxu1  ;;  %v9736_v49 = vpop.eup %9735  ;;  %v7038_v50 = vmul.f32 0.5, %v9734_v39  ;;  %9755 = vtanh.f32 %v6833_v20  ;;  %v8361_v45 = vadd.f32 %v6096_v35, %v12329_v36 }
 0x535   : > { %v7148_v29 = vadd.f32 0.5, %v7036_v10  ;;  %v12430_v33 = vpop.f32.mrb[89].mxu0  ;;  %v12432_v11 = vpop.f32.mrb[121].mxu1  ;;  %v7042_v14 = vmul.f32 0.5, %v9736_v49  ;;  %v6839_v12 = vmul.f32 0.5, %v8360_v1  ;;  %v6841_v18 = vmul.f32 0.5, %v8392_v32 }
 0x536   : > { %7261 = vst [vmem:[%s12354_s22 + $0x160] sm:$0xff] %v7149_v31  ;;  %v9738_v62 = vpop.eup %9737  ;;  %v8393_v9 = vadd.f32 %v6322_v38, %v12332_v54  ;;  %v12436_v58 = vpop.f32.mrb[90].mxu0  ;;  %v7150_v2 = vadd.f32 0.5, %v7038_v50  ;;  %9757 = vtanh.f32 %v6835_v51  ;;  %v6840_v19 = vmul.f32 0.5, %v8361_v45 }
 0x537   : > { %7260 = vst [vmem:[%s12354_s22 + $0x158] sm:$0xff] %v7148_v29  ;;  %v12438_v41 = vpop.f32.mrb[122].mxu1  ;;  %v9740_v4 = vpop.eup %9739  ;;  %v7044_v21 = vmul.f32 0.5, %v9738_v62  ;;  %v7154_v44 = vadd.f32 0.5, %v7042_v14  ;;  %9759 = vtanh.f32 %v6839_v12  ;;  %v8362_v38 = vadd.f32 %v12404_v61, %v12323_v52 }
 0x538   : > { %v12440_v40 = vpop.f32.mrb[91].mxu0  ;;  %v12442_v22 = vpop.f32.mrb[123].mxu1  ;;  %v7043_v6 = vmul.f32 0.5, %v9740_v4  ;;  %v6842_v15 = vmul.f32 0.5, %v8393_v9  ;;  %7262 = vst [vmem:[%s12354_s22 + $0x168] sm:$0xff] %v7150_v2  ;;  %9761 = vtanh.f32 %v6841_v18  ;;  %v8394_v16 = vadd.f32 %v12406_v47, %v12326_v56 }
 0x539   : > { %v9742_v34 = vpop.eup %9741  ;;  %v7156_v17 = vadd.f32 0.5, %v7044_v21  ;;  %7266 = vst [vmem:[%s12354_s22 + $0x188] sm:$0xff] %v7154_v44  ;;  %9763 = vtanh.f32 %v6840_v19  ;;  %v6846_v0 = vmul.f32 0.5, %v8362_v38  ;;  %v8363_v28 = vadd.f32 %v12409_v5, %v12329_v36 }
 0x53a   : > { %v9744_v48 = vpop.eup %9743  ;;  %v7045_v35 = vmul.f32 0.5, %v9742_v34  ;;  %v7155_v24 = vadd.f32 0.5, %v7043_v6  ;;  %9765 = vtanh.f32 %v6842_v15  ;;  %v6848_v57 = vmul.f32 0.5, %v8394_v16 }
 0x53b   : > { %v9746_v23 = vpop.eup %9745  ;;  %v7049_v60 = vmul.f32 0.5, %v9744_v48  ;;  %7268 = vst [vmem:[%s12354_s22 + $0x198] sm:$0xff] %v7156_v17  ;;  %v12454_v43 = vpop.f32.mrb[92].mxu0  ;;  %9767 = vtanh.f32 %v6846_v0  ;;  %v8395_v30 = vadd.f32 %v12411_v53, %v12332_v54  ;;  %v6847_v8 = vmul.f32 0.5, %v8363_v28 }
 0x53c   : > { %v9748_v27 = vpop.eup %9747  ;;  %v7157_v63 = vadd.f32 0.5, %v7045_v35  ;;  %v7051_v37 = vmul.f32 0.5, %v9746_v23  ;;  %7267 = vst [vmem:[%s12354_s22 + $0x190] sm:$0xff] %v7155_v24  ;;  %v12456_v26 = vpop.f32.mrb[124].mxu1  ;;  %9769 = vtanh.f32 %v6848_v57  ;;  %v8364_v50 = vadd.f32 %v12424_v46, %v12323_v52 }
 0x53d   : > { %v9750_v3 = vpop.eup %9749  ;;  %v7161_v25 = vadd.f32 0.5, %v7049_v60  ;;  %v7050_v61 = vmul.f32 0.5, %v9748_v27  ;;  %v12461_v10 = vpop.f32.mrb[93].mxu0  ;;  %v6849_v49 = vmul.f32 0.5, %v8395_v30  ;;  %9771 = vtanh.f32 %v6847_v8 }
 0x53e   : > { %v9752_v47 = vpop.eup %9751  ;;  %7269 = vst [vmem:[%s12354_s22 + $0x1a0] sm:$0xff] %v7157_v63  ;;  %v7163_v55 = vadd.f32 0.5, %v7051_v37  ;;  %v7052_v13 = vmul.f32 0.5, %v9750_v3  ;;  %v12463_v42 = vpop.f32.mrb[125].mxu1  ;;  %v8396_v12 = vadd.f32 %v12426_v7, %v12326_v56  ;;  %v6853_v4 = vmul.f32 0.5, %v8364_v50 }
 0x53f   : > { %v9754_v31 = vpop.eup %9753  ;;  %7273 = vst [vmem:[%s12354_s22 + $0x1c0] sm:$0xff] %v7161_v25  ;;  %v7162_v5 = vadd.f32 0.5, %v7050_v61  ;;  %v7056_v20 = vmul.f32 0.5, %v9752_v47  ;;  %v12466_v39 = vpop.f32.mrb[94].mxu0  ;;  %9773 = vtanh.f32 %v6849_v49  ;;  %v8365_v46 = vadd.f32 %v12430_v33, %v12329_v36 }
 0x540   : > { %v12468_v29 = vpop.f32.mrb[126].mxu1  ;;  %v9756_v1 = vpop.eup %9755  ;;  %7275 = vst [vmem:[%s12354_s22 + $0x1d0] sm:$0xff] %v7163_v55  ;;  %v7164_v32 = vadd.f32 0.5, %v7052_v13  ;;  %v7058_v53 = vmul.f32 0.5, %v9754_v31  ;;  %v6855_v34 = vmul.f32 0.5, %v8396_v12  ;;  %v8397_v44 = vadd.f32 %v12432_v11, %v12332_v54 }
 0x541   : > { %v12473_v51 = vpop.f32.mrb[95].mxu0  ;;  %v12475_v45 = vpop.f32.mrb[127].mxu1  ;;  %7274 = vst [vmem:[%s12354_s22 + $0x1c8] sm:$0xff] %v7162_v5  ;;  %v7168_v62 = vadd.f32 0.5, %v7056_v20  ;;  %v7057_v14 = vmul.f32 0.5, %v9756_v1  ;;  %9775 = vtanh.f32 %v6853_v4  ;;  %v6854_v15 = vmul.f32 0.5, %v8365_v46 }
 0x542   : > { %v9758_v18 = vpop.eup %9757  ;;  %7276 = vst [vmem:[%s12354_s22 + $0x1d8] sm:$0xff] %v7164_v32  ;;  %v7170_v9 = vadd.f32 0.5, %v7058_v53  ;;  %v8366_v48 = vadd.f32 %v12436_v58, %v12323_v52  ;;  %9777 = vtanh.f32 %v6855_v34  ;;  %v6856_v38 = vmul.f32 0.5, %v8397_v44 }
 0x543   : > { %v9760_v2 = vpop.eup %9759  ;;  %7280 = vst [vmem:[%s12354_s22 + $0x1f8] sm:$0xff] %v7168_v62  ;;  %v7169_v21 = vadd.f32 0.5, %v7057_v14  ;;  %v7059_v19 = vmul.f32 0.5, %v9758_v18  ;;  %v12490_v23 = vpop.f32.mrb[128].mxu1  ;;  %9779 = vtanh.f32 %v6854_v15  ;;  %v8398_v37 = vadd.f32 %v12438_v41, %v12326_v56 }
 0x544   : > { %v9762_v6 = vpop.eup %9761  ;;  %7282 = vst [vmem:[%s12354_s22 + $0x208] sm:$0xff] %v7170_v9  ;;  %v7063_v7 = vmul.f32 0.5, %v9760_v2  ;;  %v6860_v16 = vmul.f32 0.5, %v8366_v48  ;;  %v12492_v27 = vpop.f32.mrb[129].mxu1  ;;  %9781 = vtanh.f32 %v6856_v38  ;;  %v8367_v61 = vadd.f32 %v12440_v40, %v12329_v36 }
 0x545   : > { %v9764_v17 = vpop.eup %9763  ;;  %7281 = vst [vmem:[%s12354_s22 + $0x200] sm:$0xff] %v7169_v21  ;;  %v7171_v33 = vadd.f32 0.5, %v7059_v19  ;;  %v7065_v35 = vmul.f32 0.5, %v9762_v6  ;;  %v12497_v0 = vpop.f32.mrb[130].mxu1  ;;  %v8399_v57 = vadd.f32 %v12442_v22, %v12332_v54  ;;  %v6862_v41 = vmul.f32 0.5, %v8398_v37 }
 0x546   : > { %v9766_v24 = vpop.eup %9765  ;;  %v7175_v11 = vadd.f32 0.5, %v7063_v7  ;;  %v7064_v60 = vmul.f32 0.5, %v9764_v17  ;;  %9783 = vtanh.f32 %v6860_v16  ;;  %v12504_v28 = vpop.f32.mrb[131].mxu1  ;;  %v8368_v30 = vadd.f32 %v12454_v43, %v12323_v52 }
 0x547   : > { %7283 = vst [vmem:[%s12354_s22 + $0x210] sm:$0xff] %v7171_v33  ;;  %v7177_v63 = vadd.f32 0.5, %v7065_v35  ;;  %v7066_v58 = vmul.f32 0.5, %v9766_v24  ;;  %v9768_v3 = vpop.eup %9767  ;;  %v6861_v5 = vmul.f32 0.5, %v8367_v61  ;;  %v6863_v20 = vmul.f32 0.5, %v8399_v57 }
 0x548   : > { %7287 = vst [vmem:[%s12354_s22 + $0x230] sm:$0xff] %v7175_v11  ;;  %v7176_v25 = vadd.f32 0.5, %v7064_v60  ;;  %v9770_v47 = vpop.eup %9769  ;;  %v7070_v13 = vmul.f32 0.5, %v9768_v3  ;;  %v8400_v40 = vadd.f32 %v12456_v26, %v12326_v56  ;;  %9785 = vtanh.f32 %v6862_v41 }
 0x549   : > { %7289 = vst [vmem:[%s12354_s22 + $0x240] sm:$0xff] %v7177_v63  ;;  %v7178_v55 = vadd.f32 0.5, %v7066_v58  ;;  %v7072_v31 = vmul.f32 0.5, %v9770_v47  ;;  %v9772_v8 = vpop.eup %9771  ;;  %v6867_v1 = vmul.f32 0.5, %v8368_v30  ;;  %v8369_v32 = vadd.f32 %v12461_v10, %v12329_v36 }
 0x54a   : > { %7288 = vst [vmem:[%s12354_s22 + $0x238] sm:$0xff] %v7176_v25  ;;  %v7182_v22 = vadd.f32 0.5, %v7070_v13  ;;  %v9774_v53 = vpop.eup %9773  ;;  %v7071_v43 = vmul.f32 0.5, %v9772_v8  ;;  %9787 = vtanh.f32 %v6861_v5  ;;  %v6869_v50 = vmul.f32 0.5, %v8400_v40 }
 0x54b   : > { %7290 = vst [vmem:[%s12354_s22 + $0x248] sm:$0xff] %v7178_v55  ;;  %v7184_v49 = vadd.f32 0.5, %v7072_v31  ;;  %v7073_v62 = vmul.f32 0.5, %v9774_v53  ;;  %9789 = vtanh.f32 %v6863_v20  ;;  %v6868_v14 = vmul.f32 0.5, %v8369_v32  ;;  %v8138_v12 = vpop.f32.mrb[132].mxu1  ;;  %v9776_v18 = vpop.eup %9775 }
 0x54c   : > { %7294 = vst [vmem:[%s12354_s22 + $0x268] sm:$0xff] %v7182_v22  ;;  %v8401_v26 = vadd.f32 %v12463_v42, %v12332_v54  ;;  %v7183_v9 = vadd.f32 0.5, %v7071_v43  ;;  %9791 = vtanh.f32 %v6867_v1  ;;  %v8370_v10 = vadd.f32 %v12466_v39, %v12323_v52  ;;  %v8139_v46 = vpop.f32.mrb[133].mxu1  ;;  %v9778_v2 = vpop.eup %9777 }
 0x54d   : > { %7296 = vst [vmem:[%s12354_s22 + $0x278] sm:$0xff] %v7184_v49  ;;  %v8402_v4 = vadd.f32 %v12468_v29, %v12326_v56  ;;  %v7185_v21 = vadd.f32 0.5, %v7073_v62  ;;  %v7077_v19 = vmul.f32 0.5, %v9776_v18  ;;  %9793 = vtanh.f32 %v6869_v50  ;;  %v8141_v42 = vpop.f32.mrb[134].mxu1  ;;  %v9780_v44 = vpop.eup %9779 }
 0x54e   : > { %v6870_v34 = vmul.f32 0.5, %v8401_v26  ;;  %7295 = vst [vmem:[%s12354_s22 + $0x270] sm:$0xff] %v7183_v9  ;;  %v7079_v6 = vmul.f32 0.5, %v9778_v2  ;;  %9795 = vtanh.f32 %v6868_v14  ;;  %v6874_v7 = vmul.f32 0.5, %v8370_v10  ;;  %v8142_v48 = vpop.f32.mrb[135].mxu1  ;;  %v9782_v52 = vpop.eup %9781 }
 0x54f   : > { %v6876_v15 = vmul.f32 0.5, %v8402_v4  ;;  %7297 = vst [vmem:[%s12354_s22 + $0x280] sm:$0xff] %v7185_v21  ;;  %v7189_v56 = vadd.f32 0.5, %v7077_v19  ;;  %v7078_v39 = vmul.f32 0.5, %v9780_v44  ;;  %v8371_v29 = vadd.f32 %v12473_v51, %v12329_v36 }
 0x550   : > { %9797 = vtanh.f32 %v6870_v34  ;;  %v9784_v17 = vpop.eup %9783  ;;  %v7191_v33 = vadd.f32 0.5, %v7079_v6  ;;  %v7080_v35 = vmul.f32 0.5, %v9782_v52  ;;  %v8403_v38 = vadd.f32 %v12475_v45, %v12332_v54 }
 0x551   : > { %9799 = vtanh.f32 %v6874_v7  ;;  %7301 = vst [vmem:[%s12354_s22 + $0x2a0] sm:$0xff] %v7189_v56  ;;  %v7190_v24 = vadd.f32 0.5, %v7078_v39  ;;  %v7084_v11 = vmul.f32 0.5, %v9784_v17  ;;  %v6875_v60 = vmul.f32 0.5, %v8371_v29 }
 0x552   : > { %9801 = vtanh.f32 %v6876_v15  ;;  %7303 = vst [vmem:[%s12354_s22 + $0x2b0] sm:$0xff] %v7191_v33  ;;  %v7192_v16 = vadd.f32 0.5, %v7080_v35  ;;  %v6877_v63 = vmul.f32 0.5, %v8403_v38  ;;  %v12533_v36 = vadd.f32 %v12492_v27, %v12490_v23  ;;  %v9786_v58 = vpop.eup %9785 }
 0x553   : > { %v12537_v51 = vadd.f32 %v12504_v28, %v12497_v0  ;;  %7302 = vst [vmem:[%s12354_s22 + $0x2a8] sm:$0xff] %v7190_v24  ;;  %v7196_v54 = vadd.f32 0.5, %v7084_v11  ;;  %9803 = vtanh.f32 %v6875_v60  ;;  %v12540_v45 = vadd.f32 %v8139_v46, %v8138_v12  ;;  %v8144_v3 = vpop.f32.mrb[136].mxu1 }
 0x554   : > { %v12542_v37 = vadd.f32 %v8142_v48, %v8141_v42  ;;  %v9788_v25 = vpop.eup %9787  ;;  %7304 = vst [vmem:[%s12354_s22 + $0x2b8] sm:$0xff] %v7192_v16  ;;  %v7086_v61 = vmul.f32 0.5, %v9786_v58  ;;  %9805 = vtanh.f32 %v6877_v63  ;;  %v8145_v23 = vpop.f32.mrb[137].mxu1 }
 0x555   : > { %v9790_v27 = vpop.eup %9789  ;;  %7308 = vst [vmem:[%s12354_s22 + $0x2d8] sm:$0xff] %v7196_v54  ;;  %v7085_v57 = vmul.f32 0.5, %v9788_v25  ;;  %v12546_v0 = vadd.f32 %v8145_v23, %v8144_v3  ;;  %v8147_v28 = vpop.f32.mrb[138].mxu1 }
 0x556   : > { %v9792_v47 = vpop.eup %9791  ;;  %v7198_v55 = vadd.f32 0.5, %v7086_v61  ;;  %v7087_v13 = vmul.f32 0.5, %v9790_v27  ;;  %v8148_v41 = vpop.f32.mrb[139].mxu1 }
 0x557   : > { %v9794_v30 = vpop.eup %9793  ;;  %v7197_v31 = vadd.f32 0.5, %v7085_v57  ;;  %v7091_v5 = vmul.f32 0.5, %v9792_v47  ;;  %v12548_v20 = vadd.f32 %v8148_v41, %v8147_v28  ;;  %v4728_v57 = vsub.s32 4, %v10840_v59 }
 0x558   : > { %v9796_v40 = vpop.eup %9795  ;;  %7310 = vst [vmem:[%s12354_s22 + $0x2e8] sm:$0xff] %v7198_v55  ;;  %v7199_v8 = vadd.f32 0.5, %v7087_v13  ;;  %v7093_v22 = vmul.f32 0.5, %v9794_v30  ;;  %v4736_v28 = vsub.s32 6, %v10840_v59  ;;  %v4732_v13 = vsub.s32 5, %v10840_v59 }
 0x559   : > { %7309 = vst [vmem:[%s12354_s22 + $0x2e0] sm:$0xff] %v7197_v31  ;;  %v7203_v32 = vadd.f32 0.5, %v7091_v5  ;;  %v7092_v53 = vmul.f32 0.5, %v9796_v40  ;;  %v9903_v31 = vld [vmem:[%s12747_s9] sm:$0xff] }
 0x55a   : > { %v9798_v1 = vpop.eup %9797  ;;  %7311 = vst [vmem:[%s12354_s22 + $0x2f0] sm:$0xff] %v7199_v8  ;;  %v7205_v43 = vadd.f32 0.5, %v7093_v22  ;;  %v12587_v5 = vrot.slane %v9903_v31, %v4728_v57  ;;  %v12589_v40 = vrot.slane %v9903_v31, %v4736_v28  ;;  %v12591_v8 = vrot.slane %v9903_v31, %v4732_v13 }
 0x55b   : > { %v9800_v49 = vpop.eup %9799  ;;  %v7094_v50 = vmul.f32 0.5, %v9798_v1  ;;  %7315 = vst [vmem:[%s12354_s22 + $0x310] sm:$0xff] %v7203_v32  ;;  %v7204_v14 = vadd.f32 0.5, %v7092_v53  ;;  %v8150_v12 = vpop.f32.mrb[140].mxu1 }
 0x55c   : > { %v9802_v62 = vpop.eup %9801  ;;  %v7098_v26 = vmul.f32 0.5, %v9800_v49  ;;  %7317 = vst [vmem:[%s12354_s22 + $0x320] sm:$0xff] %v7205_v43  ;;  %v8151_v10 = vpop.f32.mrb[141].mxu1  ;;  %v6610_v59 = vadd.f32 %v12533_v36, %v12589_v40 }
 0x55d   : > { %v7206_v18 = vadd.f32 0.5, %v7094_v50  ;;  %v7100_v9 = vmul.f32 0.5, %v9802_v62  ;;  %v9804_v4 = vpop.eup %9803  ;;  %7316 = vst [vmem:[%s12354_s22 + $0x318] sm:$0xff] %v7204_v14  ;;  %v12556_v2 = vadd.f32 %v8151_v10, %v8150_v12  ;;  %v8153_v21 = vpop.f32.mrb[142].mxu1 }
 0x55e   : > { %v7210_v46 = vadd.f32 0.5, %v7098_v26  ;;  %v9806_v19 = vpop.eup %9805  ;;  %v7099_v42 = vmul.f32 0.5, %v9804_v4  ;;  %v8154_v44 = vpop.f32.mrb[143].mxu1  ;;  %v6613_v26 = vadd.f32 %v12537_v51, %v12589_v40 }
 0x55f   : > { %7318 = vst [vmem:[%s12354_s22 + $0x328] sm:$0xff] %v7206_v18  ;;  %v7212_v34 = vadd.f32 0.5, %v7100_v9  ;;  %v7101_v6 = vmul.f32 0.5, %v9806_v19  ;;  %v12560_v7 = vadd.f32 %v8154_v44, %v8153_v21 }
 0x560   : > { %7322 = vst [vmem:[%s12354_s22 + $0x348] sm:$0xff] %v7210_v46  ;;  %v7211_v15 = vadd.f32 0.5, %v7099_v42 }
 0x561   : > { %7324 = vst [vmem:[%s12354_s22 + $0x358] sm:$0xff] %v7212_v34  ;;  %v7213_v48 = vadd.f32 0.5, %v7101_v6 }
 0x562   : > { %7323 = vst [vmem:[%s12354_s22 + $0x350] sm:$0xff] %v7211_v15 }
 0x563   : > { %7325 = vst [vmem:[%s12354_s22 + $0x360] sm:$0xff] %v7213_v48  ;;  %v8156_v52 = vpop.f32.mrb[144].mxu1 }
 0x564   : > { %v8157_v56 = vpop.f32.mrb[145].mxu1 }
 0x565   : > { %v12565_v39 = vadd.f32 %v8157_v56, %v8156_v52  ;;  %v8159_v29 = vpop.f32.mrb[146].mxu1 }
 0x566   : > { %v8160_v17 = vpop.f32.mrb[147].mxu1 }
 0x567   : > { %v12567_v33 = vadd.f32 %v8160_v17, %v8159_v29  ;;  %v6618_v29 = vadd.f32 %v12540_v45, %v12589_v40  ;;  %v6626_v45 = vadd.f32 %v12546_v0, %v12589_v40 }
 0x56b   : > { %v8162_v35 = vpop.f32.mrb[148].mxu1 }
 0x56c   : > { %v8163_v38 = vpop.f32.mrb[149].mxu1 }
 0x56d   : > { %v12569_v24 = vadd.f32 %v8163_v38, %v8162_v35  ;;  %v8165_v11 = vpop.f32.mrb[150].mxu1 }
 0x56e   : > { %v8166_v60 = vpop.f32.mrb[151].mxu1 }
 0x56f   : > { %v12571_v16 = vadd.f32 %v8166_v60, %v8165_v11  ;;  %v6621_v60 = vadd.f32 %v12542_v37, %v12589_v40 }
 0x573   : > { %v8168_v63 = vpop.f32.mrb[152].mxu1 }
 0x574   : > { %v8169_v58 = vpop.f32.mrb[153].mxu1 }
 0x575   : > { %v12573_v54 = vadd.f32 %v8169_v58, %v8168_v63  ;;  %v8171_v3 = vpop.f32.mrb[154].mxu1 }
 0x576   : > { %v8172_v25 = vpop.f32.mrb[155].mxu1 }
 0x577   : > { %v12575_v61 = vadd.f32 %v8172_v25, %v8171_v3 }
 0x57b   : > { %v8174_v23 = vpop.f32.mrb[156].mxu1 }
 0x57c   : > { %v8175_v27 = vpop.f32.mrb[157].mxu1 }
 0x57d   : > { %v12579_v47 = vadd.f32 %v8175_v27, %v8174_v23  ;;  %v8177_v55 = vpop.f32.mrb[158].mxu1 }
 0x57e   : > { %v8178_v41 = vpop.f32.mrb[159].mxu1 }
 0x57f   : > { %v12582_v30 = vadd.f32 %v8178_v41, %v8177_v55 }
 0x583   : > { %v6496_v22 = vpop.f32.mrb[96].mxu0  ;;  %v8196_v1 = vpop.f32.mrb[160].mxu1 }
 0x584   : > { %v8404_v32 = vadd.f32 %v6496_v22, %v12587_v5  ;;  %v6498_v53 = vpop.f32.mrb[97].mxu0  ;;  %v8197_v49 = vpop.f32.mrb[161].mxu1  ;;  %v12613_v22 = vadd.f32 %v12548_v20, %v12589_v40 }
 0x585   : > { %v8405_v43 = vadd.f32 %v6498_v53, %v12591_v8  ;;  %v8198_v50 = vadd.f32 %v8197_v49, %v8196_v1  ;;  %v6500_v62 = vpop.f32.mrb[98].mxu0  ;;  %v8199_v14 = vpop.f32.mrb[162].mxu1  ;;  %v12617_v1 = vadd.f32 %v12556_v2, %v12589_v40  ;;  %v12625_v53 = vadd.f32 %v12565_v39, %v12589_v40 }
 0x586   : > { %v6773_v12 = vmul.f32 0.5, %v8404_v32  ;;  %v8406_v18 = vadd.f32 %v6500_v62, %v12587_v5  ;;  %v6502_v9 = vpop.f32.mrb[99].mxu0  ;;  %v8200_v10 = vpop.f32.mrb[163].mxu1  ;;  %v12621_v32 = vadd.f32 %v12560_v7, %v12589_v40  ;;  %v12629_v2 = vadd.f32 %v12567_v33, %v12589_v40 }
 0x587   : > { %v6774_v4 = vmul.f32 0.5, %v8405_v43  ;;  %v6707_v46 = vadd.f32 %v8198_v50, %v6610_v59  ;;  %v8407_v21 = vadd.f32 %v6502_v9, %v12591_v8  ;;  %v8201_v19 = vadd.f32 %v8200_v10, %v8199_v14 }
 0x588   : > { %9807 = vtanh.f32 %v6773_v12  ;;  %v6780_v36 = vmul.f32 0.5, %v8406_v18 }
 0x589   : > { %9809 = vtanh.f32 %v6774_v4  ;;  %v6775_v34 = vmul.f32 0.5, %v6707_v46  ;;  %v6781_v42 = vmul.f32 0.5, %v8407_v21  ;;  %v6710_v44 = vadd.f32 %v8201_v19, %v6613_v26 }
 0x58a   : > { %9811 = vtanh.f32 %v6780_v36 }
 0x58b   : > { %9813 = vtanh.f32 %v6775_v34  ;;  %v6782_v6 = vmul.f32 0.5, %v6710_v44  ;;  %v6506_v51 = vpop.f32.mrb[100].mxu0  ;;  %v8202_v15 = vpop.f32.mrb[164].mxu1 }
 0x58c   : > { %9815 = vtanh.f32 %v6781_v42  ;;  %v8408_v48 = vadd.f32 %v6506_v51, %v12587_v5  ;;  %v6508_v52 = vpop.f32.mrb[101].mxu0  ;;  %v8203_v56 = vpop.f32.mrb[165].mxu1 }
 0x58d   : > { %9817 = vtanh.f32 %v6782_v6  ;;  %v8409_v17 = vadd.f32 %v6508_v52, %v12591_v8  ;;  %v8204_v35 = vadd.f32 %v8203_v56, %v8202_v15  ;;  %v6510_v38 = vpop.f32.mrb[102].mxu0  ;;  %v8205_v11 = vpop.f32.mrb[166].mxu1 }
 0x58e   : > { %v6787_v63 = vmul.f32 0.5, %v8408_v48  ;;  %v8410_v58 = vadd.f32 %v6510_v38, %v12587_v5  ;;  %v6512_v3 = vpop.f32.mrb[103].mxu0  ;;  %v8206_v25 = vpop.f32.mrb[167].mxu1 }
 0x58f   : > { %v6788_v23 = vmul.f32 0.5, %v8409_v17  ;;  %v6715_v27 = vadd.f32 %v8204_v35, %v6618_v29  ;;  %v8411_v57 = vadd.f32 %v6512_v3, %v12591_v8  ;;  %v8207_v28 = vadd.f32 %v8206_v25, %v8205_v11 }
 0x590   : > { %9819 = vtanh.f32 %v6787_v63  ;;  %v6794_v55 = vmul.f32 0.5, %v8410_v58 }
 0x591   : > { %9821 = vtanh.f32 %v6788_v23  ;;  %v6789_v13 = vmul.f32 0.5, %v6715_v27  ;;  %v6795_v41 = vmul.f32 0.5, %v8411_v57  ;;  %v6718_v31 = vadd.f32 %v8207_v28, %v6621_v60 }
 0x592   : > { %v9808_v37 = vpop.eup %9807  ;;  %9823 = vtanh.f32 %v6794_v55  ;;  %v12640_v60 = vadd.f32 %v12569_v24, %v12589_v40  ;;  %v12645_v23 = vadd.f32 %v12571_v16, %v12589_v40 }
 0x593   : > { %v9810_v0 = vpop.eup %9809  ;;  %v6997_v49 = vmul.f32 0.5, %v9808_v37  ;;  %9825 = vtanh.f32 %v6789_v13  ;;  %v6796_v59 = vmul.f32 0.5, %v6718_v31  ;;  %v6516_v43 = vpop.f32.mrb[104].mxu0 }
 0x594   : > { %v8208_v20 = vpop.f32.mrb[168].mxu1  ;;  %v9812_v50 = vpop.eup %9811  ;;  %v6998_v62 = vmul.f32 0.5, %v9810_v0  ;;  %9827 = vtanh.f32 %v6795_v41  ;;  %v8412_v7 = vadd.f32 %v6516_v43, %v12587_v5 }
 0x595   : > { %v6518_v14 = vpop.f32.mrb[105].mxu0  ;;  %v8209_v26 = vpop.f32.mrb[169].mxu1  ;;  %v7109_v39 = vadd.f32 0.5, %v6997_v49  ;;  %v7004_v18 = vmul.f32 0.5, %v9812_v50  ;;  %9829 = vtanh.f32 %v6796_v59 }
 0x596   : > { %v9814_v12 = vpop.eup %9813  ;;  %v8413_v9 = vadd.f32 %v6518_v14, %v12591_v8  ;;  %v6520_v10 = vpop.f32.mrb[106].mxu0  ;;  %v7110_v21 = vadd.f32 0.5, %v6998_v62  ;;  %v6801_v19 = vmul.f32 0.5, %v8412_v7  ;;  %v8210_v36 = vadd.f32 %v8209_v26, %v8208_v20 }
 0x597   : > { %v8211_v4 = vpop.f32.mrb[170].mxu1  ;;  %v9816_v46 = vpop.eup %9815  ;;  %v6999_v33 = vmul.f32 0.5, %v9814_v12  ;;  %7221 = vst [vmem:[%s12354_s22 + $0x20] sm:$0xff] %v7109_v39  ;;  %v7116_v6 = vadd.f32 0.5, %v7004_v18  ;;  %v8414_v48 = vadd.f32 %v6520_v10, %v12587_v5 }
 0x598   : > { %v6522_v34 = vpop.f32.mrb[107].mxu0  ;;  %v8212_v42 = vpop.f32.mrb[171].mxu1  ;;  %v7005_v51 = vmul.f32 0.5, %v9816_v46  ;;  %v6802_v15 = vmul.f32 0.5, %v8413_v9  ;;  %7222 = vst [vmem:[%s12354_s22 + $0x28] sm:$0xff] %v7110_v21  ;;  %9831 = vtanh.f32 %v6801_v19  ;;  %v6723_v29 = vadd.f32 %v8210_v36, %v6626_v45 }
 0x599   : > { %v9818_v44 = vpop.eup %9817  ;;  %v7111_v52 = vadd.f32 0.5, %v6999_v33  ;;  %7228 = vst [vmem:[%s12354_s22 + $0x58] sm:$0xff] %v7116_v6  ;;  %v6808_v35 = vmul.f32 0.5, %v8414_v48  ;;  %v8415_v38 = vadd.f32 %v6522_v34, %v12591_v8  ;;  %v8213_v3 = vadd.f32 %v8212_v42, %v8211_v4 }
 0x59a   : > { %v7006_v56 = vmul.f32 0.5, %v9818_v44  ;;  %v7117_v17 = vadd.f32 0.5, %v7005_v51  ;;  %9833 = vtanh.f32 %v6802_v15  ;;  %v9820_v11 = vpop.eup %9819  ;;  %v6803_v58 = vmul.f32 0.5, %v6723_v29 }
 0x59b   : > { %7223 = vst [vmem:[%s12354_s22 + $0x30] sm:$0xff] %v7111_v52  ;;  %v9822_v25 = vpop.eup %9821  ;;  %v7011_v27 = vmul.f32 0.5, %v9820_v11  ;;  %9835 = vtanh.f32 %v6808_v35  ;;  %v6809_v57 = vmul.f32 0.5, %v8415_v38  ;;  %v6526_v28 = vpop.f32.mrb[108].mxu0  ;;  %v6726_v24 = vadd.f32 %v8213_v3, %v12613_v22 }
 0x59c   : > { %v7118_v63 = vadd.f32 0.5, %v7006_v56  ;;  %7229 = vst [vmem:[%s12354_s22 + $0x60] sm:$0xff] %v7117_v17  ;;  %v8214_v45 = vpop.f32.mrb[172].mxu1  ;;  %v9824_v55 = vpop.eup %9823  ;;  %v7012_v13 = vmul.f32 0.5, %v9822_v25  ;;  %9837 = vtanh.f32 %v6803_v58  ;;  %v8416_v41 = vadd.f32 %v6526_v28, %v12587_v5 }
 0x59d   : > { %v6528_v31 = vpop.f32.mrb[109].mxu0  ;;  %v8215_v37 = vpop.f32.mrb[173].mxu1  ;;  %v7123_v16 = vadd.f32 0.5, %v7011_v27  ;;  %v7018_v49 = vmul.f32 0.5, %v9824_v55  ;;  %9839 = vtanh.f32 %v6809_v57  ;;  %v6810_v14 = vmul.f32 0.5, %v6726_v24 }
 0x59e   : > { %7230 = vst [vmem:[%s12354_s22 + $0x68] sm:$0xff] %v7118_v63  ;;  %v9826_v0 = vpop.eup %9825  ;;  %v8417_v59 = vadd.f32 %v6528_v31, %v12591_v8  ;;  %v6530_v43 = vpop.f32.mrb[110].mxu0  ;;  %v7124_v62 = vadd.f32 0.5, %v7012_v13  ;;  %v6815_v22 = vmul.f32 0.5, %v8416_v41  ;;  %v8216_v4 = vadd.f32 %v8215_v37, %v8214_v45 }
 0x59f   : > { %v8217_v20 = vpop.f32.mrb[174].mxu1  ;;  %v9828_v50 = vpop.eup %9827  ;;  %v7013_v7 = vmul.f32 0.5, %v9826_v0  ;;  %7235 = vst [vmem:[%s12354_s22 + $0x90] sm:$0xff] %v7123_v16  ;;  %v7130_v18 = vadd.f32 0.5, %v7018_v49  ;;  %9841 = vtanh.f32 %v6810_v14  ;;  %v8418_v33 = vadd.f32 %v6530_v43, %v12587_v5 }
 0x5a0   : > { %v6532_v26 = vpop.f32.mrb[111].mxu0  ;;  %v8218_v12 = vpop.f32.mrb[175].mxu1  ;;  %v7019_v9 = vmul.f32 0.5, %v9828_v50  ;;  %v6816_v10 = vmul.f32 0.5, %v8417_v59  ;;  %7236 = vst [vmem:[%s12354_s22 + $0x98] sm:$0xff] %v7124_v62  ;;  %9843 = vtanh.f32 %v6815_v22  ;;  %v6731_v36 = vadd.f32 %v8216_v4, %v12617_v1 }
 0x5a1   : > { %v9830_v39 = vpop.eup %9829  ;;  %v7125_v46 = vadd.f32 0.5, %v7013_v7  ;;  %7242 = vst [vmem:[%s12354_s22 + $0xc8] sm:$0xff] %v7130_v18  ;;  %v8419_v34 = vadd.f32 %v6532_v26, %v12591_v8  ;;  %v6822_v6 = vmul.f32 0.5, %v8418_v33  ;;  %v8219_v51 = vadd.f32 %v8218_v12, %v8217_v20 }
 0x5a2   : > { %v7020_v21 = vmul.f32 0.5, %v9830_v39  ;;  %v7131_v19 = vadd.f32 0.5, %v7019_v9  ;;  %v9832_v42 = vpop.eup %9831  ;;  %9845 = vtanh.f32 %v6816_v10  ;;  %v12661_v48 = vadd.f32 %v12573_v54, %v12589_v40 }
 0x5a3   : > { %7237 = vst [vmem:[%s12354_s22 + $0xa0] sm:$0xff] %v7125_v46  ;;  %v7025_v52 = vmul.f32 0.5, %v9832_v42  ;;  %v6817_v56 = vmul.f32 0.5, %v6731_v36  ;;  %v6823_v29 = vmul.f32 0.5, %v8419_v34  ;;  %v6536_v17 = vpop.f32.mrb[112].mxu0  ;;  %v8220_v1 = vpop.f32.mrb[176].mxu1  ;;  %9847 = vtanh.f32 %v6822_v6 }
 0x5a4   : > { %v7132_v44 = vadd.f32 0.5, %v7020_v21  ;;  %v9834_v15 = vpop.eup %9833  ;;  %7243 = vst [vmem:[%s12354_s22 + $0xd0] sm:$0xff] %v7131_v19  ;;  %v6734_v38 = vadd.f32 %v8219_v51, %v12621_v32  ;;  %v8420_v11 = vadd.f32 %v6536_v17, %v12587_v5  ;;  %v6538_v63 = vpop.f32.mrb[113].mxu0  ;;  %v12676_v39 = vadd.f32 %v12575_v61, %v12589_v40 }
 0x5a5   : > { %v7026_v35 = vmul.f32 0.5, %v9834_v15  ;;  %v8221_v58 = vpop.f32.mrb[177].mxu1  ;;  %v9836_v3 = vpop.eup %9835  ;;  %v7137_v25 = vadd.f32 0.5, %v7025_v52  ;;  %9849 = vtanh.f32 %v6817_v56  ;;  %v8421_v54 = vadd.f32 %v6538_v63, %v12591_v8 }
 0x5a6   : > { %7244 = vst [vmem:[%s12354_s22 + $0xd8] sm:$0xff] %v7132_v44  ;;  %v8222_v27 = vadd.f32 %v8221_v58, %v8220_v1  ;;  %v6540_v57 = vpop.f32.mrb[114].mxu0  ;;  %v8223_v28 = vpop.f32.mrb[178].mxu1  ;;  %v7032_v13 = vmul.f32 0.5, %v9836_v3  ;;  %9851 = vtanh.f32 %v6823_v29  ;;  %v6824_v24 = vmul.f32 0.5, %v6734_v38 }
 0x5a7   : > { %v9838_v45 = vpop.eup %9837  ;;  %v7138_v55 = vadd.f32 0.5, %v7026_v35  ;;  %v6542_v32 = vpop.f32.mrb[115].mxu0  ;;  %7249 = vst [vmem:[%s12354_s22 + $0x100] sm:$0xff] %v7137_v25  ;;  %v6829_v0 = vmul.f32 0.5, %v8420_v11  ;;  %v6830_v16 = vmul.f32 0.5, %v8421_v54  ;;  %v8422_v20 = vadd.f32 %v6540_v57, %v12587_v5 }
 0x5a8   : > { %v8224_v41 = vpop.f32.mrb[179].mxu1  ;;  %v9840_v31 = vpop.eup %9839  ;;  %v7027_v37 = vmul.f32 0.5, %v9838_v45  ;;  %v6739_v49 = vadd.f32 %v8222_v27, %v12625_v53  ;;  %v7144_v59 = vadd.f32 0.5, %v7032_v13  ;;  %9853 = vtanh.f32 %v6824_v24 }
 0x5a9   : > { %7250 = vst [vmem:[%s12354_s22 + $0x108] sm:$0xff] %v7138_v55  ;;  %v7033_v43 = vmul.f32 0.5, %v9840_v31  ;;  %9855 = vtanh.f32 %v6829_v0  ;;  %v8423_v7 = vadd.f32 %v6542_v32, %v12591_v8  ;;  %v9842_v14 = vpop.eup %9841  ;;  %v6836_v26 = vmul.f32 0.5, %v8422_v20 }
 0x5aa   : > { %v7139_v50 = vadd.f32 0.5, %v7027_v37  ;;  %v6831_v62 = vmul.f32 0.5, %v6739_v49  ;;  %7256 = vst [vmem:[%s12354_s22 + $0x138] sm:$0xff] %v7144_v59  ;;  %9857 = vtanh.f32 %v6830_v16  ;;  %v8225_v12 = vadd.f32 %v8224_v41, %v8223_v28  ;;  %v9844_v53 = vpop.eup %9843 }
 0x5ab   : > { %v7145_v22 = vadd.f32 0.5, %v7033_v43  ;;  %v7034_v18 = vmul.f32 0.5, %v9842_v14  ;;  %v6837_v9 = vmul.f32 0.5, %v8423_v7  ;;  %v6546_v10 = vpop.f32.mrb[116].mxu0  ;;  %v8226_v4 = vpop.f32.mrb[180].mxu1  ;;  %v7039_v21 = vmul.f32 0.5, %v9844_v53 }
 0x5ac   : > { %7251 = vst [vmem:[%s12354_s22 + $0x110] sm:$0xff] %v7139_v50  ;;  %9859 = vtanh.f32 %v6831_v62  ;;  %v9846_v46 = vpop.eup %9845  ;;  %v6742_v33 = vadd.f32 %v8225_v12, %v12629_v2  ;;  %v8424_v19 = vadd.f32 %v6546_v10, %v12587_v5  ;;  %v6548_v36 = vpop.f32.mrb[117].mxu0  ;;  %v12692_v59 = vadd.f32 %v12579_v47, %v12589_v40 }
 0x5ad   : > { %7257 = vst [vmem:[%s12354_s22 + $0x140] sm:$0xff] %v7145_v22  ;;  %9861 = vtanh.f32 %v6836_v26  ;;  %v8227_v34 = vpop.f32.mrb[181].mxu1  ;;  %v7146_v42 = vadd.f32 0.5, %v7034_v18  ;;  %v7040_v61 = vmul.f32 0.5, %v9846_v46  ;;  %v8425_v44 = vadd.f32 %v6548_v36, %v12591_v8  ;;  %v6550_v6 = vpop.f32.mrb[118].mxu0 }
 0x5ae   : > { %9863 = vtanh.f32 %v6837_v9  ;;  %v8229_v51 = vpop.f32.mrb[182].mxu1  ;;  %v9848_v15 = vpop.eup %9847  ;;  %v7151_v52 = vadd.f32 0.5, %v7039_v21  ;;  %v6838_v56 = vmul.f32 0.5, %v6742_v33  ;;  %v6843_v29 = vmul.f32 0.5, %v8424_v19 }
 0x5af   : > { %v8228_v17 = vadd.f32 %v8227_v34, %v8226_v4  ;;  %v6552_v2 = vpop.f32.mrb[119].mxu0  ;;  %v8230_v1 = vpop.f32.mrb[183].mxu1  ;;  %7258 = vst [vmem:[%s12354_s22 + $0x148] sm:$0xff] %v7146_v42  ;;  %v7152_v38 = vadd.f32 0.5, %v7040_v61  ;;  %v7046_v11 = vmul.f32 0.5, %v9848_v15  ;;  %v6844_v63 = vmul.f32 0.5, %v8425_v44 }
 0x5b0   : > { %v9850_v35 = vpop.eup %9849  ;;  %v8426_v58 = vadd.f32 %v6550_v6, %v12587_v5  ;;  %7263 = vst [vmem:[%s12354_s22 + $0x170] sm:$0xff] %v7151_v52  ;;  %9865 = vtanh.f32 %v6838_v56  ;;  %v8427_v27 = vadd.f32 %v6552_v2, %v12591_v8 }
 0x5b1   : > { %v9852_v3 = vpop.eup %9851  ;;  %v7041_v25 = vmul.f32 0.5, %v9850_v35  ;;  %v6747_v54 = vadd.f32 %v8228_v17, %v12640_v60  ;;  %7264 = vst [vmem:[%s12354_s22 + $0x178] sm:$0xff] %v7152_v38  ;;  %v7158_v57 = vadd.f32 0.5, %v7046_v11  ;;  %9867 = vtanh.f32 %v6843_v29 }
 0x5b2   : > { %v7047_v28 = vmul.f32 0.5, %v9852_v3  ;;  %v6850_v45 = vmul.f32 0.5, %v8426_v58  ;;  %v9854_v55 = vpop.eup %9853  ;;  %9869 = vtanh.f32 %v6844_v63  ;;  %v6851_v32 = vmul.f32 0.5, %v8427_v27 }
 0x5b3   : > { %v7153_v13 = vadd.f32 0.5, %v7041_v25  ;;  %v6845_v24 = vmul.f32 0.5, %v6747_v54  ;;  %v9856_v41 = vpop.eup %9855  ;;  %7270 = vst [vmem:[%s12354_s22 + $0x1a8] sm:$0xff] %v7158_v57  ;;  %v7048_v37 = vmul.f32 0.5, %v9854_v55  ;;  %v8231_v60 = vadd.f32 %v8230_v1, %v8229_v51  ;;  %v6556_v0 = vpop.f32.mrb[120].mxu0 }
 0x5b4   : > { %v7159_v31 = vadd.f32 0.5, %v7047_v28  ;;  %9871 = vtanh.f32 %v6850_v45  ;;  %v8232_v16 = vpop.f32.mrb[184].mxu1  ;;  %v9858_v49 = vpop.eup %9857  ;;  %v7053_v43 = vmul.f32 0.5, %v9856_v41  ;;  %v8428_v20 = vadd.f32 %v6556_v0, %v12587_v5 }
 0x5b5   : > { %7265 = vst [vmem:[%s12354_s22 + $0x180] sm:$0xff] %v7153_v13  ;;  %9873 = vtanh.f32 %v6845_v24  ;;  %v6558_v50 = vpop.f32.mrb[121].mxu0  ;;  %v8233_v62 = vpop.f32.mrb[185].mxu1  ;;  %v7160_v14 = vadd.f32 0.5, %v7048_v37  ;;  %v7054_v22 = vmul.f32 0.5, %v9858_v49  ;;  %v6750_v26 = vadd.f32 %v8231_v60, %v12645_v23 }
 0x5b6   : > { %v9860_v7 = vpop.eup %9859  ;;  %7271 = vst [vmem:[%s12354_s22 + $0x1b0] sm:$0xff] %v7159_v31  ;;  %9875 = vtanh.f32 %v6851_v32  ;;  %v6560_v12 = vpop.f32.mrb[122].mxu0  ;;  %v7165_v18 = vadd.f32 0.5, %v7053_v43  ;;  %v6857_v10 = vmul.f32 0.5, %v8428_v20  ;;  %v8429_v4 = vadd.f32 %v6558_v50, %v12591_v8 }
 0x5b7   : > { %v8235_v53 = vpop.f32.mrb[186].mxu1  ;;  %v9862_v47 = vpop.eup %9861  ;;  %v7055_v9 = vmul.f32 0.5, %v9860_v7  ;;  %7272 = vst [vmem:[%s12354_s22 + $0x1b8] sm:$0xff] %v7160_v14  ;;  %v7166_v19 = vadd.f32 0.5, %v7054_v22  ;;  %v6852_v34 = vmul.f32 0.5, %v6750_v26  ;;  %v8234_v42 = vadd.f32 %v8233_v62, %v8232_v16 }
 0x5b8   : > { %v6562_v46 = vpop.f32.mrb[123].mxu0  ;;  %v8236_v21 = vpop.f32.mrb[187].mxu1  ;;  %v7060_v36 = vmul.f32 0.5, %v9862_v47  ;;  %7277 = vst [vmem:[%s12354_s22 + $0x1e0] sm:$0xff] %v7165_v18  ;;  %9877 = vtanh.f32 %v6857_v10  ;;  %v6858_v44 = vmul.f32 0.5, %v8429_v4  ;;  %v8430_v15 = vadd.f32 %v6560_v12, %v12587_v5 }
 0x5b9   : > { %v9864_v33 = vpop.eup %9863  ;;  %v7167_v23 = vadd.f32 0.5, %v7055_v9  ;;  %7278 = vst [vmem:[%s12354_s22 + $0x1e8] sm:$0xff] %v7166_v19  ;;  %9879 = vtanh.f32 %v6852_v34  ;;  %v6755_v51 = vadd.f32 %v8234_v42, %v12661_v48  ;;  %v8431_v29 = vadd.f32 %v6562_v46, %v12591_v8 }
 0x5ba   : > { %v7061_v61 = vmul.f32 0.5, %v9864_v33  ;;  %v7172_v6 = vadd.f32 0.5, %v7060_v36  ;;  %v9866_v52 = vpop.eup %9865  ;;  %9881 = vtanh.f32 %v6858_v44  ;;  %v8237_v17 = vadd.f32 %v8236_v21, %v8235_v53 }
 0x5bb   : > { %7279 = vst [vmem:[%s12354_s22 + $0x1f0] sm:$0xff] %v7167_v23  ;;  %v9868_v2 = vpop.eup %9867  ;;  %v6669_v1 = vadd.f32 %v12582_v30, %v12589_v40  ;;  %v7062_v35 = vmul.f32 0.5, %v9866_v52  ;;  %v6859_v38 = vmul.f32 0.5, %v6755_v51  ;;  %v6864_v11 = vmul.f32 0.5, %v8430_v15  ;;  %v6566_v63 = vpop.f32.mrb[124].mxu0 }
 0x5bc   : > { %v7173_v56 = vadd.f32 0.5, %v7061_v61  ;;  %7284 = vst [vmem:[%s12354_s22 + $0x218] sm:$0xff] %v7172_v6  ;;  %v8238_v48 = vpop.f32.mrb[188].mxu1  ;;  %v9870_v58 = vpop.eup %9869  ;;  %v7067_v3 = vmul.f32 0.5, %v9868_v2  ;;  %v6865_v25 = vmul.f32 0.5, %v8431_v29  ;;  %v6758_v54 = vadd.f32 %v8237_v17, %v12676_v39 }
 0x5bd   : > { %v8432_v27 = vadd.f32 %v6566_v63, %v12587_v5  ;;  %v6568_v57 = vpop.f32.mrb[125].mxu0  ;;  %v8239_v28 = vpop.f32.mrb[189].mxu1  ;;  %v7174_v55 = vadd.f32 0.5, %v7062_v35  ;;  %v7068_v30 = vmul.f32 0.5, %v9870_v58  ;;  %9883 = vtanh.f32 %v6859_v38 }
 0x5be   : > { %7285 = vst [vmem:[%s12354_s22 + $0x220] sm:$0xff] %v7173_v56  ;;  %v9872_v45 = vpop.eup %9871  ;;  %v8433_v40 = vadd.f32 %v6568_v57, %v12591_v8  ;;  %v6570_v13 = vpop.f32.mrb[126].mxu0  ;;  %v7179_v41 = vadd.f32 0.5, %v7067_v3  ;;  %9885 = vtanh.f32 %v6864_v11  ;;  %v6866_v39 = vmul.f32 0.5, %v6758_v54 }
 0x5bf   : > { %v8241_v24 = vpop.f32.mrb[190].mxu1  ;;  %v9874_v32 = vpop.eup %9873  ;;  %v7074_v31 = vmul.f32 0.5, %v9872_v45  ;;  %7286 = vst [vmem:[%s12354_s22 + $0x228] sm:$0xff] %v7174_v55  ;;  %v7180_v16 = vadd.f32 0.5, %v7068_v30  ;;  %9887 = vtanh.f32 %v6865_v25  ;;  %v6871_v43 = vmul.f32 0.5, %v8432_v27 }
 0x5c0   : > { %v6572_v37 = vpop.f32.mrb[127].mxu0  ;;  %v8242_v60 = vpop.f32.mrb[191].mxu1  ;;  %v7069_v49 = vmul.f32 0.5, %v9874_v32  ;;  %7291 = vst [vmem:[%s12354_s22 + $0x250] sm:$0xff] %v7179_v41  ;;  %9889 = vtanh.f32 %v6866_v39  ;;  %v6872_v62 = vmul.f32 0.5, %v8433_v40  ;;  %v8240_v14 = vadd.f32 %v8239_v28, %v8238_v48 }
 0x5c1   : > { %v9876_v0 = vpop.eup %9875  ;;  %v7186_v20 = vadd.f32 0.5, %v7074_v31  ;;  %7292 = vst [vmem:[%s12354_s22 + $0x258] sm:$0xff] %v7180_v16  ;;  %9891 = vtanh.f32 %v6871_v43  ;;  %v8434_v22 = vadd.f32 %v6570_v13, %v12587_v5  ;;  %v8435_v53 = vadd.f32 %v6572_v37, %v12591_v8 }
 0x5c2   : > { %v7075_v50 = vmul.f32 0.5, %v9876_v0  ;;  %v7181_v7 = vadd.f32 0.5, %v7069_v49  ;;  %v9878_v26 = vpop.eup %9877  ;;  %9893 = vtanh.f32 %v6872_v62  ;;  %v8243_v47 = vadd.f32 %v8242_v60, %v8241_v24 }
 0x5c3   : > { %7298 = vst [vmem:[%s12354_s22 + $0x288] sm:$0xff] %v7186_v20  ;;  %v9880_v18 = vpop.eup %9879  ;;  %v7081_v9 = vmul.f32 0.5, %v9878_v26  ;;  %v6763_v10 = vadd.f32 %v8240_v14, %v12692_v59  ;;  %v6878_v4 = vmul.f32 0.5, %v8434_v22  ;;  %v6879_v33 = vmul.f32 0.5, %v8435_v53 }
 0x5c4   : > { %v7187_v12 = vadd.f32 0.5, %v7075_v50  ;;  %7293 = vst [vmem:[%s12354_s22 + $0x260] sm:$0xff] %v7181_v7  ;;  %v9882_v46 = vpop.eup %9881  ;;  %v7076_v21 = vmul.f32 0.5, %v9880_v18  ;;  %v6766_v5 = vadd.f32 %v8243_v47, %v6669_v1 }
 0x5c5   : > { %v7193_v19 = vadd.f32 0.5, %v7081_v9  ;;  %v7082_v36 = vmul.f32 0.5, %v9882_v46  ;;  %v6873_v34 = vmul.f32 0.5, %v6763_v10  ;;  %9895 = vtanh.f32 %v6878_v4 }
 0x5c6   : > { %7299 = vst [vmem:[%s12354_s22 + $0x290] sm:$0xff] %v7187_v12  ;;  %v7188_v8 = vadd.f32 0.5, %v7076_v21  ;;  %9897 = vtanh.f32 %v6879_v33  ;;  %v6880_v42 = vmul.f32 0.5, %v6766_v5 }
 0x5c7   : > { %v9884_v23 = vpop.eup %9883  ;;  %7305 = vst [vmem:[%s12354_s22 + $0x2c0] sm:$0xff] %v7193_v19  ;;  %v7194_v61 = vadd.f32 0.5, %v7082_v36  ;;  %9899 = vtanh.f32 %v6873_v34 }
 0x5c8   : > { %v9886_v59 = vpop.eup %9885  ;;  %7300 = vst [vmem:[%s12354_s22 + $0x298] sm:$0xff] %v7188_v8  ;;  %v7083_v44 = vmul.f32 0.5, %v9884_v23  ;;  %9901 = vtanh.f32 %v6880_v42 }
 0x5c9   : > { %v9888_v6 = vpop.eup %9887  ;;  %7306 = vst [vmem:[%s12354_s22 + $0x2c8] sm:$0xff] %v7194_v61  ;;  %v7088_v51 = vmul.f32 0.5, %v9886_v59 }
 0x5ca   : > { %v9890_v15 = vpop.eup %9889  ;;  %v7195_v52 = vadd.f32 0.5, %v7083_v44  ;;  %v7089_v56 = vmul.f32 0.5, %v9888_v6 }
 0x5cb   : > { %v9892_v29 = vpop.eup %9891  ;;  %v7200_v17 = vadd.f32 0.5, %v7088_v51  ;;  %v7090_v2 = vmul.f32 0.5, %v9890_v15 }
 0x5cc   : > { %v9894_v1 = vpop.eup %9893  ;;  %7307 = vst [vmem:[%s12354_s22 + $0x2d0] sm:$0xff] %v7195_v52  ;;  %v7201_v35 = vadd.f32 0.5, %v7089_v56  ;;  %v7095_v38 = vmul.f32 0.5, %v9892_v29 }
 0x5cd   : > { %7312 = vst [vmem:[%s12354_s22 + $0x2f8] sm:$0xff] %v7200_v17  ;;  %v7202_v11 = vadd.f32 0.5, %v7090_v2  ;;  %v7096_v63 = vmul.f32 0.5, %v9894_v1 }
 0x5ce   : > { %7313 = vst [vmem:[%s12354_s22 + $0x300] sm:$0xff] %v7201_v35  ;;  %v7207_v48 = vadd.f32 0.5, %v7095_v38 }
 0x5cf   : > { %v9896_v58 = vpop.eup %9895  ;;  %7314 = vst [vmem:[%s12354_s22 + $0x308] sm:$0xff] %v7202_v11  ;;  %v7208_v3 = vadd.f32 0.5, %v7096_v63 }
 0x5d0   : > { %v9898_v25 = vpop.eup %9897  ;;  %7319 = vst [vmem:[%s12354_s22 + $0x330] sm:$0xff] %v7207_v48  ;;  %v7102_v54 = vmul.f32 0.5, %v9896_v58 }
 0x5d1   : > { %v9900_v27 = vpop.eup %9899  ;;  %7320 = vst [vmem:[%s12354_s22 + $0x338] sm:$0xff] %v7208_v3  ;;  %v7103_v57 = vmul.f32 0.5, %v9898_v25 }
 0x5d2   : > { %v9902_v28 = vpop.eup %9901  ;;  %v7097_v45 = vmul.f32 0.5, %v9900_v27  ;;  %v7214_v55 = vadd.f32 0.5, %v7102_v54 }
 0x5d3   : > { %v7215_v30 = vadd.f32 0.5, %v7103_v57  ;;  %v7104_v40 = vmul.f32 0.5, %v9902_v28 }
 0x5d4   : > { %v7209_v13 = vadd.f32 0.5, %v7097_v45  ;;  %7326 = vst [vmem:[%s12354_s22 + $0x368] sm:$0xff] %v7214_v55 }
 0x5d5   : > { %7327 = vst [vmem:[%s12354_s22 + $0x370] sm:$0xff] %v7215_v30  ;;  %v7216_v24 = vadd.f32 0.5, %v7104_v40 }
 0x5d6   : > { %7321 = vst [vmem:[%s12354_s22 + $0x340] sm:$0xff] %v7209_v13 }
 0x5d7   : > { %7328 = vst [vmem:[%s12354_s22 + $0x378] sm:$0xff] %v7216_v24 }
 0x5d8 PF: > { %s23_s21 = sadd.s32 1, %s9910_s21  }
 0x5d9   : > { %p20_p4 = scmp.ge.s32.totalorder %s23_s21, 4  }
 0x5db   :  { %22 = sbr.rel (!%p20_p4) target bundleno = 1 (0x1), region = 117 }

</bundles_post_ra>
